<compile_context>
chip_gen: v7x
topology: tpu7x:2x2x1
jax: 0.10.0
libtpu: 0.0.40
codegen_flags: <defaults>
</compile_context>

<pallas_src>
import math
from functools import partial

import jax
import jax.numpy as jnp
from jax.experimental import pallas as pl
from jax.experimental.pallas import tpu as pltpu


# ----------------------------- small helpers --------------------------------

def _ln(x, g, b, eps=1e-5):
    """LayerNorm over the last axis (f32)."""
    mu = jnp.mean(x, axis=-1, keepdims=True)
    xc = x - mu
    var = jnp.mean(xc * xc, axis=-1, keepdims=True)
    return xc * jax.lax.rsqrt(var + eps) * g + b


def _mm(x_f32, w_bf16):
    """bf16 MXU matmul with f32 accumulation."""
    return jnp.dot(x_f32.astype(jnp.bfloat16), w_bf16,
                   preferred_element_type=jnp.float32)


# ------------------------------- fused kernel --------------------------------

def _conformer_kernel(sqrt_d, heads, attn_scale, K,
                      # refs (order matches the wrapper):
                      x_ref, pe_ref, in_w, in_b, in_g, in_beta,
                      ff1_g, ff1_b, ff1_w1, ff1_b1, ff1_w2, ff1_b2,
                      mha_g, mha_b, wqkv, bqkv, wo, bo,
                      cv_g, cv_b, pw1_wa, pw1_ba, pw1_wb, pw1_bb,
                      dw_w, dw_b, bn_s, bn_sh, pw2_w, pw2_b,
                      ff2_g, ff2_b, ff2_w1, ff2_b1, ff2_w2, ff2_b2,
                      fin_g, fin_b,
                      ow0, ow1, ob, og, obeta,
                      o_ref, h_ref):
    l = pl.program_id(1)
    T, D = h_ref.shape
    dh = D // heads

    # ---- input layer: Linear -> LN -> ReLU -> *sqrt(adim) + PE  (l == 0) ---
    @pl.when(l == 0)
    def _():
        h0 = _mm(x_ref[...], in_w[...]) + in_b[...]
        h0 = _ln(h0, in_g[...], in_beta[...])
        h0 = jnp.maximum(h0, 0.0)
        h_ref[...] = h0 * sqrt_d + pe_ref[...]

    x = h_ref[...]                                      # (T, D) f32, resident

    # ---- macaron FFN #1: LN -> W1 -> Swish -> W2 -> *0.5 -> +residual ------
    y = _ln(x, ff1_g[...], ff1_b[...])
    t = _mm(y, ff1_w1[...]) + ff1_b1[...]
    t = t * jax.nn.sigmoid(t)                           # Swish (f32)
    x = x + 0.5 * (_mm(t, ff1_w2[...]) + ff1_b2[...])

    # ---- MHSA: LN -> fused QKV -> per-head attn -> merge -> Wo -> +res -----
    y = _ln(x, mha_g[...], mha_b[...])
    qkv = _mm(y, wqkv[...]) + bqkv[...]                 # (T, 3D)
    ctx = []
    for hd in range(heads):                             # static, unrolled
        q = qkv[:, hd * dh:(hd + 1) * dh]
        k = qkv[:, D + hd * dh:D + (hd + 1) * dh]
        v = qkv[:, 2 * D + hd * dh:2 * D + (hd + 1) * dh]
        s = jnp.einsum('td,sd->ts',
                       q.astype(jnp.bfloat16), k.astype(jnp.bfloat16),
                       preferred_element_type=jnp.float32) * attn_scale
        s = s - jnp.max(s, axis=-1, keepdims=True)
        p = jnp.exp(s)
        p = p * pl.reciprocal(jnp.sum(p, axis=-1, keepdims=True), approx=True)
        ctx.append(jnp.dot(p.astype(jnp.bfloat16), v.astype(jnp.bfloat16),
                           preferred_element_type=jnp.float32))
    ctx = jnp.concatenate(ctx, axis=-1)                 # (T, D)
    x = x + _mm(ctx, wo[...]) + bo[...]

    # ---- conv module: LN -> PW1(a,g)+GLU -> DW conv -> BN -> Swish -> PW2 --
    y = _ln(x, cv_g[...], cv_b[...])
    a = _mm(y, pw1_wa[...]) + pw1_ba[...]
    g = _mm(y, pw1_wb[...]) + pw1_bb[...]
    u = a * jax.nn.sigmoid(g)                           # GLU
    pad = (K - 1) // 2
    z = jnp.concatenate([jnp.zeros((pad, D), jnp.float32), u,
                         jnp.zeros((pad, D), jnp.float32)], axis=0)
    dw = dw_w[...]                                      # (K, D) f32
    acc = jnp.zeros((T, D), jnp.float32)
    for kk in range(K):                                 # static, unrolled
        acc = acc + z[kk:kk + T, :] * dw[kk:kk + 1, :]
    v = acc + dw_b[...]
    v = v * bn_s[...] + bn_sh[...]                      # eval-mode BatchNorm
    v = v * jax.nn.sigmoid(v)                           # Swish
    x = x + _mm(v, pw2_w[...]) + pw2_b[...]

    # ---- macaron FFN #2 -> *0.5 -> +residual -> block-final LayerNorm ------
    y = _ln(x, ff2_g[...], ff2_b[...])
    t = _mm(y, ff2_w1[...]) + ff2_b1[...]
    t = t * jax.nn.sigmoid(t)
    x = x + 0.5 * (_mm(t, ff2_w2[...]) + ff2_b2[...])
    x = _ln(x, fin_g[...], fin_b[...])

    h_ref[...] = x                                      # carry to next layer

    # ---- output head: Conv2d(k=2,s=1,p=1) col-0 -> LN -> ReLU  (last l) ----
    @pl.when(l == pl.num_programs(1) - 1)
    def _():
        zrow = jnp.zeros((1, D), jnp.float32)
        xp = jnp.concatenate([zrow, x, zrow], axis=0)   # (T+2, D)
        yh = (_mm(xp[:T + 1, :], ow0[...])              # kh = 0
              + _mm(xp[1:, :], ow1[...])                # kh = 1
              + ob[...])                                # (T+1, adim*n_class)
        yh = _ln(yh, og[...], obeta[...])
        o_ref[...] = jnp.maximum(yh, 0.0)


# ------------------------------ forward wrapper -------------------------------

def conformer_separator_forward(x, params, cfg):
    B, T, idim = x.shape
    D = cfg["adim"]
    heads = cfg["aheads"]
    K = cfg["kernel_size"]
    n_class = cfg["n_class"]
    L = cfg["elayers"]
    DN = D * n_class

    pe = params["pe"][:T]                               # (T, D)
    blk = params["blk"]

    const_args = [pe, params["in_w"], params["in_b"],
                  params["in_ln_g"], params["in_ln_b"]]
    layer_keys = ["ff1_g", "ff1_b", "ff1_w1", "ff1_b1", "ff1_w2", "ff1_b2",
                  "mha_g", "mha_b", "wqkv", "bqkv", "wo", "bo",
                  "cv_g", "cv_b", "pw1_wa", "pw1_ba", "pw1_wb", "pw1_bb",
                  "dw_w", "dw_b", "bn_s", "bn_sh", "pw2_w", "pw2_b",
                  "ff2_g", "ff2_b", "ff2_w1", "ff2_b1", "ff2_w2", "ff2_b2",
                  "fin_g", "fin_b"]
    layer_args = [blk[k] for k in layer_keys]
    out_args = [params["conv_w0"], params["conv_w1"], params["conv_b"],
                params["out_ln_g"], params["out_ln_b"]]

    def const_spec(a):          # fetched once, constant over the whole grid
        return pl.BlockSpec(a.shape, lambda b, l, n=a.ndim: (0,) * n)

    def layer_spec(a):          # streamed per layer along grid axis 1
        return pl.BlockSpec((None,) + a.shape[1:], lambda b, l: (l, 0, 0))

    in_specs = ([pl.BlockSpec((None, T, idim), lambda b, l: (b, 0, 0))]
                + [const_spec(a) for a in const_args]
                + [layer_spec(a) for a in layer_args]
                + [const_spec(a) for a in out_args])

    kernel = partial(_conformer_kernel, math.sqrt(D), heads,
                     1.0 / math.sqrt(D // heads), K)

    y = pl.pallas_call(
        kernel,
        out_shape=jax.ShapeDtypeStruct((B, T + 1, DN), jnp.float32),
        grid=(B, L),
        in_specs=in_specs,
        out_specs=pl.BlockSpec((None, T + 1, DN), lambda b, l: (b, 0, 0)),
        scratch_shapes=[pltpu.VMEM((T, D), jnp.float32)],
        compiler_params=pltpu.CompilerParams(
            dimension_semantics=("parallel", "arbitrary")),
    )(x, *const_args, *layer_args, *out_args)

    # (B, T+1, adim*n_class) -> (B, n_class, T+1, adim)  (matches ref view/permute)
    y = y.reshape(B, T + 1, D, n_class).transpose(0, 3, 1, 2)
    return y, None


# -------------------------------- parameters ---------------------------------

def sinusoidal_pe(max_len, D):
    pos = jnp.arange(max_len, dtype=jnp.float32)[:, None]
    div = jnp.exp(jnp.arange(0, D, 2, dtype=jnp.float32)
                  * (-math.log(10000.0) / D))
    pe = jnp.zeros((max_len, D), jnp.float32)
    pe = pe.at[:, 0::2].set(jnp.sin(pos * div))
    pe = pe.at[:, 1::2].set(jnp.cos(pos * div))
    return pe


def init_params(key, cfg, max_len=64):
    idim, adim, eunits = cfg["idim"], cfg["adim"], cfg["eunits"]
    K, n_class, elayers = cfg["kernel_size"], cfg["n_class"], cfg["elayers"]
    keys = iter(jax.random.split(key, 4096))

    def W(shape, scale=0.1):       # bf16 matmul weight (MXU boundary)
        w = jax.random.normal(next(keys), shape, jnp.float32) * scale
        return w.astype(jnp.bfloat16)

    def Wf(shape, scale=0.1):      # f32 weight (depthwise / folded conv)
        return jax.random.normal(next(keys), shape, jnp.float32) * scale

    def Bv(d):
        return (jax.random.normal(next(keys), (d,), jnp.float32)
                * 0.02).reshape(1, d)

    def LNg(d):
        return (1.0 + 0.01 * jax.random.normal(next(keys), (d,),
                                               jnp.float32)).reshape(1, d)

    def LNb(d):
        return (0.01 * jax.random.normal(next(keys), (d,),
                                         jnp.float32)).reshape(1, d)

    def block():
        bn_g, bn_b = LNg(adim), LNb(adim)
        rm = jnp.zeros((1, adim), jnp.float32)
        rv = jnp.ones((1, adim), jnp.float32)
        bn_s = bn_g / jnp.sqrt(rv + 1e-5)                # folded eval-mode BN
        bn_sh = bn_b - rm * bn_s
        return {
            "ff1_g": LNg(adim), "ff1_b": LNb(adim),
            "ff1_w1": W((adim, eunits)), "ff1_b1": Bv(eunits),
            "ff1_w2": W((eunits, adim)), "ff1_b2": Bv(adim),
            "mha_g": LNg(adim), "mha_b": LNb(adim),
            "wqkv": W((adim, 3 * adim)),                 # [Wq | Wk | Wv] fused
            "bqkv": Bv(3 * adim),
            "wo": W((adim, adim)), "bo": Bv(adim),
            "cv_g": LNg(adim), "cv_b": LNb(adim),
            "pw1_wa": W((adim, adim)), "pw1_ba": Bv(adim),
            "pw1_wb": W((adim, adim)), "pw1_bb": Bv(adim),
            "dw_w": Wf((K, adim)), "dw_b": Bv(adim),
            "bn_s": bn_s, "bn_sh": bn_sh,
            "pw2_w": W((adim, adim)), "pw2_b": Bv(adim),
            "ff2_g": LNg(adim), "ff2_b": LNb(adim),
            "ff2_w1": W((adim, eunits)), "ff2_b1": Bv(eunits),
            "ff2_w2": W((eunits, adim)), "ff2_b2": Bv(adim),
            "fin_g": LNg(adim), "fin_b": LNb(adim),
        }

    blocks = [block() for _ in range(elayers)]
    blk = {k: jnp.stack([blocks[i][k] for i in range(elayers)])
           for k in blocks[0]}

    # Conv2d weight (OC, IC, KH=2, KW=2).  Output-width column 0 pairs the
    # real (width-1) input with kernel-width index 1; fold the two KH slices
    # into two time-shifted matmul weights.
    conv_w = Wf((adim * n_class, adim, 2, 2))
    conv_w0 = conv_w[:, :, 0, 1].T.astype(jnp.bfloat16)   # kh = 0
    conv_w1 = conv_w[:, :, 1, 1].T.astype(jnp.bfloat16)   # kh = 1

    return {
        "pe": sinusoidal_pe(max_len, adim),
        "in_w": W((idim, adim)), "in_b": Bv(adim),
        "in_ln_g": LNg(adim), "in_ln_b": LNb(adim),
        "blk": blk,
        "conv_w0": conv_w0, "conv_w1": conv_w1,
        "conv_b": Bv(adim * n_class),
        "out_ln_g": LNg(adim * n_class), "out_ln_b": LNb(adim * n_class),
    }


# ----------------------------------- main -------------------------------------

if __name__ == "__main__":
    cfg = dict(idim=20, adim=16, eunits=32, aheads=4,
               kernel_size=7, n_class=3, elayers=2)
    B, T = 2, 8

    key = jax.random.PRNGKey(0)
    kx, kp = jax.random.split(key)
    x = jax.random.normal(kx, (B, T, cfg["idim"]), jnp.float32)
    params = init_params(kp, cfg, max_len=64)

    fwd = jax.jit(lambda x, params: conformer_separator_forward(x, params, cfg))
    y, mask = fwd(x, params)
    jax.block_until_ready(y)

    assert y.shape == (B, cfg["n_class"], T + 1, cfg["adim"]), y.shape
    assert mask is None
    assert bool(jnp.all(jnp.isfinite(y)))
    print("KERNEL_OK")
</pallas_src>

<mosaic_0001>
module attributes {stable_mosaic.version = 11 : i64} {
  func.func @_conformer_kernel(%arg0: i32, %arg1: i32, %arg2: memref<1x8x20xf32, #tpu.memory_space<vmem>>, %arg3: memref<8x16xf32, #tpu.memory_space<vmem>>, %arg4: memref<20x16xbf16, #tpu.memory_space<vmem>>, %arg5: memref<1x16xf32, #tpu.memory_space<vmem>>, %arg6: memref<1x16xf32, #tpu.memory_space<vmem>>, %arg7: memref<1x16xf32, #tpu.memory_space<vmem>>, %arg8: memref<1x1x16xf32, #tpu.memory_space<vmem>>, %arg9: memref<1x1x16xf32, #tpu.memory_space<vmem>>, %arg10: memref<1x16x32xbf16, #tpu.memory_space<vmem>>, %arg11: memref<1x1x32xf32, #tpu.memory_space<vmem>>, %arg12: memref<1x32x16xbf16, #tpu.memory_space<vmem>>, %arg13: memref<1x1x16xf32, #tpu.memory_space<vmem>>, %arg14: memref<1x1x16xf32, #tpu.memory_space<vmem>>, %arg15: memref<1x1x16xf32, #tpu.memory_space<vmem>>, %arg16: memref<1x16x48xbf16, #tpu.memory_space<vmem>>, %arg17: memref<1x1x48xf32, #tpu.memory_space<vmem>>, %arg18: memref<1x16x16xbf16, #tpu.memory_space<vmem>>, %arg19: memref<1x1x16xf32, #tpu.memory_space<vmem>>, %arg20: memref<1x1x16xf32, #tpu.memory_space<vmem>>, %arg21: memref<1x1x16xf32, #tpu.memory_space<vmem>>, %arg22: memref<1x16x16xbf16, #tpu.memory_space<vmem>>, %arg23: memref<1x1x16xf32, #tpu.memory_space<vmem>>, %arg24: memref<1x16x16xbf16, #tpu.memory_space<vmem>>, %arg25: memref<1x1x16xf32, #tpu.memory_space<vmem>>, %arg26: memref<1x7x16xf32, #tpu.memory_space<vmem>>, %arg27: memref<1x1x16xf32, #tpu.memory_space<vmem>>, %arg28: memref<1x1x16xf32, #tpu.memory_space<vmem>>, %arg29: memref<1x1x16xf32, #tpu.memory_space<vmem>>, %arg30: memref<1x16x16xbf16, #tpu.memory_space<vmem>>, %arg31: memref<1x1x16xf32, #tpu.memory_space<vmem>>, %arg32: memref<1x1x16xf32, #tpu.memory_space<vmem>>, %arg33: memref<1x1x16xf32, #tpu.memory_space<vmem>>, %arg34: memref<1x16x32xbf16, #tpu.memory_space<vmem>>, %arg35: memref<1x1x32xf32, #tpu.memory_space<vmem>>, %arg36: memref<1x32x16xbf16, #tpu.memory_space<vmem>>, %arg37: memref<1x1x16xf32, #tpu.memory_space<vmem>>, %arg38: memref<1x1x16xf32, #tpu.memory_space<vmem>>, %arg39: memref<1x1x16xf32, #tpu.memory_space<vmem>>, %arg40: memref<16x48xbf16, #tpu.memory_space<vmem>>, %arg41: memref<16x48xbf16, #tpu.memory_space<vmem>>, %arg42: memref<1x48xf32, #tpu.memory_space<vmem>>, %arg43: memref<1x48xf32, #tpu.memory_space<vmem>>, %arg44: memref<1x48xf32, #tpu.memory_space<vmem>>, %arg45: memref<1x9x48xf32, #tpu.memory_space<vmem>>, %arg46: memref<8x16xf32, #tpu.memory_space<vmem>>) attributes {dimension_semantics = [#tpu.dimension_semantics<parallel>, #tpu.dimension_semantics<arbitrary>], iteration_bounds = array<i64: 2, 2>, scalar_prefetch = 0 : i64, scratch_operands = 1 : i64, tpu.core_type = #tpu.core_type<tc>, window_params = [{transform_indices = @transform_0, window_bounds = array<i64: 1, 8, 20>}, {pipeline_mode = #tpu.pipeline_mode<synchronous>, transform_indices = @transform_1, window_bounds = array<i64: 8, 16>}, {pipeline_mode = #tpu.pipeline_mode<synchronous>, transform_indices = @transform_2, window_bounds = array<i64: 20, 16>}, {pipeline_mode = #tpu.pipeline_mode<synchronous>, transform_indices = @transform_3, window_bounds = array<i64: 1, 16>}, {pipeline_mode = #tpu.pipeline_mode<synchronous>, transform_indices = @transform_4, window_bounds = array<i64: 1, 16>}, {pipeline_mode = #tpu.pipeline_mode<synchronous>, transform_indices = @transform_5, window_bounds = array<i64: 1, 16>}, {transform_indices = @transform_6, window_bounds = array<i64: 1, 1, 16>}, {transform_indices = @transform_7, window_bounds = array<i64: 1, 1, 16>}, {transform_indices = @transform_8, window_bounds = array<i64: 1, 16, 32>}, {transform_indices = @transform_9, window_bounds = array<i64: 1, 1, 32>}, {transform_indices = @transform_10, window_bounds = array<i64: 1, 32, 16>}, {transform_indices = @transform_11, window_bounds = array<i64: 1, 1, 16>}, {transform_indices = @transform_12, window_bounds = array<i64: 1, 1, 16>}, {transform_indices = @transform_13, window_bounds = array<i64: 1, 1, 16>}, {transform_indices = @transform_14, window_bounds = array<i64: 1, 16, 48>}, {transform_indices = @transform_15, window_bounds = array<i64: 1, 1, 48>}, {transform_indices = @transform_16, window_bounds = array<i64: 1, 16, 16>}, {transform_indices = @transform_17, window_bounds = array<i64: 1, 1, 16>}, {transform_indices = @transform_18, window_bounds = array<i64: 1, 1, 16>}, {transform_indices = @transform_19, window_bounds = array<i64: 1, 1, 16>}, {transform_indices = @transform_20, window_bounds = array<i64: 1, 16, 16>}, {transform_indices = @transform_21, window_bounds = array<i64: 1, 1, 16>}, {transform_indices = @transform_22, window_bounds = array<i64: 1, 16, 16>}, {transform_indices = @transform_23, window_bounds = array<i64: 1, 1, 16>}, {transform_indices = @transform_24, window_bounds = array<i64: 1, 7, 16>}, {transform_indices = @transform_25, window_bounds = array<i64: 1, 1, 16>}, {transform_indices = @transform_26, window_bounds = array<i64: 1, 1, 16>}, {transform_indices = @transform_27, window_bounds = array<i64: 1, 1, 16>}, {transform_indices = @transform_28, window_bounds = array<i64: 1, 16, 16>}, {transform_indices = @transform_29, window_bounds = array<i64: 1, 1, 16>}, {transform_indices = @transform_30, window_bounds = array<i64: 1, 1, 16>}, {transform_indices = @transform_31, window_bounds = array<i64: 1, 1, 16>}, {transform_indices = @transform_32, window_bounds = array<i64: 1, 16, 32>}, {transform_indices = @transform_33, window_bounds = array<i64: 1, 1, 32>}, {transform_indices = @transform_34, window_bounds = array<i64: 1, 32, 16>}, {transform_indices = @transform_35, window_bounds = array<i64: 1, 1, 16>}, {transform_indices = @transform_36, window_bounds = array<i64: 1, 1, 16>}, {transform_indices = @transform_37, window_bounds = array<i64: 1, 1, 16>}, {pipeline_mode = #tpu.pipeline_mode<synchronous>, transform_indices = @transform_38, window_bounds = array<i64: 16, 48>}, {pipeline_mode = #tpu.pipeline_mode<synchronous>, transform_indices = @transform_39, window_bounds = array<i64: 16, 48>}, {pipeline_mode = #tpu.pipeline_mode<synchronous>, transform_indices = @transform_40, window_bounds = array<i64: 1, 48>}, {pipeline_mode = #tpu.pipeline_mode<synchronous>, transform_indices = @transform_41, window_bounds = array<i64: 1, 48>}, {pipeline_mode = #tpu.pipeline_mode<synchronous>, transform_indices = @transform_42, window_bounds = array<i64: 1, 48>}, {transform_indices = @transform_43, window_bounds = array<i64: 1, 9, 48>}]} {
    %c0_i32 = arith.constant 0 : i32
    %0 = arith.cmpi eq, %arg1, %c0_i32 : i32
    %1 = arith.extui %0 : i1 to i32
    %c0_i32_0 = arith.constant 0 : i32
    %2 = arith.cmpi ne, %1, %c0_i32_0 : i32
    scf.if %2 {
      %c0_163 = arith.constant 0 : index
      %c0_164 = arith.constant 0 : index
      %c0_165 = arith.constant 0 : index
      %370 = vector.load %arg2[%c0_163, %c0_164, %c0_165] : memref<1x8x20xf32, #tpu.memory_space<vmem>>, vector<1x8x20xf32>
      %371 = vector.shape_cast %370 : vector<1x8x20xf32> to vector<8x20xf32>
      %c0_166 = arith.constant 0 : index
      %c0_167 = arith.constant 0 : index
      %372 = vector.load %arg4[%c0_166, %c0_167] : memref<20x16xbf16, #tpu.memory_space<vmem>>, vector<20x16xbf16>
      %373 = arith.truncf %371 : vector<8x20xf32> to vector<8x20xbf16>
      %cst_168 = arith.constant dense<0.000000e+00> : vector<8x16xf32>
      %374 = tpu.matmul %373, %372, %cst_168 {dimension_numbers = #tpu.dot_dimension_numbers<[1], [0], [0], [1], [0, 0, 1, 1], [], []>} : vector<8x20xbf16>, vector<20x16xbf16>, vector<8x16xf32> -> vector<8x16xf32>
      %c0_169 = arith.constant 0 : index
      %c0_170 = arith.constant 0 : index
      %375 = vector.load %arg5[%c0_169, %c0_170] : memref<1x16xf32, #tpu.memory_space<vmem>>, vector<1x16xf32>
      %376 = vector.broadcast %375 : vector<1x16xf32> to vector<8x16xf32>
      %377 = arith.addf %374, %376 : vector<8x16xf32>
      %c0_171 = arith.constant 0 : index
      %c0_172 = arith.constant 0 : index
      %378 = vector.load %arg6[%c0_171, %c0_172] : memref<1x16xf32, #tpu.memory_space<vmem>>, vector<1x16xf32>
      %c0_173 = arith.constant 0 : index
      %c0_174 = arith.constant 0 : index
      %379 = vector.load %arg7[%c0_173, %c0_174] : memref<1x16xf32, #tpu.memory_space<vmem>>, vector<1x16xf32>
      %cst_175 = arith.constant dense<0.000000e+00> : vector<8xf32>
      %380 = vector.multi_reduction <add>, %377, %cst_175 [1] : vector<8x16xf32> to vector<8xf32>
      %381 = vector.shape_cast %380 : vector<8xf32> to vector<8x1xf32>
      %cst_176 = arith.constant 1.600000e+01 : f32
      %382 = vector.broadcast %cst_176 : f32 to vector<8x1xf32>
      %383 = arith.divf %381, %382 : vector<8x1xf32>
      %384 = vector.broadcast %383 : vector<8x1xf32> to vector<8x16xf32>
      %385 = arith.subf %377, %384 : vector<8x16xf32>
      %386 = arith.mulf %385, %385 : vector<8x16xf32>
      %cst_177 = arith.constant dense<0.000000e+00> : vector<8xf32>
      %387 = vector.multi_reduction <add>, %386, %cst_177 [1] : vector<8x16xf32> to vector<8xf32>
      %388 = vector.shape_cast %387 : vector<8xf32> to vector<8x1xf32>
      %cst_178 = arith.constant 1.600000e+01 : f32
      %389 = vector.broadcast %cst_178 : f32 to vector<8x1xf32>
      %390 = arith.divf %388, %389 : vector<8x1xf32>
      %cst_179 = arith.constant 9.99999974E-6 : f32
      %391 = vector.broadcast %cst_179 : f32 to vector<8x1xf32>
      %392 = arith.addf %390, %391 : vector<8x1xf32>
      %393 = math.rsqrt %392 : vector<8x1xf32>
      %394 = vector.broadcast %393 : vector<8x1xf32> to vector<8x16xf32>
      %395 = arith.mulf %385, %394 : vector<8x16xf32>
      %396 = vector.broadcast %378 : vector<1x16xf32> to vector<8x16xf32>
      %397 = arith.mulf %395, %396 : vector<8x16xf32>
      %398 = vector.broadcast %379 : vector<1x16xf32> to vector<8x16xf32>
      %399 = arith.addf %397, %398 : vector<8x16xf32>
      %cst_180 = arith.constant 0.000000e+00 : f32
      %400 = vector.broadcast %cst_180 : f32 to vector<8x16xf32>
      %401 = arith.maximumf %399, %400 : vector<8x16xf32>
      %cst_181 = arith.constant 4.000000e+00 : f32
      %402 = vector.broadcast %cst_181 : f32 to vector<8x16xf32>
      %403 = arith.mulf %401, %402 : vector<8x16xf32>
      %c0_182 = arith.constant 0 : index
      %c0_183 = arith.constant 0 : index
      %404 = vector.load %arg3[%c0_182, %c0_183] : memref<8x16xf32, #tpu.memory_space<vmem>>, vector<8x16xf32>
      %405 = arith.addf %403, %404 : vector<8x16xf32>
      %c0_184 = arith.constant 0 : index
      %c0_185 = arith.constant 0 : index
      %406 = vector.load %arg46[%c0_184, %c0_185] : memref<8x16xf32, #tpu.memory_space<vmem>>, vector<8x16xf32>
      tpu.vector_store %arg46[%c0_184, %c0_185], %405 {strides = array<i32>} : memref<8x16xf32, #tpu.memory_space<vmem>>, vector<8x16xf32>,
    } else {
    }
    %c0 = arith.constant 0 : index
    %c0_1 = arith.constant 0 : index
    %3 = vector.load %arg46[%c0, %c0_1] : memref<8x16xf32, #tpu.memory_space<vmem>>, vector<8x16xf32>
    %c0_2 = arith.constant 0 : index
    %c0_3 = arith.constant 0 : index
    %c0_4 = arith.constant 0 : index
    %4 = vector.load %arg8[%c0_2, %c0_3, %c0_4] : memref<1x1x16xf32, #tpu.memory_space<vmem>>, vector<1x1x16xf32>
    %5 = vector.shape_cast %4 : vector<1x1x16xf32> to vector<1x16xf32>
    %c0_5 = arith.constant 0 : index
    %c0_6 = arith.constant 0 : index
    %c0_7 = arith.constant 0 : index
    %6 = vector.load %arg9[%c0_5, %c0_6, %c0_7] : memref<1x1x16xf32, #tpu.memory_space<vmem>>, vector<1x1x16xf32>
    %7 = vector.shape_cast %6 : vector<1x1x16xf32> to vector<1x16xf32>
    %cst = arith.constant dense<0.000000e+00> : vector<8xf32>
    %8 = vector.multi_reduction <add>, %3, %cst [1] : vector<8x16xf32> to vector<8xf32>
    %9 = vector.shape_cast %8 : vector<8xf32> to vector<8x1xf32>
    %cst_8 = arith.constant 1.600000e+01 : f32
    %10 = vector.broadcast %cst_8 : f32 to vector<8x1xf32>
    %11 = arith.divf %9, %10 : vector<8x1xf32>
    %12 = vector.broadcast %11 : vector<8x1xf32> to vector<8x16xf32>
    %13 = arith.subf %3, %12 : vector<8x16xf32>
    %14 = arith.mulf %13, %13 : vector<8x16xf32>
    %cst_9 = arith.constant dense<0.000000e+00> : vector<8xf32>
    %15 = vector.multi_reduction <add>, %14, %cst_9 [1] : vector<8x16xf32> to vector<8xf32>
    %16 = vector.shape_cast %15 : vector<8xf32> to vector<8x1xf32>
    %cst_10 = arith.constant 1.600000e+01 : f32
    %17 = vector.broadcast %cst_10 : f32 to vector<8x1xf32>
    %18 = arith.divf %16, %17 : vector<8x1xf32>
    %cst_11 = arith.constant 9.99999974E-6 : f32
    %19 = vector.broadcast %cst_11 : f32 to vector<8x1xf32>
    %20 = arith.addf %18, %19 : vector<8x1xf32>
    %21 = math.rsqrt %20 : vector<8x1xf32>
    %22 = vector.broadcast %21 : vector<8x1xf32> to vector<8x16xf32>
    %23 = arith.mulf %13, %22 : vector<8x16xf32>
    %24 = vector.broadcast %5 : vector<1x16xf32> to vector<8x16xf32>
    %25 = arith.mulf %23, %24 : vector<8x16xf32>
    %26 = vector.broadcast %7 : vector<1x16xf32> to vector<8x16xf32>
    %27 = arith.addf %25, %26 : vector<8x16xf32>
    %c0_12 = arith.constant 0 : index
    %c0_13 = arith.constant 0 : index
    %c0_14 = arith.constant 0 : index
    %28 = vector.load %arg10[%c0_12, %c0_13, %c0_14] : memref<1x16x32xbf16, #tpu.memory_space<vmem>>, vector<1x16x32xbf16>
    %29 = vector.shape_cast %28 : vector<1x16x32xbf16> to vector<16x32xbf16>
    %30 = arith.truncf %27 : vector<8x16xf32> to vector<8x16xbf16>
    %cst_15 = arith.constant dense<0.000000e+00> : vector<8x32xf32>
    %31 = tpu.matmul %30, %29, %cst_15 {dimension_numbers = #tpu.dot_dimension_numbers<[1], [0], [0], [1], [0, 0, 1, 1], [], []>} : vector<8x16xbf16>, vector<16x32xbf16>, vector<8x32xf32> -> vector<8x32xf32>
    %c0_16 = arith.constant 0 : index
    %c0_17 = arith.constant 0 : index
    %c0_18 = arith.constant 0 : index
    %32 = vector.load %arg11[%c0_16, %c0_17, %c0_18] : memref<1x1x32xf32, #tpu.memory_space<vmem>>, vector<1x1x32xf32>
    %33 = vector.shape_cast %32 : vector<1x1x32xf32> to vector<1x32xf32>
    %34 = vector.broadcast %33 : vector<1x32xf32> to vector<8x32xf32>
    %35 = arith.addf %31, %34 : vector<8x32xf32>
    %36 = arith.negf %35 : vector<8x32xf32>
    %37 = math.exp %36 : vector<8x32xf32>
    %cst_19 = arith.constant 1.000000e+00 : f32
    %38 = vector.broadcast %cst_19 : f32 to vector<8x32xf32>
    %39 = arith.addf %38, %37 : vector<8x32xf32>
    %40 = arith.divf %38, %39 : vector<8x32xf32>
    %41 = arith.mulf %35, %40 : vector<8x32xf32>
    %c0_20 = arith.constant 0 : index
    %c0_21 = arith.constant 0 : index
    %c0_22 = arith.constant 0 : index
    %42 = vector.load %arg12[%c0_20, %c0_21, %c0_22] : memref<1x32x16xbf16, #tpu.memory_space<vmem>>, vector<1x32x16xbf16>
    %43 = vector.shape_cast %42 : vector<1x32x16xbf16> to vector<32x16xbf16>
    %44 = arith.truncf %41 : vector<8x32xf32> to vector<8x32xbf16>
    %cst_23 = arith.constant dense<0.000000e+00> : vector<8x16xf32>
    %45 = tpu.matmul %44, %43, %cst_23 {dimension_numbers = #tpu.dot_dimension_numbers<[1], [0], [0], [1], [0, 0, 1, 1], [], []>} : vector<8x32xbf16>, vector<32x16xbf16>, vector<8x16xf32> -> vector<8x16xf32>
    %c0_24 = arith.constant 0 : index
    %c0_25 = arith.constant 0 : index
    %c0_26 = arith.constant 0 : index
    %46 = vector.load %arg13[%c0_24, %c0_25, %c0_26] : memref<1x1x16xf32, #tpu.memory_space<vmem>>, vector<1x1x16xf32>
    %47 = vector.shape_cast %46 : vector<1x1x16xf32> to vector<1x16xf32>
    %48 = vector.broadcast %47 : vector<1x16xf32> to vector<8x16xf32>
    %49 = arith.addf %45, %48 : vector<8x16xf32>
    %cst_27 = arith.constant 5.000000e-01 : f32
    %50 = vector.broadcast %cst_27 : f32 to vector<8x16xf32>
    %51 = arith.mulf %50, %49 : vector<8x16xf32>
    %52 = arith.addf %3, %51 : vector<8x16xf32>
    %c0_28 = arith.constant 0 : index
    %c0_29 = arith.constant 0 : index
    %c0_30 = arith.constant 0 : index
    %53 = vector.load %arg14[%c0_28, %c0_29, %c0_30] : memref<1x1x16xf32, #tpu.memory_space<vmem>>, vector<1x1x16xf32>
    %54 = vector.shape_cast %53 : vector<1x1x16xf32> to vector<1x16xf32>
    %c0_31 = arith.constant 0 : index
    %c0_32 = arith.constant 0 : index
    %c0_33 = arith.constant 0 : index
    %55 = vector.load %arg15[%c0_31, %c0_32, %c0_33] : memref<1x1x16xf32, #tpu.memory_space<vmem>>, vector<1x1x16xf32>
    %56 = vector.shape_cast %55 : vector<1x1x16xf32> to vector<1x16xf32>
    %cst_34 = arith.constant dense<0.000000e+00> : vector<8xf32>
    %57 = vector.multi_reduction <add>, %52, %cst_34 [1] : vector<8x16xf32> to vector<8xf32>
    %58 = vector.shape_cast %57 : vector<8xf32> to vector<8x1xf32>
    %cst_35 = arith.constant 1.600000e+01 : f32
    %59 = vector.broadcast %cst_35 : f32 to vector<8x1xf32>
    %60 = arith.divf %58, %59 : vector<8x1xf32>
    %61 = vector.broadcast %60 : vector<8x1xf32> to vector<8x16xf32>
    %62 = arith.subf %52, %61 : vector<8x16xf32>
    %63 = arith.mulf %62, %62 : vector<8x16xf32>
    %cst_36 = arith.constant dense<0.000000e+00> : vector<8xf32>
    %64 = vector.multi_reduction <add>, %63, %cst_36 [1] : vector<8x16xf32> to vector<8xf32>
    %65 = vector.shape_cast %64 : vector<8xf32> to vector<8x1xf32>
    %cst_37 = arith.constant 1.600000e+01 : f32
    %66 = vector.broadcast %cst_37 : f32 to vector<8x1xf32>
    %67 = arith.divf %65, %66 : vector<8x1xf32>
    %cst_38 = arith.constant 9.99999974E-6 : f32
    %68 = vector.broadcast %cst_38 : f32 to vector<8x1xf32>
    %69 = arith.addf %67, %68 : vector<8x1xf32>
    %70 = math.rsqrt %69 : vector<8x1xf32>
    %71 = vector.broadcast %70 : vector<8x1xf32> to vector<8x16xf32>
    %72 = arith.mulf %62, %71 : vector<8x16xf32>
    %73 = vector.broadcast %54 : vector<1x16xf32> to vector<8x16xf32>
    %74 = arith.mulf %72, %73 : vector<8x16xf32>
    %75 = vector.broadcast %56 : vector<1x16xf32> to vector<8x16xf32>
    %76 = arith.addf %74, %75 : vector<8x16xf32>
    %c0_39 = arith.constant 0 : index
    %c0_40 = arith.constant 0 : index
    %c0_41 = arith.constant 0 : index
    %77 = vector.load %arg16[%c0_39, %c0_40, %c0_41] : memref<1x16x48xbf16, #tpu.memory_space<vmem>>, vector<1x16x48xbf16>
    %78 = vector.shape_cast %77 : vector<1x16x48xbf16> to vector<16x48xbf16>
    %79 = arith.truncf %76 : vector<8x16xf32> to vector<8x16xbf16>
    %cst_42 = arith.constant dense<0.000000e+00> : vector<8x48xf32>
    %80 = tpu.matmul %79, %78, %cst_42 {dimension_numbers = #tpu.dot_dimension_numbers<[1], [0], [0], [1], [0, 0, 1, 1], [], []>} : vector<8x16xbf16>, vector<16x48xbf16>, vector<8x48xf32> -> vector<8x48xf32>
    %c0_43 = arith.constant 0 : index
    %c0_44 = arith.constant 0 : index
    %c0_45 = arith.constant 0 : index
    %81 = vector.load %arg17[%c0_43, %c0_44, %c0_45] : memref<1x1x48xf32, #tpu.memory_space<vmem>>, vector<1x1x48xf32>
    %82 = vector.shape_cast %81 : vector<1x1x48xf32> to vector<1x48xf32>
    %83 = vector.broadcast %82 : vector<1x48xf32> to vector<8x48xf32>
    %84 = arith.addf %80, %83 : vector<8x48xf32>
    %85 = vector.extract_strided_slice %84 {offsets = [0, 0], sizes = [8, 4], strides = [1, 1]} : vector<8x48xf32> to vector<8x4xf32>
    %86 = vector.extract_strided_slice %84 {offsets = [0, 16], sizes = [8, 4], strides = [1, 1]} : vector<8x48xf32> to vector<8x4xf32>
    %87 = vector.extract_strided_slice %84 {offsets = [0, 32], sizes = [8, 4], strides = [1, 1]} : vector<8x48xf32> to vector<8x4xf32>
    %88 = arith.truncf %85 : vector<8x4xf32> to vector<8x4xbf16>
    %89 = arith.truncf %86 : vector<8x4xf32> to vector<8x4xbf16>
    "tpu.trace_start"() <{level = 10 : i32, message = "td,sd->ts"}> : () -> ()
    %cst_46 = arith.constant dense<0.000000e+00> : vector<8x8xf32>
    %90 = tpu.matmul %88, %89, %cst_46 {dimension_numbers = #tpu.dot_dimension_numbers<[1], [1], [0], [0], [0, 0, 1, 0], [], []>} : vector<8x4xbf16>, vector<8x4xbf16>, vector<8x8xf32> -> vector<8x8xf32>
    "tpu.trace_stop"() : () -> ()
    %cst_47 = arith.constant 5.000000e-01 : f32
    %91 = vector.broadcast %cst_47 : f32 to vector<8x8xf32>
    %92 = arith.mulf %90, %91 : vector<8x8xf32>
    %cst_48 = arith.constant dense<0xFF800000> : vector<8xf32>
    %93 = vector.multi_reduction <maximumf>, %92, %cst_48 [1] : vector<8x8xf32> to vector<8xf32>
    %94 = vector.shape_cast %93 : vector<8xf32> to vector<8x1xf32>
    %95 = vector.broadcast %94 : vector<8x1xf32> to vector<8x8xf32>
    %96 = arith.subf %92, %95 : vector<8x8xf32>
    %97 = math.exp %96 : vector<8x8xf32>
    %cst_49 = arith.constant dense<0.000000e+00> : vector<8xf32>
    %98 = vector.multi_reduction <add>, %97, %cst_49 [1] : vector<8x8xf32> to vector<8xf32>
    %99 = vector.shape_cast %98 : vector<8xf32> to vector<8x1xf32>
    %100 = tpu.reciprocal %99 {approx = true} : vector<8x1xf32> -> vector<8x1xf32>
    %101 = vector.broadcast %100 : vector<8x1xf32> to vector<8x8xf32>
    %102 = arith.mulf %97, %101 : vector<8x8xf32>
    %103 = arith.truncf %102 : vector<8x8xf32> to vector<8x8xbf16>
    %104 = arith.truncf %87 : vector<8x4xf32> to vector<8x4xbf16>
    %cst_50 = arith.constant dense<0.000000e+00> : vector<8x4xf32>
    %105 = tpu.matmul %103, %104, %cst_50 {dimension_numbers = #tpu.dot_dimension_numbers<[1], [0], [0], [1], [0, 0, 1, 1], [], []>} : vector<8x8xbf16>, vector<8x4xbf16>, vector<8x4xf32> -> vector<8x4xf32>
    %106 = vector.extract_strided_slice %84 {offsets = [0, 4], sizes = [8, 4], strides = [1, 1]} : vector<8x48xf32> to vector<8x4xf32>
    %107 = vector.extract_strided_slice %84 {offsets = [0, 20], sizes = [8, 4], strides = [1, 1]} : vector<8x48xf32> to vector<8x4xf32>
    %108 = vector.extract_strided_slice %84 {offsets = [0, 36], sizes = [8, 4], strides = [1, 1]} : vector<8x48xf32> to vector<8x4xf32>
    %109 = arith.truncf %106 : vector<8x4xf32> to vector<8x4xbf16>
    %110 = arith.truncf %107 : vector<8x4xf32> to vector<8x4xbf16>
    "tpu.trace_start"() <{level = 10 : i32, message = "td,sd->ts"}> : () -> ()
    %cst_51 = arith.constant dense<0.000000e+00> : vector<8x8xf32>
    %111 = tpu.matmul %109, %110, %cst_51 {dimension_numbers = #tpu.dot_dimension_numbers<[1], [1], [0], [0], [0, 0, 1, 0], [], []>} : vector<8x4xbf16>, vector<8x4xbf16>, vector<8x8xf32> -> vector<8x8xf32>
    "tpu.trace_stop"() : () -> ()
    %cst_52 = arith.constant 5.000000e-01 : f32
    %112 = vector.broadcast %cst_52 : f32 to vector<8x8xf32>
    %113 = arith.mulf %111, %112 : vector<8x8xf32>
    %cst_53 = arith.constant dense<0xFF800000> : vector<8xf32>
    %114 = vector.multi_reduction <maximumf>, %113, %cst_53 [1] : vector<8x8xf32> to vector<8xf32>
    %115 = vector.shape_cast %114 : vector<8xf32> to vector<8x1xf32>
    %116 = vector.broadcast %115 : vector<8x1xf32> to vector<8x8xf32>
    %117 = arith.subf %113, %116 : vector<8x8xf32>
    %118 = math.exp %117 : vector<8x8xf32>
    %cst_54 = arith.constant dense<0.000000e+00> : vector<8xf32>
    %119 = vector.multi_reduction <add>, %118, %cst_54 [1] : vector<8x8xf32> to vector<8xf32>
    %120 = vector.shape_cast %119 : vector<8xf32> to vector<8x1xf32>
    %121 = tpu.reciprocal %120 {approx = true} : vector<8x1xf32> -> vector<8x1xf32>
    %122 = vector.broadcast %121 : vector<8x1xf32> to vector<8x8xf32>
    %123 = arith.mulf %118, %122 : vector<8x8xf32>
    %124 = arith.truncf %123 : vector<8x8xf32> to vector<8x8xbf16>
    %125 = arith.truncf %108 : vector<8x4xf32> to vector<8x4xbf16>
    %cst_55 = arith.constant dense<0.000000e+00> : vector<8x4xf32>
    %126 = tpu.matmul %124, %125, %cst_55 {dimension_numbers = #tpu.dot_dimension_numbers<[1], [0], [0], [1], [0, 0, 1, 1], [], []>} : vector<8x8xbf16>, vector<8x4xbf16>, vector<8x4xf32> -> vector<8x4xf32>
    %127 = vector.extract_strided_slice %84 {offsets = [0, 8], sizes = [8, 4], strides = [1, 1]} : vector<8x48xf32> to vector<8x4xf32>
    %128 = vector.extract_strided_slice %84 {offsets = [0, 24], sizes = [8, 4], strides = [1, 1]} : vector<8x48xf32> to vector<8x4xf32>
    %129 = vector.extract_strided_slice %84 {offsets = [0, 40], sizes = [8, 4], strides = [1, 1]} : vector<8x48xf32> to vector<8x4xf32>
    %130 = arith.truncf %127 : vector<8x4xf32> to vector<8x4xbf16>
    %131 = arith.truncf %128 : vector<8x4xf32> to vector<8x4xbf16>
    "tpu.trace_start"() <{level = 10 : i32, message = "td,sd->ts"}> : () -> ()
    %cst_56 = arith.constant dense<0.000000e+00> : vector<8x8xf32>
    %132 = tpu.matmul %130, %131, %cst_56 {dimension_numbers = #tpu.dot_dimension_numbers<[1], [1], [0], [0], [0, 0, 1, 0], [], []>} : vector<8x4xbf16>, vector<8x4xbf16>, vector<8x8xf32> -> vector<8x8xf32>
    "tpu.trace_stop"() : () -> ()
    %cst_57 = arith.constant 5.000000e-01 : f32
    %133 = vector.broadcast %cst_57 : f32 to vector<8x8xf32>
    %134 = arith.mulf %132, %133 : vector<8x8xf32>
    %cst_58 = arith.constant dense<0xFF800000> : vector<8xf32>
    %135 = vector.multi_reduction <maximumf>, %134, %cst_58 [1] : vector<8x8xf32> to vector<8xf32>
    %136 = vector.shape_cast %135 : vector<8xf32> to vector<8x1xf32>
    %137 = vector.broadcast %136 : vector<8x1xf32> to vector<8x8xf32>
    %138 = arith.subf %134, %137 : vector<8x8xf32>
    %139 = math.exp %138 : vector<8x8xf32>
    %cst_59 = arith.constant dense<0.000000e+00> : vector<8xf32>
    %140 = vector.multi_reduction <add>, %139, %cst_59 [1] : vector<8x8xf32> to vector<8xf32>
    %141 = vector.shape_cast %140 : vector<8xf32> to vector<8x1xf32>
    %142 = tpu.reciprocal %141 {approx = true} : vector<8x1xf32> -> vector<8x1xf32>
    %143 = vector.broadcast %142 : vector<8x1xf32> to vector<8x8xf32>
    %144 = arith.mulf %139, %143 : vector<8x8xf32>
    %145 = arith.truncf %144 : vector<8x8xf32> to vector<8x8xbf16>
    %146 = arith.truncf %129 : vector<8x4xf32> to vector<8x4xbf16>
    %cst_60 = arith.constant dense<0.000000e+00> : vector<8x4xf32>
    %147 = tpu.matmul %145, %146, %cst_60 {dimension_numbers = #tpu.dot_dimension_numbers<[1], [0], [0], [1], [0, 0, 1, 1], [], []>} : vector<8x8xbf16>, vector<8x4xbf16>, vector<8x4xf32> -> vector<8x4xf32>
    %148 = vector.extract_strided_slice %84 {offsets = [0, 12], sizes = [8, 4], strides = [1, 1]} : vector<8x48xf32> to vector<8x4xf32>
    %149 = vector.extract_strided_slice %84 {offsets = [0, 28], sizes = [8, 4], strides = [1, 1]} : vector<8x48xf32> to vector<8x4xf32>
    %150 = vector.extract_strided_slice %84 {offsets = [0, 44], sizes = [8, 4], strides = [1, 1]} : vector<8x48xf32> to vector<8x4xf32>
    %151 = arith.truncf %148 : vector<8x4xf32> to vector<8x4xbf16>
    %152 = arith.truncf %149 : vector<8x4xf32> to vector<8x4xbf16>
    "tpu.trace_start"() <{level = 10 : i32, message = "td,sd->ts"}> : () -> ()
    %cst_61 = arith.constant dense<0.000000e+00> : vector<8x8xf32>
    %153 = tpu.matmul %151, %152, %cst_61 {dimension_numbers = #tpu.dot_dimension_numbers<[1], [1], [0], [0], [0, 0, 1, 0], [], []>} : vector<8x4xbf16>, vector<8x4xbf16>, vector<8x8xf32> -> vector<8x8xf32>
    "tpu.trace_stop"() : () -> ()
    %cst_62 = arith.constant 5.000000e-01 : f32
    %154 = vector.broadcast %cst_62 : f32 to vector<8x8xf32>
    %155 = arith.mulf %153, %154 : vector<8x8xf32>
    %cst_63 = arith.constant dense<0xFF800000> : vector<8xf32>
    %156 = vector.multi_reduction <maximumf>, %155, %cst_63 [1] : vector<8x8xf32> to vector<8xf32>
    %157 = vector.shape_cast %156 : vector<8xf32> to vector<8x1xf32>
    %158 = vector.broadcast %157 : vector<8x1xf32> to vector<8x8xf32>
    %159 = arith.subf %155, %158 : vector<8x8xf32>
    %160 = math.exp %159 : vector<8x8xf32>
    %cst_64 = arith.constant dense<0.000000e+00> : vector<8xf32>
    %161 = vector.multi_reduction <add>, %160, %cst_64 [1] : vector<8x8xf32> to vector<8xf32>
    %162 = vector.shape_cast %161 : vector<8xf32> to vector<8x1xf32>
    %163 = tpu.reciprocal %162 {approx = true} : vector<8x1xf32> -> vector<8x1xf32>
    %164 = vector.broadcast %163 : vector<8x1xf32> to vector<8x8xf32>
    %165 = arith.mulf %160, %164 : vector<8x8xf32>
    %166 = arith.truncf %165 : vector<8x8xf32> to vector<8x8xbf16>
    %167 = arith.truncf %150 : vector<8x4xf32> to vector<8x4xbf16>
    %cst_65 = arith.constant dense<0.000000e+00> : vector<8x4xf32>
    %168 = tpu.matmul %166, %167, %cst_65 {dimension_numbers = #tpu.dot_dimension_numbers<[1], [0], [0], [1], [0, 0, 1, 1], [], []>} : vector<8x8xbf16>, vector<8x4xbf16>, vector<8x4xf32> -> vector<8x4xf32>
    %169 = tpu.concatenate %105, %126, %147, %168 in 1 : vector<8x4xf32>, vector<8x4xf32>, vector<8x4xf32>, vector<8x4xf32> -> vector<8x16xf32>
    %c0_66 = arith.constant 0 : index
    %c0_67 = arith.constant 0 : index
    %c0_68 = arith.constant 0 : index
    %170 = vector.load %arg18[%c0_66, %c0_67, %c0_68] : memref<1x16x16xbf16, #tpu.memory_space<vmem>>, vector<1x16x16xbf16>
    %171 = vector.shape_cast %170 : vector<1x16x16xbf16> to vector<16x16xbf16>
    %172 = arith.truncf %169 : vector<8x16xf32> to vector<8x16xbf16>
    %cst_69 = arith.constant dense<0.000000e+00> : vector<8x16xf32>
    %173 = tpu.matmul %172, %171, %cst_69 {dimension_numbers = #tpu.dot_dimension_numbers<[1], [0], [0], [1], [0, 0, 1, 1], [], []>} : vector<8x16xbf16>, vector<16x16xbf16>, vector<8x16xf32> -> vector<8x16xf32>
    %174 = arith.addf %52, %173 : vector<8x16xf32>
    %c0_70 = arith.constant 0 : index
    %c0_71 = arith.constant 0 : index
    %c0_72 = arith.constant 0 : index
    %175 = vector.load %arg19[%c0_70, %c0_71, %c0_72] : memref<1x1x16xf32, #tpu.memory_space<vmem>>, vector<1x1x16xf32>
    %176 = vector.shape_cast %175 : vector<1x1x16xf32> to vector<1x16xf32>
    %177 = vector.broadcast %176 : vector<1x16xf32> to vector<8x16xf32>
    %178 = arith.addf %174, %177 : vector<8x16xf32>
    %c0_73 = arith.constant 0 : index
    %c0_74 = arith.constant 0 : index
    %c0_75 = arith.constant 0 : index
    %179 = vector.load %arg20[%c0_73, %c0_74, %c0_75] : memref<1x1x16xf32, #tpu.memory_space<vmem>>, vector<1x1x16xf32>
    %180 = vector.shape_cast %179 : vector<1x1x16xf32> to vector<1x16xf32>
    %c0_76 = arith.constant 0 : index
    %c0_77 = arith.constant 0 : index
    %c0_78 = arith.constant 0 : index
    %181 = vector.load %arg21[%c0_76, %c0_77, %c0_78] : memref<1x1x16xf32, #tpu.memory_space<vmem>>, vector<1x1x16xf32>
    %182 = vector.shape_cast %181 : vector<1x1x16xf32> to vector<1x16xf32>
    %cst_79 = arith.constant dense<0.000000e+00> : vector<8xf32>
    %183 = vector.multi_reduction <add>, %178, %cst_79 [1] : vector<8x16xf32> to vector<8xf32>
    %184 = vector.shape_cast %183 : vector<8xf32> to vector<8x1xf32>
    %cst_80 = arith.constant 1.600000e+01 : f32
    %185 = vector.broadcast %cst_80 : f32 to vector<8x1xf32>
    %186 = arith.divf %184, %185 : vector<8x1xf32>
    %187 = vector.broadcast %186 : vector<8x1xf32> to vector<8x16xf32>
    %188 = arith.subf %178, %187 : vector<8x16xf32>
    %189 = arith.mulf %188, %188 : vector<8x16xf32>
    %cst_81 = arith.constant dense<0.000000e+00> : vector<8xf32>
    %190 = vector.multi_reduction <add>, %189, %cst_81 [1] : vector<8x16xf32> to vector<8xf32>
    %191 = vector.shape_cast %190 : vector<8xf32> to vector<8x1xf32>
    %cst_82 = arith.constant 1.600000e+01 : f32
    %192 = vector.broadcast %cst_82 : f32 to vector<8x1xf32>
    %193 = arith.divf %191, %192 : vector<8x1xf32>
    %cst_83 = arith.constant 9.99999974E-6 : f32
    %194 = vector.broadcast %cst_83 : f32 to vector<8x1xf32>
    %195 = arith.addf %193, %194 : vector<8x1xf32>
    %196 = math.rsqrt %195 : vector<8x1xf32>
    %197 = vector.broadcast %196 : vector<8x1xf32> to vector<8x16xf32>
    %198 = arith.mulf %188, %197 : vector<8x16xf32>
    %199 = vector.broadcast %180 : vector<1x16xf32> to vector<8x16xf32>
    %200 = arith.mulf %198, %199 : vector<8x16xf32>
    %201 = vector.broadcast %182 : vector<1x16xf32> to vector<8x16xf32>
    %202 = arith.addf %200, %201 : vector<8x16xf32>
    %c0_84 = arith.constant 0 : index
    %c0_85 = arith.constant 0 : index
    %c0_86 = arith.constant 0 : index
    %203 = vector.load %arg22[%c0_84, %c0_85, %c0_86] : memref<1x16x16xbf16, #tpu.memory_space<vmem>>, vector<1x16x16xbf16>
    %204 = vector.shape_cast %203 : vector<1x16x16xbf16> to vector<16x16xbf16>
    %205 = arith.truncf %202 : vector<8x16xf32> to vector<8x16xbf16>
    %cst_87 = arith.constant dense<0.000000e+00> : vector<8x16xf32>
    %206 = tpu.matmul %205, %204, %cst_87 {dimension_numbers = #tpu.dot_dimension_numbers<[1], [0], [0], [1], [0, 0, 1, 1], [], []>} : vector<8x16xbf16>, vector<16x16xbf16>, vector<8x16xf32> -> vector<8x16xf32>
    %c0_88 = arith.constant 0 : index
    %c0_89 = arith.constant 0 : index
    %c0_90 = arith.constant 0 : index
    %207 = vector.load %arg23[%c0_88, %c0_89, %c0_90] : memref<1x1x16xf32, #tpu.memory_space<vmem>>, vector<1x1x16xf32>
    %208 = vector.shape_cast %207 : vector<1x1x16xf32> to vector<1x16xf32>
    %209 = vector.broadcast %208 : vector<1x16xf32> to vector<8x16xf32>
    %210 = arith.addf %206, %209 : vector<8x16xf32>
    %c0_91 = arith.constant 0 : index
    %c0_92 = arith.constant 0 : index
    %c0_93 = arith.constant 0 : index
    %211 = vector.load %arg24[%c0_91, %c0_92, %c0_93] : memref<1x16x16xbf16, #tpu.memory_space<vmem>>, vector<1x16x16xbf16>
    %212 = vector.shape_cast %211 : vector<1x16x16xbf16> to vector<16x16xbf16>
    %213 = arith.truncf %202 : vector<8x16xf32> to vector<8x16xbf16>
    %cst_94 = arith.constant dense<0.000000e+00> : vector<8x16xf32>
    %214 = tpu.matmul %213, %212, %cst_94 {dimension_numbers = #tpu.dot_dimension_numbers<[1], [0], [0], [1], [0, 0, 1, 1], [], []>} : vector<8x16xbf16>, vector<16x16xbf16>, vector<8x16xf32> -> vector<8x16xf32>
    %c0_95 = arith.constant 0 : index
    %c0_96 = arith.constant 0 : index
    %c0_97 = arith.constant 0 : index
    %215 = vector.load %arg25[%c0_95, %c0_96, %c0_97] : memref<1x1x16xf32, #tpu.memory_space<vmem>>, vector<1x1x16xf32>
    %216 = vector.shape_cast %215 : vector<1x1x16xf32> to vector<1x16xf32>
    %217 = vector.broadcast %216 : vector<1x16xf32> to vector<8x16xf32>
    %218 = arith.addf %214, %217 : vector<8x16xf32>
    %219 = arith.negf %218 : vector<8x16xf32>
    %220 = math.exp %219 : vector<8x16xf32>
    %cst_98 = arith.constant 1.000000e+00 : f32
    %221 = vector.broadcast %cst_98 : f32 to vector<8x16xf32>
    %222 = arith.addf %221, %220 : vector<8x16xf32>
    %223 = arith.divf %221, %222 : vector<8x16xf32>
    %224 = arith.mulf %210, %223 : vector<8x16xf32>
    %cst_99 = arith.constant 0.000000e+00 : f32
    %225 = vector.broadcast %cst_99 : f32 to vector<3x16xf32>
    %cst_100 = arith.constant 0.000000e+00 : f32
    %226 = vector.broadcast %cst_100 : f32 to vector<3x16xf32>
    %227 = tpu.concatenate %225, %224, %226 in 0 : vector<3x16xf32>, vector<8x16xf32>, vector<3x16xf32> -> vector<14x16xf32>
    %c0_101 = arith.constant 0 : index
    %c0_102 = arith.constant 0 : index
    %c0_103 = arith.constant 0 : index
    %228 = vector.load %arg26[%c0_101, %c0_102, %c0_103] : memref<1x7x16xf32, #tpu.memory_space<vmem>>, vector<1x7x16xf32>
    %229 = vector.shape_cast %228 : vector<1x7x16xf32> to vector<7x16xf32>
    %cst_104 = arith.constant 0.000000e+00 : f32
    %230 = vector.broadcast %cst_104 : f32 to vector<8x16xf32>
    %231 = vector.extract_strided_slice %227 {offsets = [0, 0], sizes = [8, 16], strides = [1, 1]} : vector<14x16xf32> to vector<8x16xf32>
    %232 = vector.extract_strided_slice %229 {offsets = [0, 0], sizes = [1, 16], strides = [1, 1]} : vector<7x16xf32> to vector<1x16xf32>
    %233 = vector.broadcast %232 : vector<1x16xf32> to vector<8x16xf32>
    %234 = arith.mulf %231, %233 : vector<8x16xf32>
    %235 = arith.addf %230, %234 : vector<8x16xf32>
    %236 = vector.extract_strided_slice %227 {offsets = [1, 0], sizes = [8, 16], strides = [1, 1]} : vector<14x16xf32> to vector<8x16xf32>
    %237 = vector.extract_strided_slice %229 {offsets = [1, 0], sizes = [1, 16], strides = [1, 1]} : vector<7x16xf32> to vector<1x16xf32>
    %238 = vector.broadcast %237 : vector<1x16xf32> to vector<8x16xf32>
    %239 = arith.mulf %236, %238 : vector<8x16xf32>
    %240 = arith.addf %235, %239 : vector<8x16xf32>
    %241 = vector.extract_strided_slice %227 {offsets = [2, 0], sizes = [8, 16], strides = [1, 1]} : vector<14x16xf32> to vector<8x16xf32>
    %242 = vector.extract_strided_slice %229 {offsets = [2, 0], sizes = [1, 16], strides = [1, 1]} : vector<7x16xf32> to vector<1x16xf32>
    %243 = vector.broadcast %242 : vector<1x16xf32> to vector<8x16xf32>
    %244 = arith.mulf %241, %243 : vector<8x16xf32>
    %245 = arith.addf %240, %244 : vector<8x16xf32>
    %246 = vector.extract_strided_slice %227 {offsets = [3, 0], sizes = [8, 16], strides = [1, 1]} : vector<14x16xf32> to vector<8x16xf32>
    %247 = vector.extract_strided_slice %229 {offsets = [3, 0], sizes = [1, 16], strides = [1, 1]} : vector<7x16xf32> to vector<1x16xf32>
    %248 = vector.broadcast %247 : vector<1x16xf32> to vector<8x16xf32>
    %249 = arith.mulf %246, %248 : vector<8x16xf32>
    %250 = arith.addf %245, %249 : vector<8x16xf32>
    %251 = vector.extract_strided_slice %227 {offsets = [4, 0], sizes = [8, 16], strides = [1, 1]} : vector<14x16xf32> to vector<8x16xf32>
    %252 = vector.extract_strided_slice %229 {offsets = [4, 0], sizes = [1, 16], strides = [1, 1]} : vector<7x16xf32> to vector<1x16xf32>
    %253 = vector.broadcast %252 : vector<1x16xf32> to vector<8x16xf32>
    %254 = arith.mulf %251, %253 : vector<8x16xf32>
    %255 = arith.addf %250, %254 : vector<8x16xf32>
    %256 = vector.extract_strided_slice %227 {offsets = [5, 0], sizes = [8, 16], strides = [1, 1]} : vector<14x16xf32> to vector<8x16xf32>
    %257 = vector.extract_strided_slice %229 {offsets = [5, 0], sizes = [1, 16], strides = [1, 1]} : vector<7x16xf32> to vector<1x16xf32>
    %258 = vector.broadcast %257 : vector<1x16xf32> to vector<8x16xf32>
    %259 = arith.mulf %256, %258 : vector<8x16xf32>
    %260 = arith.addf %255, %259 : vector<8x16xf32>
    %261 = vector.extract_strided_slice %227 {offsets = [6, 0], sizes = [8, 16], strides = [1, 1]} : vector<14x16xf32> to vector<8x16xf32>
    %262 = vector.extract_strided_slice %229 {offsets = [6, 0], sizes = [1, 16], strides = [1, 1]} : vector<7x16xf32> to vector<1x16xf32>
    %263 = vector.broadcast %262 : vector<1x16xf32> to vector<8x16xf32>
    %264 = arith.mulf %261, %263 : vector<8x16xf32>
    %265 = arith.addf %260, %264 : vector<8x16xf32>
    %c0_105 = arith.constant 0 : index
    %c0_106 = arith.constant 0 : index
    %c0_107 = arith.constant 0 : index
    %266 = vector.load %arg27[%c0_105, %c0_106, %c0_107] : memref<1x1x16xf32, #tpu.memory_space<vmem>>, vector<1x1x16xf32>
    %267 = vector.shape_cast %266 : vector<1x1x16xf32> to vector<1x16xf32>
    %268 = vector.broadcast %267 : vector<1x16xf32> to vector<8x16xf32>
    %269 = arith.addf %265, %268 : vector<8x16xf32>
    %c0_108 = arith.constant 0 : index
    %c0_109 = arith.constant 0 : index
    %c0_110 = arith.constant 0 : index
    %270 = vector.load %arg28[%c0_108, %c0_109, %c0_110] : memref<1x1x16xf32, #tpu.memory_space<vmem>>, vector<1x1x16xf32>
    %271 = vector.shape_cast %270 : vector<1x1x16xf32> to vector<1x16xf32>
    %272 = vector.broadcast %271 : vector<1x16xf32> to vector<8x16xf32>
    %273 = arith.mulf %269, %272 : vector<8x16xf32>
    %c0_111 = arith.constant 0 : index
    %c0_112 = arith.constant 0 : index
    %c0_113 = arith.constant 0 : index
    %274 = vector.load %arg29[%c0_111, %c0_112, %c0_113] : memref<1x1x16xf32, #tpu.memory_space<vmem>>, vector<1x1x16xf32>
    %275 = vector.shape_cast %274 : vector<1x1x16xf32> to vector<1x16xf32>
    %276 = vector.broadcast %275 : vector<1x16xf32> to vector<8x16xf32>
    %277 = arith.addf %273, %276 : vector<8x16xf32>
    %278 = arith.negf %277 : vector<8x16xf32>
    %279 = math.exp %278 : vector<8x16xf32>
    %cst_114 = arith.constant 1.000000e+00 : f32
    %280 = vector.broadcast %cst_114 : f32 to vector<8x16xf32>
    %281 = arith.addf %280, %279 : vector<8x16xf32>
    %282 = arith.divf %280, %281 : vector<8x16xf32>
    %283 = arith.mulf %277, %282 : vector<8x16xf32>
    %c0_115 = arith.constant 0 : index
    %c0_116 = arith.constant 0 : index
    %c0_117 = arith.constant 0 : index
    %284 = vector.load %arg30[%c0_115, %c0_116, %c0_117] : memref<1x16x16xbf16, #tpu.memory_space<vmem>>, vector<1x16x16xbf16>
    %285 = vector.shape_cast %284 : vector<1x16x16xbf16> to vector<16x16xbf16>
    %286 = arith.truncf %283 : vector<8x16xf32> to vector<8x16xbf16>
    %cst_118 = arith.constant dense<0.000000e+00> : vector<8x16xf32>
    %287 = tpu.matmul %286, %285, %cst_118 {dimension_numbers = #tpu.dot_dimension_numbers<[1], [0], [0], [1], [0, 0, 1, 1], [], []>} : vector<8x16xbf16>, vector<16x16xbf16>, vector<8x16xf32> -> vector<8x16xf32>
    %288 = arith.addf %178, %287 : vector<8x16xf32>
    %c0_119 = arith.constant 0 : index
    %c0_120 = arith.constant 0 : index
    %c0_121 = arith.constant 0 : index
    %289 = vector.load %arg31[%c0_119, %c0_120, %c0_121] : memref<1x1x16xf32, #tpu.memory_space<vmem>>, vector<1x1x16xf32>
    %290 = vector.shape_cast %289 : vector<1x1x16xf32> to vector<1x16xf32>
    %291 = vector.broadcast %290 : vector<1x16xf32> to vector<8x16xf32>
    %292 = arith.addf %288, %291 : vector<8x16xf32>
    %c0_122 = arith.constant 0 : index
    %c0_123 = arith.constant 0 : index
    %c0_124 = arith.constant 0 : index
    %293 = vector.load %arg32[%c0_122, %c0_123, %c0_124] : memref<1x1x16xf32, #tpu.memory_space<vmem>>, vector<1x1x16xf32>
    %294 = vector.shape_cast %293 : vector<1x1x16xf32> to vector<1x16xf32>
    %c0_125 = arith.constant 0 : index
    %c0_126 = arith.constant 0 : index
    %c0_127 = arith.constant 0 : index
    %295 = vector.load %arg33[%c0_125, %c0_126, %c0_127] : memref<1x1x16xf32, #tpu.memory_space<vmem>>, vector<1x1x16xf32>
    %296 = vector.shape_cast %295 : vector<1x1x16xf32> to vector<1x16xf32>
    %cst_128 = arith.constant dense<0.000000e+00> : vector<8xf32>
    %297 = vector.multi_reduction <add>, %292, %cst_128 [1] : vector<8x16xf32> to vector<8xf32>
    %298 = vector.shape_cast %297 : vector<8xf32> to vector<8x1xf32>
    %cst_129 = arith.constant 1.600000e+01 : f32
    %299 = vector.broadcast %cst_129 : f32 to vector<8x1xf32>
    %300 = arith.divf %298, %299 : vector<8x1xf32>
    %301 = vector.broadcast %300 : vector<8x1xf32> to vector<8x16xf32>
    %302 = arith.subf %292, %301 : vector<8x16xf32>
    %303 = arith.mulf %302, %302 : vector<8x16xf32>
    %cst_130 = arith.constant dense<0.000000e+00> : vector<8xf32>
    %304 = vector.multi_reduction <add>, %303, %cst_130 [1] : vector<8x16xf32> to vector<8xf32>
    %305 = vector.shape_cast %304 : vector<8xf32> to vector<8x1xf32>
    %cst_131 = arith.constant 1.600000e+01 : f32
    %306 = vector.broadcast %cst_131 : f32 to vector<8x1xf32>
    %307 = arith.divf %305, %306 : vector<8x1xf32>
    %cst_132 = arith.constant 9.99999974E-6 : f32
    %308 = vector.broadcast %cst_132 : f32 to vector<8x1xf32>
    %309 = arith.addf %307, %308 : vector<8x1xf32>
    %310 = math.rsqrt %309 : vector<8x1xf32>
    %311 = vector.broadcast %310 : vector<8x1xf32> to vector<8x16xf32>
    %312 = arith.mulf %302, %311 : vector<8x16xf32>
    %313 = vector.broadcast %294 : vector<1x16xf32> to vector<8x16xf32>
    %314 = arith.mulf %312, %313 : vector<8x16xf32>
    %315 = vector.broadcast %296 : vector<1x16xf32> to vector<8x16xf32>
    %316 = arith.addf %314, %315 : vector<8x16xf32>
    %c0_133 = arith.constant 0 : index
    %c0_134 = arith.constant 0 : index
    %c0_135 = arith.constant 0 : index
    %317 = vector.load %arg34[%c0_133, %c0_134, %c0_135] : memref<1x16x32xbf16, #tpu.memory_space<vmem>>, vector<1x16x32xbf16>
    %318 = vector.shape_cast %317 : vector<1x16x32xbf16> to vector<16x32xbf16>
    %319 = arith.truncf %316 : vector<8x16xf32> to vector<8x16xbf16>
    %cst_136 = arith.constant dense<0.000000e+00> : vector<8x32xf32>
    %320 = tpu.matmul %319, %318, %cst_136 {dimension_numbers = #tpu.dot_dimension_numbers<[1], [0], [0], [1], [0, 0, 1, 1], [], []>} : vector<8x16xbf16>, vector<16x32xbf16>, vector<8x32xf32> -> vector<8x32xf32>
    %c0_137 = arith.constant 0 : index
    %c0_138 = arith.constant 0 : index
    %c0_139 = arith.constant 0 : index
    %321 = vector.load %arg35[%c0_137, %c0_138, %c0_139] : memref<1x1x32xf32, #tpu.memory_space<vmem>>, vector<1x1x32xf32>
    %322 = vector.shape_cast %321 : vector<1x1x32xf32> to vector<1x32xf32>
    %323 = vector.broadcast %322 : vector<1x32xf32> to vector<8x32xf32>
    %324 = arith.addf %320, %323 : vector<8x32xf32>
    %325 = arith.negf %324 : vector<8x32xf32>
    %326 = math.exp %325 : vector<8x32xf32>
    %cst_140 = arith.constant 1.000000e+00 : f32
    %327 = vector.broadcast %cst_140 : f32 to vector<8x32xf32>
    %328 = arith.addf %327, %326 : vector<8x32xf32>
    %329 = arith.divf %327, %328 : vector<8x32xf32>
    %330 = arith.mulf %324, %329 : vector<8x32xf32>
    %c0_141 = arith.constant 0 : index
    %c0_142 = arith.constant 0 : index
    %c0_143 = arith.constant 0 : index
    %331 = vector.load %arg36[%c0_141, %c0_142, %c0_143] : memref<1x32x16xbf16, #tpu.memory_space<vmem>>, vector<1x32x16xbf16>
    %332 = vector.shape_cast %331 : vector<1x32x16xbf16> to vector<32x16xbf16>
    %333 = arith.truncf %330 : vector<8x32xf32> to vector<8x32xbf16>
    %cst_144 = arith.constant dense<0.000000e+00> : vector<8x16xf32>
    %334 = tpu.matmul %333, %332, %cst_144 {dimension_numbers = #tpu.dot_dimension_numbers<[1], [0], [0], [1], [0, 0, 1, 1], [], []>} : vector<8x32xbf16>, vector<32x16xbf16>, vector<8x16xf32> -> vector<8x16xf32>
    %c0_145 = arith.constant 0 : index
    %c0_146 = arith.constant 0 : index
    %c0_147 = arith.constant 0 : index
    %335 = vector.load %arg37[%c0_145, %c0_146, %c0_147] : memref<1x1x16xf32, #tpu.memory_space<vmem>>, vector<1x1x16xf32>
    %336 = vector.shape_cast %335 : vector<1x1x16xf32> to vector<1x16xf32>
    %337 = vector.broadcast %336 : vector<1x16xf32> to vector<8x16xf32>
    %338 = arith.addf %334, %337 : vector<8x16xf32>
    %cst_148 = arith.constant 5.000000e-01 : f32
    %339 = vector.broadcast %cst_148 : f32 to vector<8x16xf32>
    %340 = arith.mulf %339, %338 : vector<8x16xf32>
    %341 = arith.addf %292, %340 : vector<8x16xf32>
    %c0_149 = arith.constant 0 : index
    %c0_150 = arith.constant 0 : index
    %c0_151 = arith.constant 0 : index
    %342 = vector.load %arg38[%c0_149, %c0_150, %c0_151] : memref<1x1x16xf32, #tpu.memory_space<vmem>>, vector<1x1x16xf32>
    %343 = vector.shape_cast %342 : vector<1x1x16xf32> to vector<1x16xf32>
    %c0_152 = arith.constant 0 : index
    %c0_153 = arith.constant 0 : index
    %c0_154 = arith.constant 0 : index
    %344 = vector.load %arg39[%c0_152, %c0_153, %c0_154] : memref<1x1x16xf32, #tpu.memory_space<vmem>>, vector<1x1x16xf32>
    %345 = vector.shape_cast %344 : vector<1x1x16xf32> to vector<1x16xf32>
    %cst_155 = arith.constant dense<0.000000e+00> : vector<8xf32>
    %346 = vector.multi_reduction <add>, %341, %cst_155 [1] : vector<8x16xf32> to vector<8xf32>
    %347 = vector.shape_cast %346 : vector<8xf32> to vector<8x1xf32>
    %cst_156 = arith.constant 1.600000e+01 : f32
    %348 = vector.broadcast %cst_156 : f32 to vector<8x1xf32>
    %349 = arith.divf %347, %348 : vector<8x1xf32>
    %350 = vector.broadcast %349 : vector<8x1xf32> to vector<8x16xf32>
    %351 = arith.subf %341, %350 : vector<8x16xf32>
    %352 = arith.mulf %351, %351 : vector<8x16xf32>
    %cst_157 = arith.constant dense<0.000000e+00> : vector<8xf32>
    %353 = vector.multi_reduction <add>, %352, %cst_157 [1] : vector<8x16xf32> to vector<8xf32>
    %354 = vector.shape_cast %353 : vector<8xf32> to vector<8x1xf32>
    %cst_158 = arith.constant 1.600000e+01 : f32
    %355 = vector.broadcast %cst_158 : f32 to vector<8x1xf32>
    %356 = arith.divf %354, %355 : vector<8x1xf32>
    %cst_159 = arith.constant 9.99999974E-6 : f32
    %357 = vector.broadcast %cst_159 : f32 to vector<8x1xf32>
    %358 = arith.addf %356, %357 : vector<8x1xf32>
    %359 = math.rsqrt %358 : vector<8x1xf32>
    %360 = vector.broadcast %359 : vector<8x1xf32> to vector<8x16xf32>
    %361 = arith.mulf %351, %360 : vector<8x16xf32>
    %362 = vector.broadcast %343 : vector<1x16xf32> to vector<8x16xf32>
    %363 = arith.mulf %361, %362 : vector<8x16xf32>
    %364 = vector.broadcast %345 : vector<1x16xf32> to vector<8x16xf32>
    %365 = arith.addf %363, %364 : vector<8x16xf32>
    %c0_160 = arith.constant 0 : index
    %c0_161 = arith.constant 0 : index
    %366 = vector.load %arg46[%c0_160, %c0_161] : memref<8x16xf32, #tpu.memory_space<vmem>>, vector<8x16xf32>
    tpu.vector_store %arg46[%c0_160, %c0_161], %365 {strides = array<i32>} : memref<8x16xf32, #tpu.memory_space<vmem>>, vector<8x16xf32>,
    %c1_i32 = arith.constant 1 : i32
    %367 = arith.cmpi eq, %arg1, %c1_i32 : i32
    %368 = arith.extui %367 : i1 to i32
    %c0_i32_162 = arith.constant 0 : i32
    %369 = arith.cmpi ne, %368, %c0_i32_162 : i32
    scf.if %369 {
      %cst_163 = arith.constant 0.000000e+00 : f32
      %370 = vector.broadcast %cst_163 : f32 to vector<1x16xf32>
      %371 = tpu.concatenate %370, %365, %370 in 0 : vector<1x16xf32>, vector<8x16xf32>, vector<1x16xf32> -> vector<10x16xf32>
      %372 = vector.extract_strided_slice %371 {offsets = [0, 0], sizes = [9, 16], strides = [1, 1]} : vector<10x16xf32> to vector<9x16xf32>
      %c0_164 = arith.constant 0 : index
      %c0_165 = arith.constant 0 : index
      %373 = vector.load %arg40[%c0_164, %c0_165] : memref<16x48xbf16, #tpu.memory_space<vmem>>, vector<16x48xbf16>
      %374 = arith.truncf %372 : vector<9x16xf32> to vector<9x16xbf16>
      %cst_166 = arith.constant dense<0.000000e+00> : vector<9x48xf32>
      %375 = tpu.matmul %374, %373, %cst_166 {dimension_numbers = #tpu.dot_dimension_numbers<[1], [0], [0], [1], [0, 0, 1, 1], [], []>} : vector<9x16xbf16>, vector<16x48xbf16>, vector<9x48xf32> -> vector<9x48xf32>
      %376 = vector.extract_strided_slice %371 {offsets = [1, 0], sizes = [9, 16], strides = [1, 1]} : vector<10x16xf32> to vector<9x16xf32>
      %c0_167 = arith.constant 0 : index
      %c0_168 = arith.constant 0 : index
      %377 = vector.load %arg41[%c0_167, %c0_168] : memref<16x48xbf16, #tpu.memory_space<vmem>>, vector<16x48xbf16>
      %378 = arith.truncf %376 : vector<9x16xf32> to vector<9x16xbf16>
      %cst_169 = arith.constant dense<0.000000e+00> : vector<9x48xf32>
      %379 = tpu.matmul %378, %377, %cst_169 {dimension_numbers = #tpu.dot_dimension_numbers<[1], [0], [0], [1], [0, 0, 1, 1], [], []>} : vector<9x16xbf16>, vector<16x48xbf16>, vector<9x48xf32> -> vector<9x48xf32>
      %380 = arith.addf %375, %379 : vector<9x48xf32>
      %c0_170 = arith.constant 0 : index
      %c0_171 = arith.constant 0 : index
      %381 = vector.load %arg42[%c0_170, %c0_171] : memref<1x48xf32, #tpu.memory_space<vmem>>, vector<1x48xf32>
      %382 = vector.broadcast %381 : vector<1x48xf32> to vector<9x48xf32>
      %383 = arith.addf %380, %382 : vector<9x48xf32>
      %c0_172 = arith.constant 0 : index
      %c0_173 = arith.constant 0 : index
      %384 = vector.load %arg43[%c0_172, %c0_173] : memref<1x48xf32, #tpu.memory_space<vmem>>, vector<1x48xf32>
      %c0_174 = arith.constant 0 : index
      %c0_175 = arith.constant 0 : index
      %385 = vector.load %arg44[%c0_174, %c0_175] : memref<1x48xf32, #tpu.memory_space<vmem>>, vector<1x48xf32>
      %cst_176 = arith.constant dense<0.000000e+00> : vector<9xf32>
      %386 = vector.multi_reduction <add>, %383, %cst_176 [1] : vector<9x48xf32> to vector<9xf32>
      %387 = vector.shape_cast %386 : vector<9xf32> to vector<9x1xf32>
      %cst_177 = arith.constant 4.800000e+01 : f32
      %388 = vector.broadcast %cst_177 : f32 to vector<9x1xf32>
      %389 = arith.divf %387, %388 : vector<9x1xf32>
      %390 = vector.broadcast %389 : vector<9x1xf32> to vector<9x48xf32>
      %391 = arith.subf %383, %390 : vector<9x48xf32>
      %392 = arith.mulf %391, %391 : vector<9x48xf32>
      %cst_178 = arith.constant dense<0.000000e+00> : vector<9xf32>
      %393 = vector.multi_reduction <add>, %392, %cst_178 [1] : vector<9x48xf32> to vector<9xf32>
      %394 = vector.shape_cast %393 : vector<9xf32> to vector<9x1xf32>
      %cst_179 = arith.constant 4.800000e+01 : f32
      %395 = vector.broadcast %cst_179 : f32 to vector<9x1xf32>
      %396 = arith.divf %394, %395 : vector<9x1xf32>
      %cst_180 = arith.constant 9.99999974E-6 : f32
      %397 = vector.broadcast %cst_180 : f32 to vector<9x1xf32>
      %398 = arith.addf %396, %397 : vector<9x1xf32>
      %399 = math.rsqrt %398 : vector<9x1xf32>
      %400 = vector.broadcast %399 : vector<9x1xf32> to vector<9x48xf32>
      %401 = arith.mulf %391, %400 : vector<9x48xf32>
      %402 = vector.broadcast %384 : vector<1x48xf32> to vector<9x48xf32>
      %403 = arith.mulf %401, %402 : vector<9x48xf32>
      %404 = vector.broadcast %385 : vector<1x48xf32> to vector<9x48xf32>
      %405 = arith.addf %403, %404 : vector<9x48xf32>
      %cst_181 = arith.constant 0.000000e+00 : f32
      %406 = vector.broadcast %cst_181 : f32 to vector<9x48xf32>
      %407 = arith.maximumf %405, %406 : vector<9x48xf32>
      %c0_182 = arith.constant 0 : index
      %c0_183 = arith.constant 0 : index
      %c0_184 = arith.constant 0 : index
      %408 = vector.load %arg45[%c0_182, %c0_183, %c0_184] : memref<1x9x48xf32, #tpu.memory_space<vmem>>, vector<1x9x48xf32>
      %409 = vector.shape_cast %408 : vector<1x9x48xf32> to vector<9x48xf32>
      %410 = vector.shape_cast %407 : vector<9x48xf32> to vector<1x9x48xf32>
      tpu.vector_store %arg45[%c0_182, %c0_183, %c0_184], %410 {strides = array<i32>} : memref<1x9x48xf32, #tpu.memory_space<vmem>>, vector<1x9x48xf32>,
    } else {
    }
    return
  }
  func.func @transform_0(%arg0: i32, %arg1: i32) -> (i32, i32, i32) {
    %c0_i32 = arith.constant 0 : i32
    %c0_i32_0 = arith.constant 0 : i32
    %c0_i32_1 = arith.constant 0 : i32
    return %arg0, %c0_i32, %c0_i32_0 : i32, i32, i32
  }
  func.func @transform_1(%arg0: i32, %arg1: i32) -> (i32, i32) {
    %c0_i32 = arith.constant 0 : i32
    %c0_i32_0 = arith.constant 0 : i32
    %c0_i32_1 = arith.constant 0 : i32
    return %c0_i32, %c0_i32_0 : i32, i32
  }
  func.func @transform_2(%arg0: i32, %arg1: i32) -> (i32, i32) {
    %c0_i32 = arith.constant 0 : i32
    %c0_i32_0 = arith.constant 0 : i32
    %c0_i32_1 = arith.constant 0 : i32
    return %c0_i32, %c0_i32_0 : i32, i32
  }
  func.func @transform_3(%arg0: i32, %arg1: i32) -> (i32, i32) {
    %c0_i32 = arith.constant 0 : i32
    %c0_i32_0 = arith.constant 0 : i32
    %c0_i32_1 = arith.constant 0 : i32
    return %c0_i32, %c0_i32_0 : i32, i32
  }
  func.func @transform_4(%arg0: i32, %arg1: i32) -> (i32, i32) {
    %c0_i32 = arith.constant 0 : i32
    %c0_i32_0 = arith.constant 0 : i32
    %c0_i32_1 = arith.constant 0 : i32
    return %c0_i32, %c0_i32_0 : i32, i32
  }
  func.func @transform_5(%arg0: i32, %arg1: i32) -> (i32, i32) {
    %c0_i32 = arith.constant 0 : i32
    %c0_i32_0 = arith.constant 0 : i32
    %c0_i32_1 = arith.constant 0 : i32
    return %c0_i32, %c0_i32_0 : i32, i32
  }
  func.func @transform_6(%arg0: i32, %arg1: i32) -> (i32, i32, i32) {
    %c0_i32 = arith.constant 0 : i32
    %c0_i32_0 = arith.constant 0 : i32
    %c0_i32_1 = arith.constant 0 : i32
    return %arg1, %c0_i32, %c0_i32_0 : i32, i32, i32
  }
  func.func @transform_7(%arg0: i32, %arg1: i32) -> (i32, i32, i32) {
    %c0_i32 = arith.constant 0 : i32
    %c0_i32_0 = arith.constant 0 : i32
    %c0_i32_1 = arith.constant 0 : i32
    return %arg1, %c0_i32, %c0_i32_0 : i32, i32, i32
  }
  func.func @transform_8(%arg0: i32, %arg1: i32) -> (i32, i32, i32) {
    %c0_i32 = arith.constant 0 : i32
    %c0_i32_0 = arith.constant 0 : i32
    %c0_i32_1 = arith.constant 0 : i32
    return %arg1, %c0_i32, %c0_i32_0 : i32, i32, i32
  }
  func.func @transform_9(%arg0: i32, %arg1: i32) -> (i32, i32, i32) {
    %c0_i32 = arith.constant 0 : i32
    %c0_i32_0 = arith.constant 0 : i32
    %c0_i32_1 = arith.constant 0 : i32
    return %arg1, %c0_i32, %c0_i32_0 : i32, i32, i32
  }
  func.func @transform_10(%arg0: i32, %arg1: i32) -> (i32, i32, i32) {
    %c0_i32 = arith.constant 0 : i32
    %c0_i32_0 = arith.constant 0 : i32
    %c0_i32_1 = arith.constant 0 : i32
    return %arg1, %c0_i32, %c0_i32_0 : i32, i32, i32
  }
  func.func @transform_11(%arg0: i32, %arg1: i32) -> (i32, i32, i32) {
    %c0_i32 = arith.constant 0 : i32
    %c0_i32_0 = arith.constant 0 : i32
    %c0_i32_1 = arith.constant 0 : i32
    return %arg1, %c0_i32, %c0_i32_0 : i32, i32, i32
  }
  func.func @transform_12(%arg0: i32, %arg1: i32) -> (i32, i32, i32) {
    %c0_i32 = arith.constant 0 : i32
    %c0_i32_0 = arith.constant 0 : i32
    %c0_i32_1 = arith.constant 0 : i32
    return %arg1, %c0_i32, %c0_i32_0 : i32, i32, i32
  }
  func.func @transform_13(%arg0: i32, %arg1: i32) -> (i32, i32, i32) {
    %c0_i32 = arith.constant 0 : i32
    %c0_i32_0 = arith.constant 0 : i32
    %c0_i32_1 = arith.constant 0 : i32
    return %arg1, %c0_i32, %c0_i32_0 : i32, i32, i32
  }
  func.func @transform_14(%arg0: i32, %arg1: i32) -> (i32, i32, i32) {
    %c0_i32 = arith.constant 0 : i32
    %c0_i32_0 = arith.constant 0 : i32
    %c0_i32_1 = arith.constant 0 : i32
    return %arg1, %c0_i32, %c0_i32_0 : i32, i32, i32
  }
  func.func @transform_15(%arg0: i32, %arg1: i32) -> (i32, i32, i32) {
    %c0_i32 = arith.constant 0 : i32
    %c0_i32_0 = arith.constant 0 : i32
    %c0_i32_1 = arith.constant 0 : i32
    return %arg1, %c0_i32, %c0_i32_0 : i32, i32, i32
  }
  func.func @transform_16(%arg0: i32, %arg1: i32) -> (i32, i32, i32) {
    %c0_i32 = arith.constant 0 : i32
    %c0_i32_0 = arith.constant 0 : i32
    %c0_i32_1 = arith.constant 0 : i32
    return %arg1, %c0_i32, %c0_i32_0 : i32, i32, i32
  }
  func.func @transform_17(%arg0: i32, %arg1: i32) -> (i32, i32, i32) {
    %c0_i32 = arith.constant 0 : i32
    %c0_i32_0 = arith.constant 0 : i32
    %c0_i32_1 = arith.constant 0 : i32
    return %arg1, %c0_i32, %c0_i32_0 : i32, i32, i32
  }
  func.func @transform_18(%arg0: i32, %arg1: i32) -> (i32, i32, i32) {
    %c0_i32 = arith.constant 0 : i32
    %c0_i32_0 = arith.constant 0 : i32
    %c0_i32_1 = arith.constant 0 : i32
    return %arg1, %c0_i32, %c0_i32_0 : i32, i32, i32
  }
  func.func @transform_19(%arg0: i32, %arg1: i32) -> (i32, i32, i32) {
    %c0_i32 = arith.constant 0 : i32
    %c0_i32_0 = arith.constant 0 : i32
    %c0_i32_1 = arith.constant 0 : i32
    return %arg1, %c0_i32, %c0_i32_0 : i32, i32, i32
  }
  func.func @transform_20(%arg0: i32, %arg1: i32) -> (i32, i32, i32) {
    %c0_i32 = arith.constant 0 : i32
    %c0_i32_0 = arith.constant 0 : i32
    %c0_i32_1 = arith.constant 0 : i32
    return %arg1, %c0_i32, %c0_i32_0 : i32, i32, i32
  }
  func.func @transform_21(%arg0: i32, %arg1: i32) -> (i32, i32, i32) {
    %c0_i32 = arith.constant 0 : i32
    %c0_i32_0 = arith.constant 0 : i32
    %c0_i32_1 = arith.constant 0 : i32
    return %arg1, %c0_i32, %c0_i32_0 : i32, i32, i32
  }
  func.func @transform_22(%arg0: i32, %arg1: i32) -> (i32, i32, i32) {
    %c0_i32 = arith.constant 0 : i32
    %c0_i32_0 = arith.constant 0 : i32
    %c0_i32_1 = arith.constant 0 : i32
    return %arg1, %c0_i32, %c0_i32_0 : i32, i32, i32
  }
  func.func @transform_23(%arg0: i32, %arg1: i32) -> (i32, i32, i32) {
    %c0_i32 = arith.constant 0 : i32
    %c0_i32_0 = arith.constant 0 : i32
    %c0_i32_1 = arith.constant 0 : i32
    return %arg1, %c0_i32, %c0_i32_0 : i32, i32, i32
  }
  func.func @transform_24(%arg0: i32, %arg1: i32) -> (i32, i32, i32) {
    %c0_i32 = arith.constant 0 : i32
    %c0_i32_0 = arith.constant 0 : i32
    %c0_i32_1 = arith.constant 0 : i32
    return %arg1, %c0_i32, %c0_i32_0 : i32, i32, i32
  }
  func.func @transform_25(%arg0: i32, %arg1: i32) -> (i32, i32, i32) {
    %c0_i32 = arith.constant 0 : i32
    %c0_i32_0 = arith.constant 0 : i32
    %c0_i32_1 = arith.constant 0 : i32
    return %arg1, %c0_i32, %c0_i32_0 : i32, i32, i32
  }
  func.func @transform_26(%arg0: i32, %arg1: i32) -> (i32, i32, i32) {
    %c0_i32 = arith.constant 0 : i32
    %c0_i32_0 = arith.constant 0 : i32
    %c0_i32_1 = arith.constant 0 : i32
    return %arg1, %c0_i32, %c0_i32_0 : i32, i32, i32
  }
  func.func @transform_27(%arg0: i32, %arg1: i32) -> (i32, i32, i32) {
    %c0_i32 = arith.constant 0 : i32
    %c0_i32_0 = arith.constant 0 : i32
    %c0_i32_1 = arith.constant 0 : i32
    return %arg1, %c0_i32, %c0_i32_0 : i32, i32, i32
  }
  func.func @transform_28(%arg0: i32, %arg1: i32) -> (i32, i32, i32) {
    %c0_i32 = arith.constant 0 : i32
    %c0_i32_0 = arith.constant 0 : i32
    %c0_i32_1 = arith.constant 0 : i32
    return %arg1, %c0_i32, %c0_i32_0 : i32, i32, i32
  }
  func.func @transform_29(%arg0: i32, %arg1: i32) -> (i32, i32, i32) {
    %c0_i32 = arith.constant 0 : i32
    %c0_i32_0 = arith.constant 0 : i32
    %c0_i32_1 = arith.constant 0 : i32
    return %arg1, %c0_i32, %c0_i32_0 : i32, i32, i32
  }
  func.func @transform_30(%arg0: i32, %arg1: i32) -> (i32, i32, i32) {
    %c0_i32 = arith.constant 0 : i32
    %c0_i32_0 = arith.constant 0 : i32
    %c0_i32_1 = arith.constant 0 : i32
    return %arg1, %c0_i32, %c0_i32_0 : i32, i32, i32
  }
  func.func @transform_31(%arg0: i32, %arg1: i32) -> (i32, i32, i32) {
    %c0_i32 = arith.constant 0 : i32
    %c0_i32_0 = arith.constant 0 : i32
    %c0_i32_1 = arith.constant 0 : i32
    return %arg1, %c0_i32, %c0_i32_0 : i32, i32, i32
  }
  func.func @transform_32(%arg0: i32, %arg1: i32) -> (i32, i32, i32) {
    %c0_i32 = arith.constant 0 : i32
    %c0_i32_0 = arith.constant 0 : i32
    %c0_i32_1 = arith.constant 0 : i32
    return %arg1, %c0_i32, %c0_i32_0 : i32, i32, i32
  }
  func.func @transform_33(%arg0: i32, %arg1: i32) -> (i32, i32, i32) {
    %c0_i32 = arith.constant 0 : i32
    %c0_i32_0 = arith.constant 0 : i32
    %c0_i32_1 = arith.constant 0 : i32
    return %arg1, %c0_i32, %c0_i32_0 : i32, i32, i32
  }
  func.func @transform_34(%arg0: i32, %arg1: i32) -> (i32, i32, i32) {
    %c0_i32 = arith.constant 0 : i32
    %c0_i32_0 = arith.constant 0 : i32
    %c0_i32_1 = arith.constant 0 : i32
    return %arg1, %c0_i32, %c0_i32_0 : i32, i32, i32
  }
  func.func @transform_35(%arg0: i32, %arg1: i32) -> (i32, i32, i32) {
    %c0_i32 = arith.constant 0 : i32
    %c0_i32_0 = arith.constant 0 : i32
    %c0_i32_1 = arith.constant 0 : i32
    return %arg1, %c0_i32, %c0_i32_0 : i32, i32, i32
  }
  func.func @transform_36(%arg0: i32, %arg1: i32) -> (i32, i32, i32) {
    %c0_i32 = arith.constant 0 : i32
    %c0_i32_0 = arith.constant 0 : i32
    %c0_i32_1 = arith.constant 0 : i32
    return %arg1, %c0_i32, %c0_i32_0 : i32, i32, i32
  }
  func.func @transform_37(%arg0: i32, %arg1: i32) -> (i32, i32, i32) {
    %c0_i32 = arith.constant 0 : i32
    %c0_i32_0 = arith.constant 0 : i32
    %c0_i32_1 = arith.constant 0 : i32
    return %arg1, %c0_i32, %c0_i32_0 : i32, i32, i32
  }
  func.func @transform_38(%arg0: i32, %arg1: i32) -> (i32, i32) {
    %c0_i32 = arith.constant 0 : i32
    %c0_i32_0 = arith.constant 0 : i32
    %c0_i32_1 = arith.constant 0 : i32
    return %c0_i32, %c0_i32_0 : i32, i32
  }
  func.func @transform_39(%arg0: i32, %arg1: i32) -> (i32, i32) {
    %c0_i32 = arith.constant 0 : i32
    %c0_i32_0 = arith.constant 0 : i32
    %c0_i32_1 = arith.constant 0 : i32
    return %c0_i32, %c0_i32_0 : i32, i32
  }
  func.func @transform_40(%arg0: i32, %arg1: i32) -> (i32, i32) {
    %c0_i32 = arith.constant 0 : i32
    %c0_i32_0 = arith.constant 0 : i32
    %c0_i32_1 = arith.constant 0 : i32
    return %c0_i32, %c0_i32_0 : i32, i32
  }
  func.func @transform_41(%arg0: i32, %arg1: i32) -> (i32, i32) {
    %c0_i32 = arith.constant 0 : i32
    %c0_i32_0 = arith.constant 0 : i32
    %c0_i32_1 = arith.constant 0 : i32
    return %c0_i32, %c0_i32_0 : i32, i32
  }
  func.func @transform_42(%arg0: i32, %arg1: i32) -> (i32, i32) {
    %c0_i32 = arith.constant 0 : i32
    %c0_i32_0 = arith.constant 0 : i32
    %c0_i32_1 = arith.constant 0 : i32
    return %c0_i32, %c0_i32_0 : i32, i32
  }
  func.func @transform_43(%arg0: i32, %arg1: i32) -> (i32, i32, i32) {
    %c0_i32 = arith.constant 0 : i32
    %c0_i32_0 = arith.constant 0 : i32
    %c0_i32_1 = arith.constant 0 : i32
    return %arg0, %c0_i32, %c0_i32_0 : i32, i32, i32
  }
}

</mosaic_0001>

<bundles_post_ra>
// kernel: _lambda_.1
= control target key start
LH: loop header
LB: loop body
LE: loop exit
PB: predicated region body
PF: predicated region fallthrough
CT: control target
= control target key end

     0   :  { %s5042_s6 = smov 1   ;;  %s5043_s10 = smov 2   ;;  %s6011_s0 = inlined_call_operand.smem [shape: u32[44], index: -1, kind: input, shape index: {}] }
   0x1   :  { %s5123_s5 = sld [smem:[%s6011_s0]]   ;;  %s5044_s14 = smov 3  }
   0x2   :  { %s5128_s9 = sld [smem:[%s6011_s0 + %s5042_s6]]   ;;  %s5045_s18 = smov 4  }
   0x3   :  { %s5133_s13 = sld [smem:[%s6011_s0 + %s5043_s10]]   ;;  %s5046_s22 = smov 5  }
   0x4   :  { %s5138_s17 = sld [smem:[%s6011_s0 + %s5044_s14]]   ;;  %s5047_s26 = smov 6  }
   0x5   :  { %s5143_s21 = sld [smem:[%s6011_s0 + %s5045_s18]]   ;;  %s5048_s30 = smov 7  }
   0x6   :  { %s5148_s25 = sld [smem:[%s6011_s0 + %s5046_s22]]   ;;  %s5049_s4 = smov 8  }
   0x7   :  { %6038 = sst [smem:[#allocation25_spill]] %s5123_s5  ;;  %s5050_s10 = smov 9  }
   0x8   :  { %6039 = sst [smem:[#allocation26_spill]] %s5128_s9  ;;  %s5051_s15 = smov 10  }
   0x9   :  { %6040 = sst [smem:[#allocation27_spill]] %s5133_s13  ;;  %s5052_s20 = smov 11  }
   0xa   :  { %6041 = sst [smem:[#allocation28_spill]] %s5138_s17  ;;  %s5054_s1 = smov 13  }
   0xb   :  { %6042 = sst [smem:[#allocation29_spill]] %s5143_s21  ;;  %s5055_s7 = smov 14  }
   0xc   :  { %6043 = sst [smem:[#allocation30_spill]] %s5148_s25  ;;  %s5057_s22 = smov 16  }
   0xd   :  { %s5153_s29 = sld [smem:[%s6011_s0 + %s5047_s26]]   ;;  %s5053_s26 = smov 12  }
   0xe   :  { %s5158_s3 = sld [smem:[%s6011_s0 + %s5048_s30]]   ;;  %s5058_s28 = smov 17  }
   0xf   :  { %s5163_s8 = sld [smem:[%s6011_s0 + %s5049_s4]]  }
  0x10   :  { %s5168_s14 = sld [smem:[%s6011_s0 + %s5050_s10]]  }
  0x11   :  { %s5173_s19 = sld [smem:[%s6011_s0 + %s5051_s15]]   ;;  %s5056_s15 = smov 15  }
  0x12   :  { %s5178_s24 = sld [smem:[%s6011_s0 + %s5052_s20]]  }
  0x13   :  { %6044 = sst [smem:[#allocation31_spill]] %s5153_s29 }
  0x14   :  { %6045 = sst [smem:[#allocation32_spill]] %s5158_s3 }
  0x15   :  { %6046 = sst [smem:[#allocation33_spill]] %s5163_s8 }
  0x16   :  { %6047 = sst [smem:[#allocation34_spill]] %s5168_s14 }
  0x17   :  { %6048 = sst [smem:[#allocation35_spill]] %s5173_s19 }
  0x18   :  { %6049 = sst [smem:[#allocation36_spill]] %s5178_s24 }
  0x19   :  { %s5183_s30 = sld [smem:[%s6011_s0 + %s5053_s26]]  }
  0x1a   :  { %s5188_s6 = sld [smem:[%s6011_s0 + %s5054_s1]]  }
  0x1b   :  { %s5193_s12 = sld [smem:[%s6011_s0 + %s5055_s7]]   ;;  %s5059_s7 = smov 18  }
  0x1c   :  { %s5198_s20 = sld [smem:[%s6011_s0 + %s5056_s15]]   ;;  %s5060_s15 = smov 19  }
  0x1d   :  { %s5203_s27 = sld [smem:[%s6011_s0 + %s5057_s22]]   ;;  %s5061_s22 = smov 20  }
  0x1e   :  { %s5208_s4 = sld [smem:[%s6011_s0 + %s5058_s28]]   ;;  %s5062_s28 = smov 21  }
  0x1f   :  { %6050 = sst [smem:[#allocation37_spill]] %s5183_s30 }
  0x20   :  { %6051 = sst [smem:[#allocation38_spill]] %s5188_s6 }
  0x21   :  { %6052 = sst [smem:[#allocation39_spill]] %s5193_s12 }
  0x22   :  { %6053 = sst [smem:[#allocation40_spill]] %s5198_s20 }
  0x23   :  { %6054 = sst [smem:[#allocation41_spill]] %s5203_s27 }
  0x24   :  { %6055 = sst [smem:[#allocation42_spill]] %s5208_s4 }
  0x25   :  { %s5213_s9 = sld [smem:[%s6011_s0 + %s5059_s7]]   ;;  %s5063_s7 = smov 22  }
  0x26   :  { %s5218_s25 = sld [smem:[%s6011_s0 + %s5060_s15]]   ;;  %s5064_s15 = smov 23  }
  0x27   :  { %s5223_s21 = sld [smem:[%s6011_s0 + %s5061_s22]]   ;;  %s5065_s22 = smov 24  }
  0x28   :  { %s5228_s17 = sld [smem:[%s6011_s0 + %s5062_s28]]   ;;  %s5066_s28 = smov 25  }
  0x29   :  { %s5233_s13 = sld [smem:[%s6011_s0 + %s5063_s7]]   ;;  %s5067_s7 = smov 26  }
  0x2a   :  { %s5238_s27 = sld [smem:[%s6011_s0 + %s5064_s15]]   ;;  %s5068_s15 = smov 27  }
  0x2b   :  { %6056 = sst [smem:[#allocation43_spill]] %s5213_s9 }
  0x2c   :  { %6057 = sst [smem:[#allocation44_spill]] %s5218_s25 }
  0x2d   :  { %6058 = sst [smem:[#allocation45_spill]] %s5223_s21 }
  0x2e   :  { %6059 = sst [smem:[#allocation46_spill]] %s5228_s17 }
  0x2f   :  { %6060 = sst [smem:[#allocation47_spill]] %s5233_s13 }
  0x30   :  { %6061 = sst [smem:[#allocation48_spill]] %s5238_s27 }
  0x31   :  { %s5243_s21 = sld [smem:[%s6011_s0 + %s5065_s22]]   ;;  %s5069_s22 = smov 28  }
  0x32   :  { %s5248_s17 = sld [smem:[%s6011_s0 + %s5066_s28]]   ;;  %s5070_s28 = smov 29  }
  0x33   :  { %s5253_s13 = sld [smem:[%s6011_s0 + %s5067_s7]]   ;;  %s5071_s7 = smov 30  }
  0x34   :  { %s5258_s27 = sld [smem:[%s6011_s0 + %s5068_s15]]   ;;  %s5072_s15 = smov 31  }
  0x35   :  { %s5268_s12 = sld [smem:[%s6011_s0 + %s5070_s28]]   ;;  %s5074_s28 = smov 33  }
  0x36   :  { %s5273_s6 = sld [smem:[%s6011_s0 + %s5071_s7]]   ;;  %s5075_s7 = smov 34  }
  0x37   :  { %6062 = sst [smem:[#allocation49_spill]] %s5243_s21 }
  0x38   :  { %6063 = sst [smem:[#allocation50_spill]] %s5248_s17 }
  0x39   :  { %6064 = sst [smem:[#allocation51_spill]] %s5253_s13 }
  0x3a   :  { %6065 = sst [smem:[#allocation52_spill]] %s5258_s27 }
  0x3b   :  { %s5263_s21 = sld [smem:[%s6011_s0 + %s5069_s22]]   ;;  %s5073_s22 = smov 32  }
  0x3c   :  { %6067 = sst [smem:[#allocation54_spill]] %s5268_s12 }
  0x3d   :  { %6068 = sst [smem:[#allocation55_spill]] %s5273_s6 }
  0x3e   :  { %s5278_s30 = sld [smem:[%s6011_s0 + %s5072_s15]]   ;;  %s5076_s15 = smov 35  }
  0x3f   :  { %s5288_s12 = sld [smem:[%s6011_s0 + %s5074_s28]]   ;;  %s5078_s28 = smov 37  }
  0x40   :  { %s5293_s6 = sld [smem:[%s6011_s0 + %s5075_s7]]   ;;  %s5079_s7 = smov 38  }
  0x41   :  { %6066 = sst [smem:[#allocation53_spill]] %s5263_s21 }
  0x42   :  { %s5283_s21 = sld [smem:[%s6011_s0 + %s5073_s22]]   ;;  %s5077_s22 = smov 36  }
  0x44   :  { %6069 = sst [smem:[#allocation56_spill]] %s5278_s30 }
  0x45   :  { %6071 = sst [smem:[#allocation58_spill]] %s5288_s12 }
  0x46   :  { %6072 = sst [smem:[#allocation59_spill]] %s5293_s6 }
  0x47   :  { %s5298_s30 = sld [smem:[%s6011_s0 + %s5076_s15]]   ;;  %s5080_s15 = smov 39  }
  0x48   :  { %6070 = sst [smem:[#allocation57_spill]] %s5283_s21 }
  0x49   :  { %s5303_s21 = sld [smem:[%s6011_s0 + %s5077_s22]]   ;;  %s5081_s22 = smov 40  }
  0x4a   :  { %s5308_s12 = sld [smem:[%s6011_s0 + %s5078_s28]]   ;;  %s5082_s28 = smov 41  }
  0x4b   :  { %s5313_s6 = sld [smem:[%s6011_s0 + %s5079_s7]]   ;;  %s5083_s7 = smov 42  }
  0x4d   :  { %6073 = sst [smem:[#allocation60_spill]] %s5298_s30 }
  0x4e   :  { %s5318_s30 = sld [smem:[%s6011_s0 + %s5080_s15]]   ;;  %s5084_s15 = smov 43  }
  0x4f   :  { %6074 = sst [smem:[#allocation61_spill]] %s5303_s21 }
  0x50   :  { %6075 = sst [smem:[#allocation62_spill]] %s5308_s12 }
  0x51   :  { %6076 = sst [smem:[#allocation63_spill]] %s5313_s6 }
  0x52   :  { %s5323_s21 = sld [smem:[%s6011_s0 + %s5081_s22]]  }
  0x53   :  { %s5328_s12 = sld [smem:[%s6011_s0 + %s5082_s28]]  }
  0x54   :  { %6077 = sst [smem:[#allocation64_spill]] %s5318_s30 }
  0x55   :  { %s5333_s6 = sld [smem:[%s6011_s0 + %s5083_s7]]  }
  0x56   :  { %s5338_s30 = sld [smem:[%s6011_s0 + %s5084_s15]]  }
  0x58   :  { %6078 = sst [smem:[#allocation65_spill]] %s5323_s21 }
  0x59   :  { %6079 = sst [smem:[#allocation66_spill]] %s5328_s12 }
  0x5b   :  { %6080 = sst [smem:[#allocation67_spill]] %s5333_s6 }
  0x5c   :  { %6081 = sst [smem:[#allocation68_spill]] %s5338_s30 }
  0x5d   :  { %92 = vsyncpa [#allocation4], 0 }
  0x5e   :  { %94 = vsyncpa [#allocation4 + $0x1], 0 }
  0x5f   :  { %95 = vsyncpa [#allocation6], 0 }
  0x60   :  { %97 = vsyncpa [#allocation6 + $0x1], 0 }
  0x61   :  { %98 = vsyncpa [#allocation9], 0 }
  0x62   :  { %100 = vsyncpa [#allocation9 + $0x1], 0 }
  0x63   :  { %101 = vsyncpa [#allocation12], 0 }
  0x64   :  { %103 = vsyncpa [#allocation12 + $0x1], 0 }
  0x65   :  { %104 = vsyncpa [#allocation15], 0 }
  0x66   :  { %106 = vsyncpa [#allocation15 + $0x1], 0 }
  0x67   :  { %107 = vsyncpa [#allocation18], 0 }
  0x68   :  { %109 = vsyncpa [#allocation18 + $0x1], 0  ;;  %s5340_s22 = smov 0   ;;  %s5342_s23 = smov 0  }
  0x69   :  { %s5344_s26 = smov 0   ;;  %s5346_s0 = smov 0  }
  0x6a   :  { %s5348_s28 = smov 0   ;;  %s5350_s1 = smov 0  }
  0x6b   :  { %s5352_s2 = smov 0   ;;  %s5354_s7 = smov 0  }
  0x6c LB: > { %s6082_s27 = sld [smem:[#allocation52_spill]]  ;;  %s6085_s17 = sld [smem:[#allocation50_spill]]  ;;  %s5016_s23 = sphi %s5342_s23, %s6210_s23   ;;  %s5012_s22 = sphi %s5340_s22, %s6209_s22   ;;  %s5040_s7 = sphi %s5354_s7, %s115_s7   ;;  %s5036_s2 = sphi %s5352_s2, %s6215_s2   ;;  %s5032_s1 = sphi %s5350_s1, %s6214_s1   ;;  %s5028_s28 = sphi %s5348_s28, %s6213_s28   ;;  %s5024_s0 = sphi %s5346_s0, %s6212_s0   ;;  %s5020_s26 = sphi %s5344_s26, %s6211_s26  }
  0x6d   : > { %s6083_s25 = sld [smem:[#allocation44_spill]]  ;;  %s6086_s13 = sld [smem:[#allocation51_spill]] }
  0x6e   : > { %s6084_s24 = sld [smem:[#allocation36_spill]]  ;;  %s6087_s9 = sld [smem:[#allocation43_spill]] }
  0x6f   : > { %s6088_s4 = sld [smem:[#allocation42_spill]]  ;;  %s6089_s3 = sld [smem:[#allocation32_spill]] }
  0x70   : > { %s6090_s20 = sld [smem:[#allocation40_spill]]  ;;  %s6091_s14 = sld [smem:[#allocation34_spill]] }
  0x71   : > { %6092 = sst [smem:[#allocation69_spill]] %s5016_s23  ;;  %s124_s11 = sadd.s32 1, %s5032_s1 }
  0x72   : > { %6093 = sst [smem:[#allocation70_spill]] %s5020_s26  ;;  %p125_p0 = scmp.ge.s32.totalorder %s124_s11, 2 }
  0x73   : > { %6094 = sst [smem:[#allocation71_spill]] %s5024_s0  ;;  %s127_s15 = sadd.s32 1, %s5036_s2 }
  0x74   : > { %6095 = sst [smem:[#allocation72_spill]] %s5032_s1  ;;  %s291_s16 = sadd.s32 1, %s5020_s26 }
  0x75   : > { %6096 = sst [smem:[#allocation73_spill]] %s5036_s2  ;;  %p298_p1 = scmp.ne.s32.totalorder %s5020_s26, %s5016_s23 }
  0x76   : > { %6097 = sst [smem:[#allocation74_spill]] %s5040_s7  ;;  %s6217_s11 = smov (%p125_p0, %s124_s11), 0 }
  0x77   : > { %6098 = sst [smem:[#allocation75_spill]] %s6217_s11  ;;  %s6219_s15 = smov (!%p125_p0, %s127_s15), %s5036_s2 }
  0x78   : > { %s288_s18 = ssub.s32 %s5032_s1, %s6217_s11  ;;  %p299_p2 = scmp.eq.s32.totalorder %s5040_s7, 0 }
  0x79   : > { %p129_p3 = scmp.ge.s32.totalorder %s6219_s15, 2  ;;  %p289_p4 = scmp.eq.s32.totalorder %s288_s18, 0 }
  0x7a   : > { %p300_p5 = por %p299_p2, %p298_p1  ;;  %p304_p6 = scmp.ne.s32.totalorder %s5016_s23, %s5012_s22 }
  0x7b   : > { %s6221_s15 = smov (%p129_p3, %s6219_s15), 0  ;;  %s6101_s6 = sadd.s32 4294967295, %s5040_s7  }
  0x7c   : > { %6099 = sst [smem:[#allocation76_spill]] %s6221_s15  ;;  %p305_p7 = scmp.eq.s32.totalorder %s6101_s6, 0 }
  0x7d   : > { %s5394_s10 = scalar_select %p289_p4, %s5020_s26, %s291_s16  }
  0x7e   : > { %p4463_p8 = scmp.lt.s32.totalorder %s5040_s7, 4  ;;  %s5400_s12 = sand.u32 1, %s5020_s26  }
  0x7f   : > { %6100 = sst [smem:[#allocation77_spill]] %s5394_s10  ;;  %p5402_p9 = por %p305_p7, %p304_p6 }
  0x80   : > { %s5407_s11 = sshll.u32 %s5032_s1, 4  ;;  %p5409_p10 = pnand %p4463_p8, %p300_p5 }
  0x81   : > { %s6102_s2 = scalar_select %p5402_p9, 1, 0 }
  0x82   : > { %s6103_s22 = scalar_select %p5409_p10, 1, 0 }
  0x83   : > { %s5414_s16 = sand.u32 1, %s5040_s7   ;;  %s5418_s6 = scalar_lea.hbm %s6091_s14, %s5407_s11 }
  0x84   : > { %s1310_s18 = scalar_lea.vmem [#allocation5], %s5400_s12  ;;  %s4654_s10 = scalar_lea.hbm %s5418_s6, 16 }
  0x85   : > { %s1317_s15 = sshll.u32 %s1310_s18, 4  ;;  %p4655_p13 = scmp.ne.s32.totalorder %s5418_s6, %s4654_s10  ;;  %s5422_s15 = int_to_ptr.vmem [resolvable:$true] %s1317_s15 }
  0x86   : > { %p5430_p0 = pneg %p5409_p10  ;;  %s4659_s21 = scalar_lea.hbm %s6091_s14, 32 }
  0x87   : > { %p4660_p3 = scmp.lt.u32.totalorder %s5418_s6, %s6091_s14  ;;  %p4661_p4 = scmp.lt.u32.totalorder %s4659_s21, %s4654_s10 }
  0x88   : > { %p4657_p1 = pnand %p5430_p0, %p4655_p13  ;;  %p4663_p6 = scmp.lt.u32.totalorder %s4654_s10, %s5418_s6 }
  0x89   : > { %p4662_p5 = por %p4661_p4, %p4660_p3 }
  0x8a   : > { %p4658_p2 = pneg %p4657_p1 }
  0x8b   : > { %p4664_p7 = por %p4663_p6, %p4662_p5 }
  0x8d   : > { %p4665_p8 = pnand %p4664_p7, %p4658_p2 }
  0x8f   : > { %4668 = shalt.err (!%p4665_p8)
}
  0x90   : > { %s4669_s18 = scalar_lea.vmem %s5422_s15, 16  ;;  %s5085_s1 = smov [#allocation5]  }
  0x91   : > { %p4670_p11 = scmp.ne.s32.totalorder %s5422_s15, %s4669_s18  ;;  %s4674_s30 = sshll.u32 %s5085_s1, 4  ;;  %s4675_s30 = int_to_ptr.vmem [resolvable:$false] %s4674_s30 }
  0x92   : > { %s4676_s19 = scalar_lea.vmem %s4675_s30, 32  ;;  %p4677_p13 = scmp.lt.s32.totalorder %s5422_s15, %s4675_s30 }
  0x93   : > { %p4672_p12 = pnand %p4670_p11, %p5430_p0  ;;  %p4678_p1 = scmp.lt.s32.totalorder %s4676_s19, %s4669_s18 }
  0x95   : > { %p4673_p9 = pneg %p4672_p12  ;;  %p4679_p3 = por %p4678_p1, %p4677_p13 }
  0x97   : > { %p4680_p4 = pnand %p4679_p3, %p4673_p9 }
  0x99   : > { %4683 = shalt.err (!%p4680_p4)
}
  0x9a   : > { %s6105_s21 = scalar_lea.sflag [#allocation6], %s5414_s16  ;;  %p6106_p11 = scmp.lt.s32.totalorder %s5040_s7, 5 }
  0x9b   : > { %4438 = dma.hbm_to_vmem [thread:$0]  (!%p5409_p10), %s5418_s6, 16, %s5422_s15, %s6105_s21  }
  0x9c   : > { %p6107_p12 = scmp.ge.s32.totalorder %s5040_s7, 1  ;;  %s5461_s30 = scalar_lea.hbm %s6090_s20, %s5407_s11 }
  0x9d   : > { %s1372_s1 = scalar_lea.vmem [#allocation8], %s5400_s12  ;;  %s4684_s14 = scalar_lea.hbm %s5461_s30, 16 }
  0x9e   : > { %p5455_p9 = pnand %p6107_p12, %p6106_p11  ;;  %s1379_s10 = sshll.u32 %s1372_s1, 4  ;;  %s1380_s10 = int_to_ptr.vmem [resolvable:$true] %s1379_s10 }
  0x9f   : > { %p4685_p2 = scmp.ne.s32.totalorder %s5461_s30, %s4684_s14  ;;  %s4689_s15 = scalar_lea.hbm %s6090_s20, 32 }
  0xa0   : > { %s6108_s19 = scalar_select %p5455_p9, 1, 0 }
  0xa1   : > { %p4687_p5 = pnand %p4685_p2, %p5430_p0  ;;  %p4690_p7 = scmp.lt.u32.totalorder %s5461_s30, %s6090_s20 }
  0xa2   : > { %p4691_p8 = scmp.lt.u32.totalorder %s4689_s15, %s4684_s14  ;;  %p4693_p1 = scmp.lt.u32.totalorder %s4684_s14, %s5461_s30 }
  0xa3   : > { %p4688_p6 = pneg %p4687_p5 }
  0xa4   : > { %p4692_p13 = por %p4691_p8, %p4690_p7 }
  0xa6   : > { %p4694_p3 = por %p4693_p1, %p4692_p13 }
  0xa8   : > { %p4695_p4 = pnand %p4694_p3, %p4688_p6 }
  0xaa   : > { %4698 = shalt.err (!%p4695_p4)
}
  0xab   : > { %s4699_s6 = scalar_lea.vmem %s1380_s10, 16  ;;  %s5086_s21 = smov [#allocation8]  }
  0xac   : > { %p4700_p11 = scmp.ne.s32.totalorder %s1380_s10, %s4699_s6  ;;  %s4704_s1 = sshll.u32 %s5086_s21, 4  ;;  %s4705_s1 = int_to_ptr.vmem [resolvable:$false] %s4704_s1 }
  0xad   : > { %s4706_s18 = scalar_lea.vmem %s4705_s1, 32  ;;  %p4707_p2 = scmp.lt.s32.totalorder %s1380_s10, %s4705_s1 }
  0xae   : > { %p4702_p12 = pnand %p4700_p11, %p5430_p0  ;;  %p4708_p5 = scmp.lt.s32.totalorder %s4706_s18, %s4699_s6 }
  0xb0   : > { %p4703_p9 = pneg %p4702_p12  ;;  %p4709_p10 = por %p4708_p5, %p4707_p2 }
  0xb2   : > { %p4710_p7 = pnand %p4709_p10, %p4703_p9 }
  0xb4   : > { %4713 = shalt.err (!%p4710_p7)
}
  0xb5   : > { %p6109_p8 = scmp.ne.s32.totalorder %s6103_s22, 0  ;;  %s6110_s14 = scalar_lea.sflag [#allocation9], %s5414_s16 }
  0xb6   : > { %s5482_s15 = scalar_lea.hbm %s6087_s9, %s5407_s11  ;;  %s1414_s18 = scalar_lea.vmem [#allocation11], %s5400_s12 }
  0xb7   : > { %4444 = dma.hbm_to_vmem [thread:$0]  (!%p6109_p8), %s5461_s30, 16, %s1380_s10, %s6110_s14  }
  0xb8   : > { %s1421_s6 = sshll.u32 %s1414_s18, 4  ;;  %s6022_s21 = scalar_lea.sflag [#allocation12], %s5414_s16  ;;  %s1422_s6 = int_to_ptr.vmem [resolvable:$true] %s1421_s6 }
  0xb9   : > { %s4714_s1 = scalar_lea.hbm %s5482_s15, 16  ;;  %s4719_s20 = scalar_lea.hbm %s6087_s9, 32 }
  0xba   : > { %p4715_p10 = scmp.ne.s32.totalorder %s5482_s15, %s4714_s1  ;;  %p4720_p13 = scmp.lt.u32.totalorder %s5482_s15, %s6087_s9 }
  0xbb   : > { %p4721_p1 = scmp.lt.u32.totalorder %s4719_s20, %s4714_s1  ;;  %p4723_p4 = scmp.lt.u32.totalorder %s4714_s1, %s5482_s15 }
  0xbc   : > { %p4717_p9 = pnand %p4715_p10, %p5430_p0 }
  0xbd   : > { %p4722_p3 = por %p4721_p1, %p4720_p13 }
  0xbe   : > { %p4718_p6 = pneg %p4717_p9 }
  0xbf   : > { %p4724_p11 = por %p4723_p4, %p4722_p3 }
  0xc1   : > { %p4725_p12 = pnand %p4724_p11, %p4718_p6 }
  0xc3   : > { %4728 = shalt.err (!%p4725_p12)
}
  0xc4   : > { %s4729_s30 = scalar_lea.vmem %s1422_s6, 16  ;;  %s5087_s10 = smov [#allocation11]  }
  0xc5   : > { %p4730_p2 = scmp.ne.s32.totalorder %s1422_s6, %s4729_s30  ;;  %s4734_s14 = sshll.u32 %s5087_s10, 4  ;;  %s4735_s14 = int_to_ptr.vmem [resolvable:$false] %s4734_s14 }
  0xc6   : > { %s4736_s18 = scalar_lea.vmem %s4735_s14, 32  ;;  %p4737_p10 = scmp.lt.s32.totalorder %s1422_s6, %s4735_s14 }
  0xc7   : > { %p4732_p5 = pnand %p4730_p2, %p5430_p0  ;;  %p4738_p9 = scmp.lt.s32.totalorder %s4736_s18, %s4729_s30 }
  0xc9   : > { %p4733_p7 = pneg %p4732_p5  ;;  %p4739_p8 = por %p4738_p9, %p4737_p10 }
  0xcb   : > { %p4740_p1 = pnand %p4739_p8, %p4733_p7 }
  0xcd   : > { %4743 = shalt.err (!%p4740_p1)
}
  0xce   : > { %p6111_p13 = scmp.ne.s32.totalorder %s6103_s22, 0  ;;  %s5503_s20 = scalar_lea.hbm %s6085_s17, %s5407_s11 }
  0xcf   : > { %s1483_s1 = scalar_lea.vmem [#allocation14], %s5400_s12  ;;  %s6023_s10 = scalar_lea.sflag [#allocation15], %s5414_s16 }
  0xd0   : > { %4450 = dma.hbm_to_vmem [thread:$0]  (!%p6111_p13), %s5482_s15, 16, %s1422_s6, %s6022_s21  }
  0xd1   : > { %s1490_s30 = sshll.u32 %s1483_s1, 4  ;;  %s4744_s14 = scalar_lea.hbm %s5503_s20, 16  ;;  %s1491_s30 = int_to_ptr.vmem [resolvable:$true] %s1490_s30 }
  0xd2   : > { %p4745_p8 = scmp.ne.s32.totalorder %s5503_s20, %s4744_s14  ;;  %s4749_s18 = scalar_lea.hbm %s6085_s17, 32 }
  0xd3   : > { %p4750_p4 = scmp.lt.u32.totalorder %s5503_s20, %s6085_s17  ;;  %p4751_p11 = scmp.lt.u32.totalorder %s4749_s18, %s4744_s14 }
  0xd4   : > { %p4747_p6 = pnand %p4745_p8, %p5430_p0  ;;  %p4753_p2 = scmp.lt.u32.totalorder %s4744_s14, %s5503_s20 }
  0xd5   : > { %p4752_p12 = por %p4751_p11, %p4750_p4 }
  0xd6   : > { %p4748_p3 = pneg %p4747_p6 }
  0xd7   : > { %p4754_p5 = por %p4753_p2, %p4752_p12 }
  0xd9   : > { %p4755_p7 = pnand %p4754_p5, %p4748_p3 }
  0xdb   : > { %4758 = shalt.err (!%p4755_p7)
}
  0xdc   : > { %s4759_s15 = scalar_lea.vmem %s1491_s30, 16  ;;  %s5088_s6 = smov [#allocation14]  }
  0xdd   : > { %p4760_p10 = scmp.ne.s32.totalorder %s1491_s30, %s4759_s15  ;;  %s4764_s1 = sshll.u32 %s5088_s6, 4  ;;  %s4765_s1 = int_to_ptr.vmem [resolvable:$false] %s4764_s1 }
  0xde   : > { %s4766_s21 = scalar_lea.vmem %s4765_s1, 32  ;;  %p4767_p8 = scmp.lt.s32.totalorder %s1491_s30, %s4765_s1 }
  0xdf   : > { %p4762_p9 = pnand %p4760_p10, %p5430_p0  ;;  %p4768_p6 = scmp.lt.s32.totalorder %s4766_s21, %s4759_s15 }
  0xe1   : > { %p4763_p1 = pneg %p4762_p9  ;;  %p4769_p13 = por %p4768_p6, %p4767_p8 }
  0xe3   : > { %p4770_p4 = pnand %p4769_p13, %p4763_p1 }
  0xe5   : > { %4773 = shalt.err (!%p4770_p4)
}
  0xe6   : > { %p6112_p11 = scmp.ne.s32.totalorder %s6103_s22, 0  ;;  %s5524_s14 = scalar_lea.hbm %s6089_s3, %s5407_s11 }
  0xe7   : > { %s1285_s21 = scalar_lea.vmem [#allocation3], %s5400_s12  ;;  %s1283_s15 = scalar_lea.sflag [#allocation4], %s5400_s12 }
  0xe8   : > { %4456 = dma.hbm_to_vmem [thread:$0]  (!%p6112_p11), %s5503_s20, 16, %s1491_s30, %s6023_s10  }
  0xe9   : > { %s1292_s18 = sshll.u32 %s1285_s21, 4  ;;  %s4774_s6 = scalar_lea.hbm %s5524_s14, 16  ;;  %s1293_s18 = int_to_ptr.vmem [resolvable:$true] %s1292_s18 }
  0xea   : > { %p4775_p13 = scmp.ne.s32.totalorder %s5524_s14, %s4774_s6  ;;  %s4779_s1 = scalar_lea.hbm %s6089_s3, 32 }
  0xeb   : > { %p4780_p2 = scmp.lt.u32.totalorder %s5524_s14, %s6089_s3  ;;  %p4781_p5 = scmp.lt.u32.totalorder %s4779_s1, %s4774_s6 }
  0xec   : > { %p4777_p3 = pnand %p4775_p13, %p5430_p0  ;;  %p4783_p10 = scmp.lt.u32.totalorder %s4774_s6, %s5524_s14 }
  0xed   : > { %p4782_p7 = por %p4781_p5, %p4780_p2 }
  0xee   : > { %p4778_p12 = pneg %p4777_p3 }
  0xef   : > { %p4784_p9 = por %p4783_p10, %p4782_p7 }
  0xf1   : > { %p4785_p1 = pnand %p4784_p9, %p4778_p12 }
  0xf3   : > { %4788 = shalt.err (!%p4785_p1)
}
  0xf4   : > { %s4789_s20 = scalar_lea.vmem %s1293_s18, 16  ;;  %s5089_s30 = smov [#allocation3]  }
  0xf5   : > { %p4790_p8 = scmp.ne.s32.totalorder %s1293_s18, %s4789_s20  ;;  %s4794_s21 = sshll.u32 %s5089_s30, 4  ;;  %s4795_s21 = int_to_ptr.vmem [resolvable:$false] %s4794_s21 }
  0xf6   : > { %s4796_s10 = scalar_lea.vmem %s4795_s21, 32  ;;  %p4797_p13 = scmp.lt.s32.totalorder %s1293_s18, %s4795_s21 }
  0xf7   : > { %p4792_p6 = pnand %p4790_p8, %p5430_p0  ;;  %p4798_p3 = scmp.lt.s32.totalorder %s4796_s10, %s4789_s20 }
  0xf9   : > { %p4793_p4 = pneg %p4792_p6  ;;  %p4799_p11 = por %p4798_p3, %p4797_p13 }
  0xfb   : > { %p4800_p2 = pnand %p4799_p11, %p4793_p4 }
  0xfd   : > { %4803 = shalt.err (!%p4800_p2)
}
  0xfe   : > { %p6113_p5 = scmp.ne.s32.totalorder %s6103_s22, 0  ;;  %s5543_s6 = scalar_lea.hbm %s6084_s24, %s5407_s11 }
  0xff   : > { %s1335_s10 = scalar_lea.vmem [#allocation7], %s5400_s12  ;;  %s4804_s20 = scalar_lea.hbm %s5543_s6, 16 }
 0x100   : > { %4435 = dma.hbm_to_vmem [thread:$0]  (!%p6113_p5), %s5524_s14, 16, %s1293_s18, %s1283_s15  }
 0x101   : > { %s1342_s1 = sshll.u32 %s1335_s10, 4  ;;  %p4805_p11 = scmp.ne.s32.totalorder %s5543_s6, %s4804_s20  ;;  %s1343_s1 = int_to_ptr.vmem [resolvable:$true] %s1342_s1 }
 0x102   : > { %s4809_s30 = scalar_lea.hbm %s6084_s24, 32  ;;  %p4810_p10 = scmp.lt.u32.totalorder %s5543_s6, %s6084_s24 }
 0x103   : > { %p4807_p12 = pnand %p4805_p11, %p5430_p0  ;;  %p4811_p9 = scmp.lt.u32.totalorder %s4809_s30, %s4804_s20 }
 0x104   : > { %p4813_p8 = scmp.lt.u32.totalorder %s4804_s20, %s5543_s6 }
 0x105   : > { %p4808_p7 = pneg %p4807_p12  ;;  %p4812_p1 = por %p4811_p9, %p4810_p10 }
 0x107   : > { %p4814_p6 = por %p4813_p8, %p4812_p1 }
 0x109   : > { %p4815_p4 = pnand %p4814_p6, %p4808_p7 }
 0x10b   : > { %4818 = shalt.err (!%p4815_p4)
}
 0x10c   : > { %s4819_s14 = scalar_lea.vmem %s1343_s1, 16  ;;  %s5090_s18 = smov [#allocation7]  }
 0x10d   : > { %p4820_p13 = scmp.ne.s32.totalorder %s1343_s1, %s4819_s14  ;;  %s4824_s15 = sshll.u32 %s5090_s18, 4  ;;  %s4825_s15 = int_to_ptr.vmem [resolvable:$false] %s4824_s15 }
 0x10e   : > { %s4826_s21 = scalar_lea.vmem %s4825_s15, 32  ;;  %p4827_p11 = scmp.lt.s32.totalorder %s1343_s1, %s4825_s15 }
 0x10f   : > { %p4822_p3 = pnand %p4820_p13, %p5430_p0  ;;  %p4828_p12 = scmp.lt.s32.totalorder %s4826_s21, %s4819_s14 }
 0x111   : > { %p4823_p2 = pneg %p4822_p3  ;;  %p4829_p5 = por %p4828_p12, %p4827_p11 }
 0x113   : > { %p4830_p9 = pnand %p4829_p5, %p4823_p2 }
 0x115   : > { %4833 = shalt.err (!%p4830_p9)
}
 0x116   : > { %p6114_p10 = scmp.ne.s32.totalorder %s6103_s22, 0  ;;  %s6115_s10 = scalar_lea.sflag [#allocation6], %s5414_s16 }
 0x117   : > { %s5563_s20 = scalar_lea.hbm %s6088_s4, %s5407_s11  ;;  %s1397_s30 = scalar_lea.vmem [#allocation10], %s5400_s12 }
 0x118   : > { %4441 = dma.hbm_to_vmem [thread:$0]  (!%p6114_p10), %s5543_s6, 16, %s1343_s1, %s6115_s10  }
 0x119   : > { %s1404_s14 = sshll.u32 %s1397_s30, 4  ;;  %s4834_s18 = scalar_lea.hbm %s5563_s20, 16  ;;  %s1405_s14 = int_to_ptr.vmem [resolvable:$true] %s1404_s14 }
 0x11a   : > { %p4835_p5 = scmp.ne.s32.totalorder %s5563_s20, %s4834_s18  ;;  %s4839_s15 = scalar_lea.hbm %s6088_s4, 32 }
 0x11b   : > { %p4840_p8 = scmp.lt.u32.totalorder %s5563_s20, %s6088_s4  ;;  %p4841_p6 = scmp.lt.u32.totalorder %s4839_s15, %s4834_s18 }
 0x11c   : > { %p4837_p7 = pnand %p4835_p5, %p5430_p0  ;;  %p4843_p13 = scmp.lt.u32.totalorder %s4834_s18, %s5563_s20 }
 0x11d   : > { %p4842_p4 = por %p4841_p6, %p4840_p8 }
 0x11e   : > { %p4838_p1 = pneg %p4837_p7 }
 0x11f   : > { %p4844_p3 = por %p4843_p13, %p4842_p4 }
 0x121   : > { %p4845_p2 = pnand %p4844_p3, %p4838_p1 }
 0x123   : > { %4848 = shalt.err (!%p4845_p2)
}
 0x124   : > { %s4849_s6 = scalar_lea.vmem %s1405_s14, 16  ;;  %s5091_s1 = smov [#allocation10]  }
 0x125   : > { %p4850_p11 = scmp.ne.s32.totalorder %s1405_s14, %s4849_s6  ;;  %s4854_s21 = sshll.u32 %s5091_s1, 4  ;;  %s4855_s21 = int_to_ptr.vmem [resolvable:$false] %s4854_s21 }
 0x126   : > { %s4856_s10 = scalar_lea.vmem %s4855_s21, 32  ;;  %p4857_p5 = scmp.lt.s32.totalorder %s1405_s14, %s4855_s21 }
 0x127   : > { %p4852_p12 = pnand %p4850_p11, %p5430_p0  ;;  %p4858_p7 = scmp.lt.s32.totalorder %s4856_s10, %s4849_s6 }
 0x129   : > { %p4853_p9 = pneg %p4852_p12  ;;  %p4859_p10 = por %p4858_p7, %p4857_p5 }
 0x12b   : > { %p4860_p6 = pnand %p4859_p10, %p4853_p9 }
 0x12d   : > { %4863 = shalt.err (!%p4860_p6)
}
 0x12e   : > { %p6116_p8 = scmp.ne.s32.totalorder %s6103_s22, 0  ;;  %s6117_s30 = scalar_lea.sflag [#allocation9], %s5414_s16 }
 0x12f   : > { %s5583_s18 = scalar_lea.hbm %s6083_s25, %s5407_s11  ;;  %s1431_s15 = scalar_lea.vmem [#allocation13], %s5400_s12 }
 0x130   : > { %4447 = dma.hbm_to_vmem [thread:$0]  (!%p6116_p8), %s5563_s20, 16, %s1405_s14, %s6117_s30  }
 0x131   : > { %s1438_s6 = sshll.u32 %s1431_s15, 4  ;;  %s4864_s1 = scalar_lea.hbm %s5583_s18, 16  ;;  %s1439_s6 = int_to_ptr.vmem [resolvable:$true] %s1438_s6 }
 0x132   : > { %p4865_p10 = scmp.ne.s32.totalorder %s5583_s18, %s4864_s1  ;;  %s4869_s21 = scalar_lea.hbm %s6083_s25, 32 }
 0x133   : > { %p4870_p13 = scmp.lt.u32.totalorder %s5583_s18, %s6083_s25  ;;  %p4871_p3 = scmp.lt.u32.totalorder %s4869_s21, %s4864_s1 }
 0x134   : > { %p4867_p1 = pnand %p4865_p10, %p5430_p0  ;;  %p4873_p11 = scmp.lt.u32.totalorder %s4864_s1, %s5583_s18 }
 0x135   : > { %p4872_p2 = por %p4871_p3, %p4870_p13 }
 0x136   : > { %p4868_p4 = pneg %p4867_p1 }
 0x137   : > { %p4874_p12 = por %p4873_p11, %p4872_p2 }
 0x139   : > { %p4875_p9 = pnand %p4874_p12, %p4868_p4 }
 0x13b   : > { %4878 = shalt.err (!%p4875_p9)
}
 0x13c   : > { %s4879_s20 = scalar_lea.vmem %s1439_s6, 16  ;;  %s5092_s14 = smov [#allocation13]  }
 0x13d   : > { %p4880_p5 = scmp.ne.s32.totalorder %s1439_s6, %s4879_s20  ;;  %s4884_s10 = sshll.u32 %s5092_s14, 4  ;;  %s4885_s10 = int_to_ptr.vmem [resolvable:$false] %s4884_s10 }
 0x13e   : > { %s4886_s30 = scalar_lea.vmem %s4885_s10, 32  ;;  %p4887_p10 = scmp.lt.s32.totalorder %s1439_s6, %s4885_s10 }
 0x13f   : > { %p4882_p7 = pnand %p4880_p5, %p5430_p0  ;;  %p4888_p1 = scmp.lt.s32.totalorder %s4886_s30, %s4879_s20 }
 0x141   : > { %p4883_p6 = pneg %p4882_p7  ;;  %p4889_p8 = por %p4888_p1, %p4887_p10 }
 0x143   : > { %p4890_p3 = pnand %p4889_p8, %p4883_p6 }
 0x145   : > { %4893 = shalt.err (!%p4890_p3)
}
 0x146   : > { %p6118_p13 = scmp.ne.s32.totalorder %s6103_s22, 0  ;;  %s6119_s15 = scalar_lea.sflag [#allocation12], %s5414_s16 }
 0x147   : > { %s5603_s1 = scalar_lea.hbm %s6086_s13, %s5407_s11  ;;  %s1500_s21 = scalar_lea.vmem [#allocation16], %s5400_s12 }
 0x148   : > { %4453 = dma.hbm_to_vmem [thread:$0]  (!%p6118_p13), %s5583_s18, 16, %s1439_s6, %s6119_s15  }
 0x149   : > { %s1507_s20 = sshll.u32 %s1500_s21, 4  ;;  %s4894_s14 = scalar_lea.hbm %s5603_s1, 16  ;;  %s1508_s20 = int_to_ptr.vmem [resolvable:$true] %s1507_s20 }
 0x14a   : > { %p4895_p8 = scmp.ne.s32.totalorder %s5603_s1, %s4894_s14  ;;  %s4899_s10 = scalar_lea.hbm %s6086_s13, 32 }
 0x14b   : > { %p4900_p11 = scmp.lt.u32.totalorder %s5603_s1, %s6086_s13  ;;  %p4901_p12 = scmp.lt.u32.totalorder %s4899_s10, %s4894_s14 }
 0x14c   : > { %p4897_p4 = pnand %p4895_p8, %p5430_p0  ;;  %p4903_p5 = scmp.lt.u32.totalorder %s4894_s14, %s5603_s1 }
 0x14d   : > { %p4902_p9 = por %p4901_p12, %p4900_p11 }
 0x14e   : > { %p4898_p2 = pneg %p4897_p4 }
 0x14f   : > { %p4904_p7 = por %p4903_p5, %p4902_p9 }
 0x151   : > { %p4905_p6 = pnand %p4904_p7, %p4898_p2 }
 0x153   : > { %4908 = shalt.err (!%p4905_p6)
}
 0x154   : > { %s4909_s18 = scalar_lea.vmem %s1508_s20, 16  ;;  %s5093_s6 = smov [#allocation16]  }
 0x155   : > { %p4910_p10 = scmp.ne.s32.totalorder %s1508_s20, %s4909_s18  ;;  %s4914_s30 = sshll.u32 %s5093_s6, 4  ;;  %s4915_s30 = int_to_ptr.vmem [resolvable:$false] %s4914_s30 }
 0x156   : > { %s4916_s15 = scalar_lea.vmem %s4915_s30, 32  ;;  %p4917_p8 = scmp.lt.s32.totalorder %s1508_s20, %s4915_s30 }
 0x157   : > { %p4912_p1 = pnand %p4910_p10, %p5430_p0  ;;  %p4918_p4 = scmp.lt.s32.totalorder %s4916_s15, %s4909_s18 }
 0x159   : > { %p4913_p3 = pneg %p4912_p1  ;;  %p4919_p13 = por %p4918_p4, %p4917_p8 }
 0x15b   : > { %p4920_p11 = pnand %p4919_p13, %p4913_p3 }
 0x15d   : > { %4923 = shalt.err (!%p4920_p11)
}
 0x15e   : > { %p6120_p12 = scmp.ne.s32.totalorder %s6103_s22, 0  ;;  %s6121_s21 = scalar_lea.sflag [#allocation15], %s5414_s16 }
 0x15f   : > { %s5623_s14 = scalar_lea.hbm %s6082_s27, %s5407_s11  ;;  %s1517_s10 = scalar_lea.vmem [#allocation17], %s5400_s12 }
 0x160   : > { %4459 = dma.hbm_to_vmem [thread:$0]  (!%p6120_p12), %s5603_s1, 16, %s1508_s20, %s6121_s21  }
 0x161   : > { %s1524_s18 = sshll.u32 %s1517_s10, 4  ;;  %s1515_s6 = scalar_lea.sflag [#allocation18], %s5400_s12  ;;  %s1525_s18 = int_to_ptr.vmem [resolvable:$true] %s1524_s18 }
 0x162   : > { %s4924_s16 = scalar_lea.hbm %s5623_s14, 16  ;;  %s4929_s30 = scalar_lea.hbm %s6082_s27, 32 }
 0x163   : > { %p4925_p13 = scmp.ne.s32.totalorder %s5623_s14, %s4924_s16  ;;  %p4930_p5 = scmp.lt.u32.totalorder %s5623_s14, %s6082_s27 }
 0x164   : > { %p4931_p7 = scmp.lt.u32.totalorder %s4929_s30, %s4924_s16  ;;  %p4933_p10 = scmp.lt.u32.totalorder %s4924_s16, %s5623_s14 }
 0x165   : > { %p4927_p2 = pnand %p4925_p13, %p5430_p0 }
 0x166   : > { %p4932_p6 = por %p4931_p7, %p4930_p5 }
 0x167   : > { %p4928_p9 = pneg %p4927_p2 }
 0x168   : > { %p4934_p1 = por %p4933_p10, %p4932_p6 }
 0x16a   : > { %p4935_p3 = pnand %p4934_p1, %p4928_p9 }
 0x16c   : > { %4938 = shalt.err (!%p4935_p3)
}
 0x16d   : > { %s4939_s11 = scalar_lea.vmem %s1525_s18, 16  ;;  %s5094_s12 = smov [#allocation17]  }
 0x16e   : > { %p4940_p8 = scmp.ne.s32.totalorder %s1525_s18, %s4939_s11  ;;  %s4944_s1 = sshll.u32 %s5094_s12, 4  ;;  %s4945_s1 = int_to_ptr.vmem [resolvable:$false] %s4944_s1 }
 0x16f   : > { %s4946_s20 = scalar_lea.vmem %s4945_s1, 32  ;;  %p4947_p13 = scmp.lt.s32.totalorder %s1525_s18, %s4945_s1 }
 0x170   : > { %p4942_p4 = pnand %p4940_p8, %p5430_p0  ;;  %p4948_p2 = scmp.lt.s32.totalorder %s4946_s20, %s4939_s11 }
 0x172   : > { %p4943_p11 = pneg %p4942_p4  ;;  %p4949_p12 = por %p4948_p2, %p4947_p13 }
 0x174   : > { %p4950_p5 = pnand %p4949_p12, %p4943_p11 }
 0x176   : > { %4953 = shalt.err (!%p4950_p5)
}
 0x177   : > { %p6122_p7 = scmp.ne.s32.totalorder %s6103_s22, 0  ;;  %p6123_p9 = scmp.ne.s32.totalorder %s6108_s19, 0 }
 0x179   : > { %4462 = dma.hbm_to_vmem [thread:$0]  (!%p6122_p7), %s5623_s14, 16, %s1525_s18, %s1515_s6  }
 0x17a   : > { %1599 = sbr.rel (%p6123_p9) target bundleno = 6015 (0x177f), region = 192 }
 0x181   : > { %s5643_s26 = sand.u32 1, %s5016_s23   ;;  %p6125_p0 = scmp.ne.s32.totalorder %s6102_s2, 0 }
 0x182   : > { %6124 = sst [smem:[#allocation78_spill]] %s5643_s26  ;;  %s1602_s15 = scalar_lea.sflag [#allocation4], %s5643_s26 }
 0x183   : > { %4987 = dma.done.wait (%p6125_p0), %s1602_s15, 16  }
 0x184   : > { %4989 = vsyncadd (%p6125_p0), %s1602_s15, 4294967280  ;;  %s6126_s22 = sadd.s32 4294967295, %s5040_s7  }
 0x185   : > { %s1609_s14 = sand.u32 1, %s6126_s22  }
 0x186   : > { %s1610_s19 = scalar_lea.sflag [#allocation6], %s1609_s14 }
 0x187   : > { %4991 = dma.done.wait (%p6125_p0), %s1610_s19, 32  }
 0x188   : > { %4993 = vsyncadd (%p6125_p0), %s1610_s19, 4294967264  ;;  %s1626_s6 = scalar_lea.sflag [#allocation9], %s1609_s14 }
 0x189   : > { %4995 = dma.done.wait (%p6125_p0), %s1626_s6, 32  }
 0x18a   : > { %4997 = vsyncadd (%p6125_p0), %s1626_s6, 4294967264  ;;  %s1642_s11 = scalar_lea.sflag [#allocation12], %s1609_s14 }
 0x18b   : > { %4999 = dma.done.wait (%p6125_p0), %s1642_s11, 32  }
 0x18c   : > { %5001 = vsyncadd (%p6125_p0), %s1642_s11, 4294967264  ;;  %s1658_s20 = scalar_lea.sflag [#allocation15], %s1609_s14 }
 0x18d   : > { %5003 = dma.done.wait (%p6125_p0), %s1658_s20, 32  }
 0x18e   : > { %5005 = vsyncadd (%p6125_p0), %s1658_s20, 4294967264  ;;  %s1674_s19 = scalar_lea.sflag [#allocation18], %s5643_s26 }
 0x18f   : > { %5007 = dma.done.wait (%p6125_p0), %s1674_s19, 16  }
 0x190   : > { %5009 = vsyncadd (%p6125_p0), %s1674_s19, 4294967280  ;;  %s6127_s5 = sld [smem:[#allocation25_spill]]  ;;  %s6130_s14 = sld [smem:[#allocation35_spill]] }
 0x191   : > { %p1903_p12 = scmp.lt.s32.totalorder %s5028_s28, 1  ;;  %p1907_p6 = scmp.lt.s32.totalorder %s5024_s0, 1 }
 0x192   : > { %s6139_s16 = sld [smem:[#allocation49_spill]]  ;;  %s6140_s10 = sld [smem:[#allocation53_spill]] }
 0x193   : > { %s6223_s28 = smov (!%p1903_p12, %s5028_s28), 1  ;;  %s6142_s3 = sld [smem:[#allocation54_spill]] }
 0x194   : > { %s5689_s19 = scalar_select %p1907_p6, %s5024_s0, 1 }
 0x195   : > { %s4140_s30 = sshll.u32 %s6223_s28, 3  ;;  %s4242_s18 = sshll.u32 %s6223_s28, 4 }
 0x196   : > { %s5694_s21 = scalar_lea.vmem %s6127_s5, %s4140_s30  ;;  %s6143_s9 = sld [smem:[#allocation55_spill]] }
 0x197   : > { %6141 = sst [smem:[#allocation79_spill]] %s5694_s21  ;;  %s5699_s13 = sshll.u32 %s5689_s19, 3 }
 0x198   : > { %s4234_s17 = sshll.u32 %s5689_s19, 4  ;;  %s6144_s24 = sld [smem:[#allocation56_spill]] }
 0x199   : > { %s5705_s30 = scalar_lea.vmem %s6130_s14, %s4234_s17  ;;  %s6146_s4 = sld [smem:[#allocation57_spill]] }
 0x19a   : > { %6145 = sst [smem:[#allocation80_spill]] %s5705_s30  ;;  %s6147_s27 = sld [smem:[#allocation58_spill]] }
 0x19b   : > { %s6148_s23 = sld [smem:[#allocation59_spill]]  ;;  %s6149_s26 = sld [smem:[#allocation60_spill]] }
 0x19c   : > { %s6150_s21 = sld [smem:[#allocation61_spill]]  ;;  %s6151_s8 = sld [smem:[#allocation62_spill]] }
 0x19d   : > { %s6152_s14 = sld [smem:[#allocation68_spill]]  ;;  %s1955_s11 = scalar_lea.vmem %s6139_s16, %s5699_s13 }
 0x19e   : > { %s1960_s20 = scalar_lea.vmem %s6140_s10, %s5699_s13  ;;  %s1963_s25 = scalar_lea.vmem %s6142_s3, %s5689_s19 }
 0x19f   : > { %s1966_s7 = scalar_lea.vmem %s6143_s9, %s5689_s19  ;;  %s1969_s15 = scalar_lea.vmem %s6144_s24, %s5689_s19 }
 0x1a0   : > { %s1974_s1 = scalar_lea.vmem %s6146_s4, %s5699_s13  ;;  %s1977_s29 = scalar_lea.vmem %s6147_s27, %s5689_s19 }
 0x1a1   : > { %s5738_s0 = scalar_lea.vmem %s6148_s23, %s4234_s17  ;;  %s1985_s22 = scalar_lea.vmem %s6149_s26, %s5689_s19 }
 0x1a2   : > { %s1988_s6 = scalar_lea.vmem %s6150_s21, %s5689_s19  ;;  %s1991_s28 = scalar_lea.vmem %s6151_s8, %s5689_s19 }
 0x1a3   : > { %s5747_s2 = scalar_lea.vmem %s6152_s14, %s4242_s18  ;;  %s6153_s30 = sld [smem:[#allocation71_spill]] }
 0x1a9   : > { %p4162_p10 = scmp.ne.s32.totalorder %s6153_s30, 0 }
 0x1aa   : > { %s6154_s5 = sld [smem:[#allocation27_spill]] (!%p4162_p10)  ;;  %s6155_s12 = sld [smem:[#allocation79_spill]] (!%p4162_p10)  ;;  %v5095_v1 = vmov (!%p4162_p10), 0.0   ;;  %vm2027_vm0 = vcmask (!%p4162_p10), 1041408   ;;  %vm5096_vm1 = vmmov (!%p4162_p10), 0   ;;  %vm2023_vm2 = vcmask (!%p4162_p10), 162816  }
 0x1ab   : > { %2001 = sbr.rel (%p4162_p10) target bundleno = 974 (0x3ce), region = 236  ;;  %s6156_s16 = sld [smem:[#allocation28_spill]] (!%p4162_p10)  ;;  %4286 = vmatprep.subr.bf16.mxu0 (!%p4162_p10), %v5095_v1  ;;  %4290 = vmatprep.mubr.msk.bf16.mxu0 (!%p4162_p10), %vm5096_vm1, %v5095_v1  ;;  %vm2073_vm3 = vcmask (!%p4162_p10), 130048  }
 0x1ac   : > { %s6157_s9 = sld [smem:[#allocation29_spill]] (!%p4162_p10)  ;;  %s6158_s17 = sld [smem:[#allocation30_spill]] (!%p4162_p10) }
 0x1ad   : > { %s6159_s3 = sld [smem:[#allocation26_spill]] (!%p4162_p10) }
 0x1b0   : > { %v4591_v0 = vld [vmem:[%s6154_s5] sm:$0xff] (!%p4162_p10)   ;;  %v4592_v2 = vld [vmem:[%s6154_s5 + $0x8] ss:$0 sps:$4 sm:$0x33] (!%p4162_p10)  }
 0x1b1   : > { %4287 = vmatpush3.bf16.msra.mxu0 (!%p4162_p10), %v4591_v0  ;;  %v2002_v3 = vld [vmem:[%s6155_s12] sm:$0xff] (!%p4162_p10)  ;;  %v2029_v4 = vsel (!%p4162_p10), %vm2027_vm0, %v4592_v2, 0 }
 0x1b2   : > { %4288 = vmatprep.subr.bf16.mxu0 %v5095_v1  ;;  %v2006_v5 = vpack.c.bf16 %v2002_v3, %v2002_v3  ;;  %v4163_v6 = vld [vmem:[%s6156_s16] ss:$0 sm:$0xff] }
 0x1b3   : > { %v4167_v22 = vld [vmem:[%s6157_s9] ss:$0 sm:$0xff] }
 0x1b4   : > { %v4168_v24 = vld [vmem:[%s6158_s17] ss:$0 sm:$0xff] }
 0x1b5   : > { %4289 = vmatpush3.bf16.msra.mxu0 %v2029_v4  ;;  %v2104_v28 = vld [vmem:[%s6159_s3] sm:$0xff] }
 0x1b8   : > { %4291 = vmatmul.mubr.msk.bf16.vlgmr.msra.gmra.mrb[0].mxu0 %vm2023_vm2, %v2006_v5 }
 0x28b   : > { %v2065_v7 = vpop.f32.mrb[0].mxu0 }
 0x28c   : > { %v2066_v8 = vadd.f32 %v4163_v6, %v2065_v7  ;;  %v4292_v9 = vpop.f32.mrb[1].mxu0 }
 0x28d   : > { %v2068_v10 = vpop.f32.mrb[2].mxu0 }
 0x28e   : > { %v4293_v11 = vpop.f32.mrb[3].mxu0  ;;  %v2074_v12 = vsel %vm2073_vm3, %v2066_v8, 0.0 }
 0x28f   : > { %2075 = vadd.xlane.f32.xlu0 %v2074_v12 }
 0x31c   : > { %v2076_v13 = vpop.xlane.xlu0 %2075 }
 0x31d   : > { %v2078_v14 = vmul.f32 0.0625, %v2076_v13 }
 0x31f   : > { %v2079_v15 = vsub.f32 %v2066_v8, %v2078_v14 }
 0x321   : > { %v2080_v16 = vmul.f32 %v2079_v15, %v2079_v15 }
 0x323   : > { %v2081_v17 = vsel %vm2073_vm3, %v2080_v16, 0.0 }
 0x324   : > { %2082 = vadd.xlane.f32.xlu0 %v2081_v17 }
 0x3b1   : > { %v2083_v18 = vpop.xlane.xlu0 %2082 }
 0x3b2   : > { %v2084_v19 = vmul.f32 0.0625, %v2083_v18 }
 0x3b4   : > { %v2085_v20 = vadd.f32 1e-05, %v2084_v19 }
 0x3b6   : > { %4593 = vrsqrt.f32 %v2085_v20 }
 0x3c0   : > { %v4594_v21 = vpop.eup %4593 }
 0x3c1   : > { %v2087_v23 = vmul.f32 %v4594_v21, %v2079_v15 }
 0x3c3   : > { %v2094_v25 = vmul.f32 %v4167_v22, %v2087_v23 }
 0x3c5   : > { %v2101_v26 = vadd.f32 %v4168_v24, %v2094_v25 }
 0x3c7   : > { %v2102_v27 = vmax.f32 %v2101_v26, 0.0 }
 0x3c9   : > { %v2103_v29 = vmul.f32 4.0, %v2102_v27 }
 0x3cb   : > { %v2105_v30 = vadd.f32 %v2104_v28, %v2103_v29 }
 0x3cd   : > { %2106 = vst.msk [vmem:[#allocation2] sm:$0xff] %vm2073_vm3, %v2105_v30 }
 0x3ce PF: > { %s6160_s8 = sld [smem:[#allocation33_spill]]  ;;  %vm2110_vm4 = vcmask 130048   ;;  %s6161_s24 = sld [smem:[#allocation31_spill]]  ;;  %v5097_v39 = vmov 0.0   ;;  %vm5098_vm5 = vmmov 0   ;;  %vm2229_vm6 = vcmask 261120  }
 0x3cf   : > { %s6163_s4 = sld [smem:[#allocation78_spill]]  ;;  %4294 = vmatprep.subr.bf16.mxu0 %v5097_v39  ;;  %4296 = vmatprep.mubr.msk.bf16.mxu0 %vm5098_vm5, %v5097_v39  ;;  %s6164_s23 = sld [smem:[#allocation80_spill]]  ;;  %vm2367_vm7 = vcmask 31744   ;;  %vm2415_vm8 = vcmask 64512   ;;  %vm2433_vm9 = vcmask 1043456   ;;  %vm2824_vm10 = vcmask 97280  }
 0x3d0   : > { %4300 = vmatprep.subr.bf16.mxu1 %v5097_v39  ;;  %4304 = vmatprep.mubr.msk.bf16.mxu1 %vm5098_vm5, %v5097_v39  ;;  %s6169_s30 = sld [smem:[#allocation39_spill]]  ;;  %s6170_s14 = sld [smem:[#allocation37_spill]]  ;;  %vm3040_vm11 = vcmask 1042432   ;;  %vm3058_vm12 = vcmask 1046528   ;;  %vm3072_vm13 = vcmask 1045504   ;;  %vm3086_vm14 = vcmask 1044480  }
 0x3d1   : > { %s6171_s12 = sld [smem:[#allocation38_spill]]  ;;  %vm3126_vm15 = vcmask 1041408  }
 0x3d4   : > { %v2107_v31 = vld [vmem:[#allocation2] sm:$0xff]  ;;  %s6162_s27 = scalar_lea.vmem %s6160_s8, %s5699_s13  ;;  %s6165_s26 = scalar_lea.vmem %s6161_s24, %s5689_s19 }
 0x3d5   : > { %v2111_v32 = vsel %vm2110_vm4, %v2107_v31, 0.0  ;;  %v4595_v38 = vld [vmem:[%s6162_s27] sm:$0xff]   ;;  %s6166_s21 = scalar_lea.vmem [#allocation3], %s6163_s4  ;;  %v4597_v51 = vld [vmem:[%s6164_s23 + $0x8] sm:$0xff]   ;;  %s6167_s10 = scalar_lea.vmem [#allocation5], %s6163_s4 }
 0x3d6   : > { %2112 = vadd.xlane.f32.xlu0 %v2111_v32  ;;  %4295 = vmatpush3.bf16.msra.mxu0 %v4595_v38  ;;  %v4169_v44 = vld [vmem:[%s6165_s26] ss:$0 sm:$0xff]  ;;  %s6168_s18 = scalar_lea.vmem [#allocation7], %s6163_s4  ;;  %s6172_s16 = scalar_lea.vmem %s6169_s30, %s5699_s13 }
 0x3d7   : > { %4308 = vmatprep.subr.bf16.mxu0 %v5097_v39  ;;  %v4170_v46 = vld [vmem:[%s6166_s21] ss:$0 sm:$0xff]  ;;  %s6173_s9 = scalar_lea.vmem %s6170_s14, %s5689_s19  ;;  %s6174_s17 = scalar_lea.vmem %s6171_s12, %s5689_s19 }
 0x3d8   : > { %v4596_v50 = vld [vmem:[%s6164_s23] sm:$0xff]   ;;  %s6175_s3 = scalar_lea.vmem [#allocation8], %s6163_s4  ;;  %s5099_s8 = smov 108  }
 0x3d9   : > { %4301 = vmatpush3.bf16.msra.mxu1 %v4596_v50  ;;  %v4171_v52 = vld [vmem:[%s6167_s10] ss:$0 sm:$0xff]  ;;  %s5100_s24 = smov 112   ;;  %s5101_s27 = smov 124  }
 0x3da   : > { %4302 = vmatprep.subr.bf16.mxu1 %v5097_v39  ;;  %v4175_v0 = vld [vmem:[%s6168_s18] ss:$0 sm:$0xff]  ;;  %s5102_s23 = smov 120   ;;  %s5103_s26 = smov 104  }
 0x3db   : > { %v4598_v14 = vld [vmem:[%s6172_s16] sm:$0xff]   ;;  %s5104_s21 = smov 116   ;;  %s5105_s10 = smov 100  }
 0x3dc   : > { %v4179_v19 = vld [vmem:[%s6173_s9] ss:$0 sm:$0xff]  ;;  %s5106_s18 = smov 96   ;;  %s5107_s30 = smov 92  }
 0x3dd   : > { %4303 = vmatpush3.bf16.msra.mxu1 %v4597_v51  ;;  %v4180_v21 = vld [vmem:[%s6174_s17] ss:$0 sm:$0xff]  ;;  %s5108_s14 = smov 88   ;;  %s5109_s12 = smov 84  }
 0x3de   : > { %4314 = vmatprep.subr.bf16.mxu1 %v5097_v39  ;;  %v4181_v25 = vld [vmem:[%s6175_s3] ss:$0 sm:$0xff]  ;;  %s6176_s16 = sld [smem:[#allocation41_spill]]  ;;  %s5110_s9 = smov 4  }
 0x3df   : > { %s5111_s3 = smov 8  }
 0x3e4   : > { %s6177_s17 = scalar_lea.vmem %s6176_s16, %s5699_s13  ;;  %s6188_s16 = sld [smem:[#allocation46_spill]] }
 0x463   : > { %v2113_v33 = vpop.xlane.xlu0 %2112 }
 0x464   : > { %v2115_v34 = vmul.f32 0.0625, %v2113_v33 }
 0x466   : > { %v2116_v35 = vsub.f32 %v2107_v31, %v2115_v34 }
 0x468   : > { %v2117_v36 = vmul.f32 %v2116_v35, %v2116_v35 }
 0x46a   : > { %v2118_v37 = vsel %vm2110_vm4, %v2117_v36, 0.0 }
 0x46b   : > { %2119 = vadd.xlane.f32.xlu0 %v2118_v37 }
 0x4f8   : > { %v2120_v40 = vpop.xlane.xlu0 %2119 }
 0x4f9   : > { %v2121_v41 = vmul.f32 0.0625, %v2120_v40 }
 0x4fb   : > { %v2122_v42 = vadd.f32 1e-05, %v2121_v41 }
 0x4fd   : > { %4606 = vrsqrt.f32 %v2122_v42 }
 0x507   : > { %v4607_v43 = vpop.eup %4606 }
 0x508   : > { %v2124_v45 = vmul.f32 %v4607_v43, %v2116_v35 }
 0x50a   : > { %v2131_v47 = vmul.f32 %v4169_v44, %v2124_v45 }
 0x50c   : > { %v2138_v48 = vadd.f32 %v4170_v46, %v2131_v47 }
 0x50e   : > { %v2141_v49 = vpack.c.bf16 %v2138_v48, %v2138_v48 }
 0x510   : > { %4297 = vmatmul.mubr.msk.bf16.vlgmr.msra.gmra.mrb[0].mxu0 %vm2110_vm4, %v2141_v49 }
 0x511   : > { %4310 = vmatprep.mubr.msk.bf16.mxu0 %vm5098_vm5, %v5097_v39  ;;  %4309 = vmatpush3.bf16.msra.mxu0 %v4598_v14 }
 0x512   : > { %4320 = vmatprep.subr.bf16.mxu0 %v5097_v39 }
 0x5e3   : > { %v2192_v53 = vpop.f32.mrb[0].mxu0 }
 0x5e4   : > { %v2193_v54 = vadd.f32 %v4171_v52, %v2192_v53  ;;  %v4298_v55 = vpop.f32.mrb[1].mxu0 }
 0x5e5   : > { %v2195_v56 = vpop.f32.mrb[2].mxu0 }
 0x5e6   : > { %v4174_v57 = vmul.f32 -1.442695, %v2193_v54  ;;  %v4299_v58 = vpop.f32.mrb[3].mxu0 }
 0x5e8   : > { %4608 = vpow2.f32 %v4174_v57 }
 0x5f2   : > { %v4609_v59 = vpop.eup %4608 }
 0x5f3   : > { %v2201_v60 = vadd.f32 1.0, %v4609_v59 }
 0x5f5   : > { %4610 = vrcp.f32 %v2201_v60 }
 0x5ff   : > { %v4611_v61 = vpop.eup %4610 }
 0x600   : > { %v2204_v62 = vmul.f32 %v4611_v61, %v2193_v54 }
 0x602   : > { %v2209_v63 = vpack.c.bf16 %v2204_v62, %v2204_v62 }
 0x604   : > { %4305 = vmatmul.mubr.msk.bf16.vlgmr.msra.gmra.mrb[0].mxu1 %vm2229_vm6, %v2209_v63 }
 0x605   : > { %4316 = vmatprep.mubr.msk.bf16.mxu1 %vm5098_vm5, %v5097_v39 }
 0x6d7   : > { %v2267_v1 = vpop.f32.mrb[0].mxu1 }
 0x6d8   : > { %v2268_v2 = vadd.f32 %v4175_v0, %v2267_v1  ;;  %v4306_v3 = vpop.f32.mrb[1].mxu1 }
 0x6d9   : > { %v2270_v4 = vpop.f32.mrb[2].mxu1 }
 0x6da   : > { %v2273_v5 = vmul.f32 0.5, %v2268_v2  ;;  %v4307_v6 = vpop.f32.mrb[3].mxu1 }
 0x6dc   : > { %v5791_v7 = vadd.f32 %v2273_v5, %v2107_v31 }
 0x6de   : > { %v2277_v8 = vsel %vm2110_vm4, %v5791_v7, 0.0 }
 0x6df   : > { %2278 = vadd.xlane.f32.xlu1 %v2277_v8 }
 0x76c   : > { %v2279_v9 = vpop.xlane.xlu1 %2278 }
 0x76d   : > { %v2280_v10 = vmul.f32 0.0625, %v2279_v9 }
 0x76f   : > { %v2281_v11 = vsub.f32 %v5791_v7, %v2280_v10 }
 0x771   : > { %v2282_v12 = vmul.f32 %v2281_v11, %v2281_v11 }
 0x773   : > { %v2283_v13 = vsel %vm2110_vm4, %v2282_v12, 0.0 }
 0x774   : > { %2284 = vadd.xlane.f32.xlu1 %v2283_v13 }
 0x801   : > { %v2285_v15 = vpop.xlane.xlu1 %2284 }
 0x802   : > { %v2286_v16 = vmul.f32 0.0625, %v2285_v15 }
 0x804   : > { %v2287_v17 = vadd.f32 1e-05, %v2286_v16 }
 0x806   : > { %4612 = vrsqrt.f32 %v2287_v17 }
 0x810   : > { %v4613_v18 = vpop.eup %4612 }
 0x811   : > { %v2289_v20 = vmul.f32 %v4613_v18, %v2281_v11 }
 0x813   : > { %v2296_v22 = vmul.f32 %v4179_v19, %v2289_v20 }
 0x815   : > { %v2303_v23 = vadd.f32 %v4180_v21, %v2296_v22 }
 0x817   : > { %v2306_v24 = vpack.c.bf16 %v2303_v23, %v2303_v23 }
 0x819   : > { %4311 = vmatmul.mubr.msk.bf16.vlgmr.msra.gmra.mrb[4].mxu0 %vm2110_vm4, %v2306_v24 }
 0x81a   : > { %4322 = vmatprep.mubr.msk.bf16.mxu0 %vm5098_vm5, %v5097_v39 }
 0x8ec   : > { %v2357_v26 = vpop.f32.mrb[4].mxu0 }
 0x8ed   : > { %v2358_v27 = vadd.f32 %v4181_v25, %v2357_v26  ;;  %v4312_v28 = vpop.f32.mrb[5].mxu0 }
 0x8ee   : > { %v2360_v29 = vpop.f32.mrb[6].mxu0 }
 0x8ef   : > { %v5812_v30 = vpack.c.bf16 %v2358_v27, %v2358_v27  ;;  %v4313_v31 = vpop.f32.mrb[7].mxu0 }
 0x8f1   : > { %2479 = vrot.lane.b32.xlu1 %v5812_v30, %s5099_s8  ;;  %2365 = vrot.lane.b32.xlu0 %v5812_v30, %s5100_s24  ;;  %s5112_s8 = smov 12   ;;  %s6178_s24 = sld [smem:[#allocation47_spill]] }
 0x8f5   : > { %2477 = vrot.lane.b32.xlu1 %v5812_v30, %s5101_s27  ;;  %2588 = vrot.lane.b32.xlu0 %v5812_v30, %s5102_s23  ;;  %s6179_s27 = scalar_lea.vmem [#allocation10], %s6163_s4  ;;  %s6180_s23 = sld [smem:[#allocation45_spill]] }
 0x8f9   : > { %2590 = vrot.lane.b32.xlu1 %v5812_v30, %s5103_s26  ;;  %2699 = vrot.lane.b32.xlu0 %v5812_v30, %s5104_s21  ;;  %s6181_s26 = scalar_lea.vmem %s6178_s24, %s5699_s13 }
 0x8fb   : > { %s6182_s21 = scalar_lea.vmem %s6180_s23, %s5699_s13 }
 0x8fd   : > { %2701 = vrot.lane.b32.xlu1 %v5812_v30, %s5105_s10 }
 0x963   : > { %v2366_v32 = vpop.permute.xlu0 %2365  ;;  %v2480_v34 = vpop.permute.xlu1 %2479 }
 0x964   : > { %v2372_v33 = vsel %vm2367_vm7, %v2366_v32, 0  ;;  %v2485_v36 = vsel %vm2367_vm7, %v2480_v34, 0 }
 0x965   : > { %4315 = vmatpush3.bf16.xpose.msra.mxu1 %v2372_v33 }
 0x966   : > { %4326 = vmatprep.subr.bf16.mxu1 %v5097_v39 }
 0x967   : > { %v2478_v35 = vpop.permute.xlu1 %2477  ;;  %v2589_v41 = vpop.permute.xlu0 %2588 }
 0x96b   : > { %v2591_v37 = vpop.permute.xlu1 %2590  ;;  %v2700_v43 = vpop.permute.xlu0 %2699 }
 0x96c   : > { %4317 = vmatmul.mubr.msk.bf16.vlgmr.msra.gmra.mrb[4].mxu1 %vm2367_vm7, %v5812_v30  ;;  %v2596_v38 = vsel %vm2367_vm7, %v2591_v37, 0 }
 0x96d   : > { %4327 = vmatpush3.bf16.xpose.msra.mxu1 %v2485_v36  ;;  %4328 = vmatprep.mubr.msk.bf16.mxu1 %vm5098_vm5, %v5097_v39 }
 0x96e   : > { %4338 = vmatprep.subr.bf16.mxu1 %v5097_v39 }
 0x96f   : > { %v2702_v40 = vpop.permute.xlu1 %2701 }
 0x970   : > { %v2707_v42 = vsel %vm2367_vm7, %v2702_v40, 0 }
 0x974   : > { %4329 = vmatmul.mubr.msk.bf16.vlgmr.msra.gmra.mrb[8].mxu1 %vm2367_vm7, %v2478_v35 }
 0x975   : > { %4339 = vmatpush3.bf16.xpose.msra.mxu1 %v2596_v38  ;;  %4340 = vmatprep.mubr.msk.bf16.mxu1 %vm5098_vm5, %v5097_v39 }
 0x976   : > { %4350 = vmatprep.subr.bf16.mxu1 %v5097_v39 }
 0x97c   : > { %4341 = vmatmul.mubr.msk.bf16.vlgmr.msra.gmra.mrb[12].mxu1 %vm2367_vm7, %v2589_v41 }
 0x97d   : > { %4351 = vmatpush3.bf16.xpose.msra.mxu1 %v2707_v42  ;;  %4352 = vmatprep.mubr.msk.bf16.mxu1 %vm5098_vm5, %v5097_v39 }
 0x97e   : > { %4362 = vmatprep.subr.bf16.mxu1 %v5097_v39 }
 0x984   : > { %4353 = vmatmul.mubr.msk.bf16.vlgmr.msra.gmra.mrb[16].mxu1 %vm2367_vm7, %v2700_v43 }
 0x985   : > { %4364 = vmatprep.mubr.msk.bf16.mxu1 %vm5098_vm5, %v5097_v39 }
 0xa3f   : > { %v2408_v44 = vpop.f32.mrb[4].mxu1 }
 0xa40   : > { %v2414_v45 = vmul.f32 0.5, %v2408_v44  ;;  %v4318_v46 = vpop.f32.mrb[5].mxu1 }
 0xa41   : > { %v2411_v47 = vpop.f32.mrb[6].mxu1 }
 0xa42   : > { %v4319_v48 = vpop.f32.mrb[7].mxu1  ;;  %v2416_v49 = vsel %vm2415_vm8, %v2414_v45, -inf }
 0xa43   : > { %2417 = vmax.xlane.f32.xlu1 %v2416_v49 }
 0xa47   : > { %v2521_v50 = vpop.f32.mrb[8].mxu1 }
 0xa48   : > { %v2527_v51 = vmul.f32 0.5, %v2521_v50  ;;  %v4330_v52 = vpop.f32.mrb[9].mxu1 }
 0xa49   : > { %v2524_v53 = vpop.f32.mrb[10].mxu1 }
 0xa4a   : > { %v4331_v54 = vpop.f32.mrb[11].mxu1  ;;  %v2528_v55 = vsel %vm2415_vm8, %v2527_v51, -inf }
 0xa4b   : > { %2529 = vmax.xlane.f32.xlu0 %v2528_v55 }
 0xa4f   : > { %v2632_v56 = vpop.f32.mrb[12].mxu1 }
 0xa50   : > { %v2638_v57 = vmul.f32 0.5, %v2632_v56  ;;  %v4342_v58 = vpop.f32.mrb[13].mxu1 }
 0xa51   : > { %v2635_v59 = vpop.f32.mrb[14].mxu1  ;;  %v4599_v58 = vld [vmem:[%s6177_s17] sm:$0xff]   ;;  %s6192_s17 = scalar_lea.vmem [#allocation16], %s6163_s4 }
 0xa52   : > { %v4343_v60 = vpop.f32.mrb[15].mxu1  ;;  %v2639_v61 = vsel %vm2415_vm8, %v2638_v57, -inf  ;;  %4363 = vmatpush3.bf16.msra.mxu1 %v4599_v58 }
 0xa53   : > { %2640 = vmax.xlane.f32.xlu0 %v2639_v61  ;;  %4374 = vmatprep.subr.bf16.mxu1 %v5097_v39 }
 0xa57   : > { %v2743_v62 = vpop.f32.mrb[16].mxu1 }
 0xa58   : > { %v2749_v63 = vmul.f32 0.5, %v2743_v62  ;;  %v4354_v0 = vpop.f32.mrb[17].mxu1 }
 0xa59   : > { %v2746_v1 = vpop.f32.mrb[18].mxu1 }
 0xa5a   : > { %v4355_v2 = vpop.f32.mrb[19].mxu1  ;;  %v2750_v3 = vsel %vm2415_vm8, %v2749_v63, -inf }
 0xa5b   : > { %2751 = vmax.xlane.f32.xlu0 %v2750_v3 }
 0xad0   : > { %v2418_v4 = vpop.xlane.xlu1 %2417 }
 0xad1   : > { %v2419_v5 = vsub.f32 %v2414_v45, %v2418_v4 }
 0xad3   : > { %v2420_v6 = vmul.f32 1.442695, %v2419_v5 }
 0xad5   : > { %4614 = vpow2.f32 %v2420_v6 }
 0xad8   : > { %v2530_v8 = vpop.xlane.xlu0 %2529 }
 0xad9   : > { %v2531_v9 = vsub.f32 %v2527_v51, %v2530_v8 }
 0xadb   : > { %v2532_v10 = vmul.f32 1.442695, %v2531_v9 }
 0xadd   : > { %4616 = vpow2.f32 %v2532_v10 }
 0xadf   : > { %v4615_v11 = vpop.eup %4614 }
 0xae0   : > { %v2422_v12 = vsel %vm2415_vm8, %v4615_v11, 0.0  ;;  %v2641_v13 = vpop.xlane.xlu0 %2640 }
 0xae1   : > { %2423 = vadd.xlane.f32.xlu1 %v2422_v12  ;;  %v2642_v21 = vsub.f32 %v2638_v57, %v2641_v13  ;;  %v4194_v12 = vld [vmem:[%s6179_s27] ss:$0 sm:$0xff] }
 0xae3   : > { %v2643_v22 = vmul.f32 1.442695, %v2642_v21 }
 0xae7   : > { %v4617_v14 = vpop.eup %4616 }
 0xae8   : > { %v2752_v15 = vpop.xlane.xlu0 %2751  ;;  %v2534_v16 = vsel %vm2415_vm8, %v4617_v14, 0.0 }
 0xae9   : > { %v2753_v17 = vsub.f32 %v2749_v63, %v2752_v15  ;;  %2535 = vadd.xlane.f32.xlu0 %v2534_v16 }
 0xaeb   : > { %v2754_v18 = vmul.f32 1.442695, %v2753_v17 }
 0xaed   : > { %4618 = vpow2.f32 %v2754_v18 }
 0xaee   : > { %4620 = vpow2.f32 %v2643_v22 }
 0xaf2   : > { %2428 = vrot.lane.b32.xlu1 %v5812_v30, %s5106_s18  ;;  %s6184_s18 = sld [smem:[#allocation48_spill]] }
 0xaf7   : > { %v4619_v19 = vpop.eup %4618 }
 0xaf8   : > { %v2756_v20 = vsel %vm2415_vm8, %v4619_v19, 0.0  ;;  %v4621_v23 = vpop.eup %4620 }
 0xaf9   : > { %2757 = vadd.xlane.f32.xlu0 %v2756_v20  ;;  %v2645_v24 = vsel %vm2415_vm8, %v4621_v23, 0.0 }
 0xb0f   : > { %2540 = vrot.lane.b32.xlu0 %v5812_v30, %s5107_s30  ;;  %s6185_s30 = scalar_lea.vmem [#allocation11], %s6163_s4 }
 0xb16   : > { %2646 = vadd.xlane.f32.xlu1 %v2645_v24  ;;  %v4601_v24 = vld [vmem:[%s6182_s21] sm:$0xff]  }
 0xb27   : > { %2651 = vrot.lane.b32.xlu1 %v5812_v30, %s5108_s14  ;;  %s6186_s14 = scalar_lea.vmem [#allocation13], %s6163_s4 }
 0xb2b   : > { %2762 = vrot.lane.b32.xlu1 %v5812_v30, %s5109_s12  ;;  %s6187_s12 = scalar_lea.vmem %s6184_s18, %s5689_s19 }
 0xb6e   : > { %v2424_v25 = vpop.xlane.xlu1 %2423 }
 0xb6f   : > { %4622 = vrcp.f32 %v2424_v25 }
 0xb72   : > { %v2429_v26 = vpop.permute.xlu1 %2428 }
 0xb73   : > { %v2435_v27 = vsel %vm2433_vm9, %v2429_v26, 0 }
 0xb74   : > { %4321 = vmatpush3.bf16.msra.mxu0 %v2435_v27 }
 0xb75   : > { %4332 = vmatprep.subr.bf16.mxu0 %v5097_v39 }
 0xb76   : > { %v2536_v29 = vpop.xlane.xlu0 %2535 }
 0xb77   : > { %4624 = vrcp.f32 %v2536_v29  ;;  %v4195_v29 = vld [vmem:[%s6185_s30] ss:$0 sm:$0xff] }
 0xb79   : > { %v4623_v28 = vpop.eup %4622 }
 0xb7a   : > { %v2426_v31 = vmul.f32 %v4623_v28, %v4615_v11 }
 0xb7c   : > { %v2427_v32 = vpack.c.bf16 %v2426_v31, %v2426_v31 }
 0xb7e   : > { %4323 = vmatmul.mubr.msk.bf16.vlgmr.msra.gmra.mrb[8].mxu0 %vm2415_vm8, %v2427_v32  ;;  %v4196_v32 = vld [vmem:[%s6186_s14] ss:$0 sm:$0xff] }
 0xb7f   : > { %4334 = vmatprep.mubr.msk.bf16.mxu0 %vm5098_vm5, %v5097_v39 }
 0xb81   : > { %v4625_v30 = vpop.eup %4624 }
 0xb82   : > { %v2538_v34 = vmul.f32 %v4625_v30, %v4617_v14 }
 0xb84   : > { %v2539_v37 = vpack.c.bf16 %v2538_v34, %v2538_v34 }
 0xb86   : > { %v2758_v33 = vpop.xlane.xlu0 %2757 }
 0xb8a   : > { %v2541_v35 = vpop.permute.xlu0 %2540 }
 0xb8b   : > { %v2546_v36 = vsel %vm2433_vm9, %v2541_v35, 0  ;;  %v4602_v35 = vld [vmem:[%s1960_s20] sm:$0xff]   ;;  %s6190_s20 = scalar_lea.vmem %s6188_s16, %s5689_s19 }
 0xb8c   : > { %4333 = vmatpush3.bf16.msra.mxu0 %v2546_v36  ;;  %v4200_v36 = vld [vmem:[%s6187_s12] ss:$0 sm:$0xff] }
 0xb8d   : > { %4344 = vmatprep.subr.bf16.mxu0 %v5097_v39 }
 0xb8f   : > { %4335 = vmatmul.mubr.msk.bf16.vlgmr.msra.gmra.mrb[12].mxu0 %vm2415_vm8, %v2539_v37 }
 0xb90   : > { %4346 = vmatprep.mubr.msk.bf16.mxu0 %vm5098_vm5, %v5097_v39 }
 0xba3   : > { %v2647_v38 = vpop.xlane.xlu1 %2646 }
 0xba4   : > { %4626 = vrcp.f32 %v2647_v38 }
 0xba5   : > { %4628 = vrcp.f32 %v2758_v33 }
 0xba7   : > { %v2652_v40 = vpop.permute.xlu1 %2651 }
 0xba8   : > { %v2657_v41 = vsel %vm2433_vm9, %v2652_v40, 0 }
 0xba9   : > { %4345 = vmatpush3.bf16.msra.mxu0 %v2657_v41 }
 0xbaa   : > { %4356 = vmatprep.subr.bf16.mxu0 %v5097_v39 }
 0xbab   : > { %v2763_v44 = vpop.permute.xlu1 %2762 }
 0xbac   : > { %v2768_v47 = vsel %vm2433_vm9, %v2763_v44, 0 }
 0xbae   : > { %v4627_v42 = vpop.eup %4626 }
 0xbaf   : > { %v2649_v43 = vmul.f32 %v4627_v42, %v4621_v23  ;;  %v4629_v46 = vpop.eup %4628 }
 0xbb0   : > { %v2760_v48 = vmul.f32 %v4629_v46, %v4619_v19 }
 0xbb1   : > { %v2650_v45 = vpack.c.bf16 %v2649_v43, %v2649_v43 }
 0xbb2   : > { %v2761_v49 = vpack.c.bf16 %v2760_v48, %v2760_v48 }
 0xbb3   : > { %4347 = vmatmul.mubr.msk.bf16.vlgmr.msra.gmra.mrb[16].mxu0 %vm2415_vm8, %v2650_v45 }
 0xbb4   : > { %4357 = vmatpush3.bf16.msra.mxu0 %v2768_v47  ;;  %4358 = vmatprep.mubr.msk.bf16.mxu0 %vm5098_vm5, %v5097_v39 }
 0xbb5   : > { %4368 = vmatprep.subr.bf16.mxu0 %v5097_v39 }
 0xbbb   : > { %4359 = vmatmul.mubr.msk.bf16.vlgmr.msra.gmra.mrb[20].mxu0 %vm2415_vm8, %v2761_v49 }
 0xbbc   : > { %4370 = vmatprep.mubr.msk.bf16.mxu0 %vm5098_vm5, %v5097_v39  ;;  %4369 = vmatpush3.bf16.msra.mxu0 %v4601_v24 }
 0xbbd   : > { %4380 = vmatprep.subr.bf16.mxu0 %v5097_v39 }
 0xc51   : > { %v2471_v50 = vpop.f32.mrb[8].mxu0 }
 0xc52   : > { %v4324_v51 = vpop.f32.mrb[9].mxu0 }
 0xc53   : > { %v2474_v52 = vpop.f32.mrb[10].mxu0 }
 0xc54   : > { %v4325_v53 = vpop.f32.mrb[11].mxu0  ;;  %v4197_v52 = vld [vmem:[%s6190_s20] ss:$0 sm:$0xff] }
 0xc62   : > { %v2582_v54 = vpop.f32.mrb[12].mxu0 }
 0xc63   : > { %2811 = vrot.lane.b32.xlu1 %v2582_v54, %s5110_s9  ;;  %v4336_v55 = vpop.f32.mrb[13].mxu0 }
 0xc64   : > { %v2585_v56 = vpop.f32.mrb[14].mxu0 }
 0xc65   : > { %v4337_v57 = vpop.f32.mrb[15].mxu0  ;;  %v3043_v56 = vld [vmem:[%s1955_s11] sm:$0x7f]  ;;  %s6191_s11 = scalar_lea.vmem [#allocation14], %s6163_s4 }
 0xc86   : > { %v2693_v59 = vpop.f32.mrb[16].mxu0 }
 0xc87   : > { %2815 = vrot.lane.b32.xlu0 %v2693_v59, %s5111_s3  ;;  %v4348_v60 = vpop.f32.mrb[17].mxu0 }
 0xc88   : > { %v2696_v61 = vpop.f32.mrb[18].mxu0 }
 0xc89   : > { %v4349_v62 = vpop.f32.mrb[19].mxu0 }
 0xc8e   : > { %v2804_v63 = vpop.f32.mrb[20].mxu0 }
 0xc8f   : > { %2819 = vrot.lane.b32.xlu1 %v2804_v63, %s5112_s8  ;;  %v4360_v0 = vpop.f32.mrb[21].mxu0  ;;  %s6194_s8 = scalar_lea.vmem [#allocation17], %s6163_s4 }
 0xc90   : > { %v2807_v1 = vpop.f32.mrb[22].mxu0 }
 0xc91   : > { %v4361_v2 = vpop.f32.mrb[23].mxu0 }
 0xcd5   : > { %v2812_v3 = vpop.permute.xlu1 %2811 }
 0xcd6   : > { %v2822_v5 = vsel %vm2367_vm7, %v2471_v50, %v2812_v3  ;;  %v3044_v50 = vlaneseq }
 0xcd8   : > { %v3045_v51 = vshrl.u32 %v3044_v50, 7  ;;  %v4205_v50 = vld [vmem:[%s6192_s17] ss:$0 sm:$0xff] }
 0xcda   : > { %v3052_v53 = vsub.s32 1, %v3045_v51  ;;  %v3066_v54 = vsub.s32 2, %v3045_v51  ;;  %v3080_v57 = vsub.s32 3, %v3045_v51  ;;  %v3094_v58 = vsub.s32 4, %v3045_v51 }
 0xcdb   : > { %v3046_v60 = vsub.s32 0, %v3045_v51  ;;  %v3107_v62 = vsub.s32 5, %v3045_v51  ;;  %v3120_v63 = vsub.s32 6, %v3045_v51 }
 0xcdc   : > { %v3053_v0 = vrot.slane %v3043_v56, %v3052_v53  ;;  %v3067_v1 = vrot.slane %v3043_v56, %v3066_v54  ;;  %v3081_v3 = vrot.slane %v3043_v56, %v3080_v57 }
 0xcf9   : > { %v2816_v4 = vpop.permute.xlu0 %2815 }
 0xcfa   : > { %v2823_v6 = vsel %vm2415_vm8, %v2822_v5, %v2816_v4  ;;  %v3095_v4 = vrot.slane %v3043_v56, %v3094_v58  ;;  %v3047_v5 = vrot.slane %v3043_v56, %v3046_v60 }
 0xd01   : > { %v2820_v8 = vpop.permute.xlu1 %2819 }
 0xd02   : > { %v2825_v9 = vsel %vm2824_vm10, %v2823_v6, %v2820_v8 }
 0xd03   : > { %v2828_v10 = vpack.c.bf16 %v2825_v9, %v2825_v9  ;;  %v3108_v9 = vrot.slane %v3043_v56, %v3107_v62  ;;  %v4210_v62 = vld [vmem:[%s1963_s25] ss:$0 sm:$0xff] }
 0xd05   : > { %4365 = vmatmul.mubr.msk.bf16.vlgmr.msra.gmra.mrb[20].mxu1 %vm2110_vm4, %v2828_v10  ;;  %v3121_v10 = vrot.slane %v3043_v56, %v3120_v63 }
 0xd06   : > { %4376 = vmatprep.mubr.msk.bf16.mxu1 %vm5098_vm5, %v5097_v39 }
 0xdd8   : > { %v2872_v11 = vpop.f32.mrb[20].mxu1 }
 0xdd9   : > { %v2878_v13 = vadd.f32 %v2872_v11, %v5791_v7  ;;  %v4366_v14 = vpop.f32.mrb[21].mxu1  ;;  %v4600_v7 = vld [vmem:[%s6181_s26] sm:$0xff]  }
 0xdda   : > { %v2875_v15 = vpop.f32.mrb[22].mxu1  ;;  %4375 = vmatpush3.bf16.msra.mxu1 %v4600_v7 }
 0xddb   : > { %v5886_v16 = vadd.f32 %v4194_v12, %v2878_v13  ;;  %v4367_v17 = vpop.f32.mrb[23].mxu1  ;;  %4386 = vmatprep.subr.bf16.mxu1 %v5097_v39 }
 0xddd   : > { %v2889_v18 = vsel %vm2110_vm4, %v5886_v16, 0.0 }
 0xdde   : > { %2890 = vadd.xlane.f32.xlu0 %v2889_v18 }
 0xe6b   : > { %v2891_v19 = vpop.xlane.xlu0 %2890 }
 0xe6c   : > { %v2892_v20 = vmul.f32 0.0625, %v2891_v19 }
 0xe6e   : > { %v2893_v21 = vsub.f32 %v5886_v16, %v2892_v20 }
 0xe70   : > { %v2894_v22 = vmul.f32 %v2893_v21, %v2893_v21 }
 0xe72   : > { %v2895_v23 = vsel %vm2110_vm4, %v2894_v22, 0.0 }
 0xe73   : > { %2896 = vadd.xlane.f32.xlu1 %v2895_v23 }
 0xf00   : > { %v2897_v25 = vpop.xlane.xlu1 %2896 }
 0xf01   : > { %v2898_v26 = vmul.f32 0.0625, %v2897_v25 }
 0xf03   : > { %v2899_v27 = vadd.f32 1e-05, %v2898_v26 }
 0xf05   : > { %4630 = vrsqrt.f32 %v2899_v27 }
 0xf0f   : > { %v4631_v28 = vpop.eup %4630 }
 0xf10   : > { %v2901_v31 = vmul.f32 %v4631_v28, %v2893_v21 }
 0xf12   : > { %v2908_v30 = vmul.f32 %v4195_v29, %v2901_v31 }
 0xf14   : > { %v2915_v33 = vadd.f32 %v4196_v32, %v2908_v30 }
 0xf16   : > { %v2918_v34 = vpack.c.bf16 %v2915_v33, %v2915_v33 }
 0xf18   : > { %4371 = vmatmul.mubr.msk.bf16.vlgmr.msra.gmra.mrb[24].mxu0 %vm2110_vm4, %v2918_v34  ;;  %4377 = vmatmul.mubr.msk.bf16.vlgmr.msra.gmra.mrb[24].mxu1 %vm2110_vm4, %v2918_v34 }
 0xf19   : > { %4382 = vmatprep.mubr.msk.bf16.mxu0 %vm5098_vm5, %v5097_v39  ;;  %4388 = vmatprep.mubr.msk.bf16.mxu1 %vm5098_vm5, %v5097_v39 }
 0xf1a   : > { %4381 = vmatpush3.bf16.msra.mxu0 %v4602_v35 }
 0xf1b   : > { %4392 = vmatprep.subr.bf16.mxu0 %v5097_v39 }
 0xfeb   : > { %v2969_v37 = vpop.f32.mrb[24].mxu0  ;;  %v3024_v38 = vpop.f32.mrb[24].mxu1 }
 0xfec   : > { %v3025_v40 = vadd.f32 %v4200_v36, %v3024_v38  ;;  %v4372_v41 = vpop.f32.mrb[25].mxu0  ;;  %v4378_v42 = vpop.f32.mrb[25].mxu1  ;;  %v2970_v55 = vadd.f32 %v4197_v52, %v2969_v37  ;;  %v4206_v52 = vld [vmem:[%s6194_s8] ss:$0 sm:$0xff] }
 0xfed   : > { %v2972_v43 = vpop.f32.mrb[26].mxu0  ;;  %v3027_v44 = vpop.f32.mrb[26].mxu1 }
 0xfee   : > { %v4203_v45 = vmul.f32 -1.442695, %v3025_v40  ;;  %v4373_v46 = vpop.f32.mrb[27].mxu0  ;;  %v4379_v47 = vpop.f32.mrb[27].mxu1 }
 0xff0   : > { %4632 = vpow2.f32 %v4203_v45 }
 0xffa   : > { %v4633_v48 = vpop.eup %4632 }
 0xffb   : > { %v3033_v49 = vadd.f32 1.0, %v4633_v48  ;;  %v4204_v48 = vld [vmem:[%s6191_s11] ss:$0 sm:$0xff] }
 0xffd   : > { %4634 = vrcp.f32 %v3033_v49 }
0x1007   : > { %v4635_v59 = vpop.eup %4634 }
0x1008   : > { %v3036_v61 = vmul.f32 %v4635_v59, %v2970_v55 }
0x100a   : > { %v3038_v2 = vrot.slane %v3036_v61, 5 }
0x100c   : > { %v3041_v6 = vsel %vm3040_vm11, 0.0, %v3038_v2  ;;  %v3042_v8 = vsel %vm3040_vm11, %v3038_v2, 0.0 }
0x100d   : > { %v3054_v11 = vmul.f32 %v3053_v0, %v3041_v6  ;;  %v3055_v12 = vmul.f32 %v3053_v0, %v3042_v8  ;;  %v3068_v13 = vmul.f32 %v3067_v1, %v3041_v6  ;;  %v3069_v14 = vmul.f32 %v3067_v1, %v3042_v8 }
0x100e   : > { %v3082_v15 = vmul.f32 %v3081_v3, %v3041_v6  ;;  %v3083_v17 = vmul.f32 %v3081_v3, %v3042_v8  ;;  %v3097_v18 = vmul.f32 %v3095_v4, %v3042_v8  ;;  %v3048_v22 = vmul.f32 %v3047_v5, %v3041_v6 }
0x100f   : > { %v3059_v19 = vrot.slane %v3054_v11, 1  ;;  %v3060_v20 = vrot.slane %v3055_v12, 1  ;;  %v3073_v21 = vrot.slane %v3068_v13, 2  ;;  %v3074_v23 = vrot.slane %v3069_v14, 2 }
0x1010   : > { %v3087_v7 = vrot.slane %v3082_v15, 3  ;;  %v3109_v24 = vmul.f32 %v3108_v9, %v3041_v6  ;;  %v3088_v25 = vrot.slane %v3083_v17, 3  ;;  %v3110_v26 = vmul.f32 %v3108_v9, %v3042_v8  ;;  %v4211_v15 = vld [vmem:[%s1966_s7] ss:$0 sm:$0xff]  ;;  %s6202_s7 = sld [smem:[#allocation71_spill]] }
0x1011   : > { %v3061_v27 = vsel %vm3058_vm12, %v3059_v19, %v3060_v20  ;;  %v3096_v28 = vmul.f32 %v3095_v4, %v3041_v6  ;;  %v3101_v29 = vrot.slane %v3097_v18, 4  ;;  %v3075_v32 = vsel %vm3072_vm13, %v3073_v21, %v3074_v23  ;;  %v4212_v18 = vld [vmem:[%s1969_s15] ss:$0 sm:$0xff]  ;;  %v4605_v23 = vld [vmem:[%s5738_s0 + $0x8] sm:$0xff]  }
0x1012   : > { %v3063_v31 = vadd.f32 %v3061_v27, %v3048_v22  ;;  %v3122_v33 = vmul.f32 %v3121_v10, %v3041_v6  ;;  %v3123_v34 = vmul.f32 %v3121_v10, %v3042_v8  ;;  %v3113_v36 = vrot.slane %v3109_v24, 5  ;;  %v4604_v22 = vld [vmem:[%s5738_s0] sm:$0xff]  }
0x1013   : > { %v3100_v30 = vrot.slane %v3096_v28, 4  ;;  %v3114_v37 = vrot.slane %v3110_v26, 5  ;;  %v3089_v38 = vsel %vm3086_vm14, %v3087_v7, %v3088_v25  ;;  %v4213_v7 = vld [vmem:[%s1977_s29] ss:$0 sm:$0xff] }
0x1014   : > { %v3077_v35 = vadd.f32 %v3075_v32, %v3063_v31  ;;  %v3127_v42 = vrot.slane %v3122_v33, 6  ;;  %v3128_v43 = vrot.slane %v3123_v34, 6 }
0x1015   : > { %v3102_v41 = vsel %vm2433_vm9, %v3100_v30, %v3101_v29  ;;  %v3115_v45 = vsel %vm3040_vm11, %v3113_v36, %v3114_v37 }
0x1016   : > { %v3091_v40 = vadd.f32 %v3089_v38, %v3077_v35  ;;  %v3129_v47 = vsel %vm3126_vm15, %v3127_v42, %v3128_v43  ;;  %p4223_p1 = scmp.ne.s32.totalorder %s6202_s7, 1 }
0x1017   : > { %s6203_s15 = sld [smem:[#allocation63_spill]] (!%p4223_p1)  ;;  %vm5114_vm0 = vmmov (!%p4223_p1), 0   ;;  %vm3425_vm1 = vcmask (!%p4223_p1), 1040384   ;;  %s6205_s19 = sld [smem:[#allocation65_spill]] (!%p4223_p1)  ;;  %vm3550_vm2 = vcmask (!%p4223_p1), 392192   ;;  %vm3554_vm3 = vcmask (!%p4223_p1), 385024  }
0x1018   : > { %v3104_v44 = vadd.f32 %v3102_v41, %v3091_v40 }
0x101a   : > { %v3117_v46 = vadd.f32 %v3115_v45, %v3104_v44 }
0x101c   : > { %v3131_v49 = vadd.f32 %v3129_v47, %v3117_v46 }
0x101e   : > { %v3139_v51 = vadd.f32 %v4204_v48, %v3131_v49 }
0x1020   : > { %v3147_v53 = vmul.f32 %v4205_v50, %v3139_v51 }
0x1022   : > { %v3155_v54 = vadd.f32 %v4206_v52, %v3147_v53  ;;  %v4221_v53 = vld [vmem:[%s1988_s6] ss:$0 sm:$0xff] }
0x1024   : > { %v4207_v55 = vmul.f32 -1.442695, %v3155_v54 }
0x1026   : > { %4636 = vpow2.f32 %v4207_v55  ;;  %v4222_v55 = vld [vmem:[%s1991_s28] ss:$0 sm:$0xff]  ;;  %s6206_s28 = sld [smem:[#allocation66_spill]] (!%p4223_p1) }
0x1030   : > { %v4637_v56 = vpop.eup %4636 }
0x1031   : > { %v3159_v57 = vadd.f32 1.0, %v4637_v56 }
0x1033   : > { %4638 = vrcp.f32 %v3159_v57 }
0x103d   : > { %v4639_v58 = vpop.eup %4638 }
0x103e   : > { %v3162_v59 = vmul.f32 %v4639_v58, %v3155_v54  ;;  %v4648_v58 = vld [vmem:[%s6203_s15] sm:$0xff] (!%p4223_p1)  }
0x1040   : > { %v3165_v60 = vpack.c.bf16 %v3162_v59, %v3162_v59  ;;  %v5113_v59 = vmov (!%p4223_p1), 0.0  }
0x1042   : > { %4383 = vmatmul.mubr.msk.bf16.vlgmr.msra.gmra.mrb[28].mxu0 %vm2110_vm4, %v3165_v60 }
0x1043   : > { %4396 = vmatprep.mubr.msk.bf16.mxu0 %vm5098_vm5, %v5097_v39  ;;  %4393 = vmatpush3.bf16.msra.mxu0 %v4604_v22 }
0x1044   : > { %4394 = vmatprep.subr.bf16.mxu0 %v5097_v39  ;;  %v4217_v39 = vld [vmem:[%s1985_s22] ss:$0 sm:$0xff]  ;;  %s6207_s22 = sld [smem:[#allocation67_spill]] (!%p4223_p1) }
0x1047   : > { %4395 = vmatpush3.bf16.msra.mxu0 %v4605_v23 }
0x1048   : > { %4400 = vmatprep.subr.bf16.mxu0 (!%p4223_p1), %v5113_v59 }
0x1115   : > { %v3209_v61 = vpop.f32.mrb[28].mxu0 }
0x1116   : > { %v3215_v63 = vadd.f32 %v3209_v61, %v5886_v16  ;;  %v4384_v0 = vpop.f32.mrb[29].mxu0  ;;  %v4603_v16 = vld [vmem:[%s1974_s1] sm:$0xff]   ;;  %s6204_s1 = sld [smem:[#allocation64_spill]] (!%p4223_p1) }
0x1117   : > { %v3212_v1 = vpop.f32.mrb[30].mxu0  ;;  %4387 = vmatpush3.bf16.msra.mxu1 %v4603_v16  ;;  %v4228_v16 = vld [vmem:[%s6205_s19] ss:$0 sm:$0xff] (!%p4223_p1) }
0x1118   : > { %v3223_v2 = vadd.f32 %v4210_v62, %v3215_v63  ;;  %v4385_v3 = vpop.f32.mrb[31].mxu0  ;;  %4406 = vmatprep.subr.bf16.mxu1 (!%p4223_p1), %v5113_v59 }
0x111a   : > { %v3226_v4 = vsel %vm2110_vm4, %v3223_v2, 0.0 }
0x111b   : > { %3227 = vadd.xlane.f32.xlu0 %v3226_v4 }
0x111c   : > { %v4649_v60 = vld [vmem:[%s6204_s1] sm:$0xff] (!%p4223_p1)  }
0x11a8   : > { %v3228_v5 = vpop.xlane.xlu0 %3227 }
0x11a9   : > { %v3229_v6 = vmul.f32 0.0625, %v3228_v5 }
0x11ab   : > { %v3230_v8 = vsub.f32 %v3223_v2, %v3229_v6 }
0x11ad   : > { %v3231_v9 = vmul.f32 %v3230_v8, %v3230_v8 }
0x11af   : > { %v3232_v10 = vsel %vm2110_vm4, %v3231_v9, 0.0 }
0x11b0   : > { %3233 = vadd.xlane.f32.xlu0 %v3232_v10 }
0x123d   : > { %v3234_v11 = vpop.xlane.xlu0 %3233 }
0x123e   : > { %v3235_v12 = vmul.f32 0.0625, %v3234_v11 }
0x1240   : > { %v3236_v13 = vadd.f32 1e-05, %v3235_v12 }
0x1242   : > { %4640 = vrsqrt.f32 %v3236_v13 }
0x124c   : > { %v4641_v14 = vpop.eup %4640 }
0x124d   : > { %v3238_v17 = vmul.f32 %v4641_v14, %v3230_v8 }
0x124f   : > { %v3245_v19 = vmul.f32 %v4211_v15, %v3238_v17 }
0x1251   : > { %v3252_v20 = vadd.f32 %v4212_v18, %v3245_v19 }
0x1253   : > { %v3255_v21 = vpack.c.bf16 %v3252_v20, %v3252_v20 }
0x1255   : > { %4389 = vmatmul.mubr.msk.bf16.vlgmr.msra.gmra.mrb[28].mxu1 %vm2110_vm4, %v3255_v21 }
0x1256   : > { %4407 = vmatpush3.bf16.msra.mxu1 (!%p4223_p1), %v4648_v58  ;;  %4408 = vmatprep.mubr.msk.bf16.mxu1 (!%p4223_p1), %vm5114_vm0, %v5113_v59 }
0x1328   : > { %v3306_v24 = vpop.f32.mrb[28].mxu1 }
0x1329   : > { %v3307_v25 = vadd.f32 %v4213_v7, %v3306_v24  ;;  %v4390_v26 = vpop.f32.mrb[29].mxu1 }
0x132a   : > { %v3309_v27 = vpop.f32.mrb[30].mxu1 }
0x132b   : > { %v4216_v28 = vmul.f32 -1.442695, %v3307_v25  ;;  %v4391_v29 = vpop.f32.mrb[31].mxu1 }
0x132d   : > { %4642 = vpow2.f32 %v4216_v28 }
0x1337   : > { %v4643_v31 = vpop.eup %4642 }
0x1338   : > { %v3315_v32 = vadd.f32 1.0, %v4643_v31 }
0x133a   : > { %4644 = vrcp.f32 %v3315_v32 }
0x1344   : > { %v4645_v30 = vpop.eup %4644 }
0x1345   : > { %v3318_v33 = vmul.f32 %v4645_v30, %v3307_v25 }
0x1347   : > { %v3323_v34 = vpack.c.bf16 %v3318_v33, %v3318_v33 }
0x1349   : > { %4397 = vmatmul.mubr.msk.bf16.vlgmr.msra.gmra.mrb[32].mxu0 %vm2229_vm6, %v3323_v34 }
0x134a   : > { %4401 = vmatpush3.bf16.msra.mxu0 (!%p4223_p1), %v4649_v60  ;;  %4402 = vmatprep.mubr.msk.bf16.mxu0 (!%p4223_p1), %vm5114_vm0, %v5113_v59 }
0x141c   : > { %v3380_v35 = vpop.f32.mrb[32].mxu0 }
0x141d   : > { %v3381_v36 = vadd.f32 %v4217_v39, %v3380_v35  ;;  %v4398_v37 = vpop.f32.mrb[33].mxu0 }
0x141e   : > { %v3383_v38 = vpop.f32.mrb[34].mxu0 }
0x141f   : > { %v3386_v40 = vmul.f32 0.5, %v3381_v36  ;;  %v4399_v41 = vpop.f32.mrb[35].mxu0  ;;  %v4229_v36 = vld [vmem:[%s6206_s28] ss:$0 sm:$0xff] (!%p4223_p1) }
0x1420   : > { %v4230_v38 = vld [vmem:[%s6207_s22] ss:$0 sm:$0xff] (!%p4223_p1) }
0x1421   : > { %v3387_v42 = vadd.f32 %v3386_v40, %v3223_v2 }
0x1423   : > { %v3390_v43 = vsel %vm2110_vm4, %v3387_v42, 0.0 }
0x1424   : > { %3391 = vadd.xlane.f32.xlu0 %v3390_v43 }
0x14b1   : > { %v3392_v44 = vpop.xlane.xlu0 %3391 }
0x14b2   : > { %v3393_v45 = vmul.f32 0.0625, %v3392_v44 }
0x14b4   : > { %v3394_v46 = vsub.f32 %v3387_v42, %v3393_v45 }
0x14b6   : > { %v3395_v47 = vmul.f32 %v3394_v46, %v3394_v46 }
0x14b8   : > { %v3396_v48 = vsel %vm2110_vm4, %v3395_v47, 0.0 }
0x14b9   : > { %3397 = vadd.xlane.f32.xlu1 %v3396_v48 }
0x1546   : > { %v3398_v49 = vpop.xlane.xlu1 %3397 }
0x1547   : > { %v3399_v50 = vmul.f32 0.0625, %v3398_v49 }
0x1549   : > { %v3400_v51 = vadd.f32 1e-05, %v3399_v50 }
0x154b   : > { %4646 = vrsqrt.f32 %v3400_v51 }
0x1555   : > { %v4647_v52 = vpop.eup %4646 }
0x1556   : > { %v3402_v54 = vmul.f32 %v4647_v52, %v3394_v46  ;;  %3421 = sbr.rel (%p4223_p1) target bundleno = 6015 (0x177f), region = 240 }
0x1558   : > { %v3409_v56 = vmul.f32 %v4221_v53, %v3402_v54 }
0x155a   : > { %v3416_v57 = vadd.f32 %v4222_v55, %v3409_v56 }
0x155c   : > { %3417 = vst.msk [vmem:[#allocation2] sm:$0xff] %vm2110_vm4, %v3416_v57  ;;  %v3423_v61 = vrot.slane (!%p4223_p1), %v3416_v57, 7 }
0x155e   : > { %v3426_v62 = vsel %vm3425_vm1, 0.0, %v3423_v61  ;;  %v3427_v63 = vsel %vm3425_vm1, %v3423_v61, 0.0 }
0x155f   : > { %v3430_v0 = vpack.c.bf16 %v3427_v63, %v3426_v62 }
0x1561   : > { %4409 = vmatmul.mubr.msk.bf16.vlgmr.msra.gmra.mrb[0].mxu1 %vm2110_vm4, %v3430_v0  ;;  %v3434_v1 = vshrl.u32 %v3430_v0, 16  ;;  %v3436_v2 = vshll.u32 %v3430_v0, 16 }
0x1563   : > { %v3438_v3 = vrot.slane %v3436_v2, 1 }
0x1565   : > { %v3439_v4 = vor.u32 %v3438_v3, %v3434_v1 }
0x1567   : > { %4403 = vmatmul.mubr.msk.bf16.vlgmr.msra.gmra.mrb[0].mxu0 %vm2110_vm4, %v3439_v4 }
0x1634   : > { %v3532_v5 = vpop.f32.mrb[0].mxu1 }
0x1635   : > { %v4410_v6 = vpop.f32.mrb[1].mxu1 }
0x1636   : > { %v3535_v8 = vpop.f32.mrb[2].mxu1 }
0x1637   : > { %v4411_v9 = vpop.f32.mrb[3].mxu1 }
0x163a   : > { %v3483_v10 = vpop.f32.mrb[0].mxu0 }
0x163b   : > { %v3533_v11 = vadd.f32 %v3532_v5, %v3483_v10  ;;  %v4404_v12 = vpop.f32.mrb[1].mxu0 }
0x163c   : > { %v3486_v13 = vpop.f32.mrb[2].mxu0 }
0x163d   : > { %v3536_v14 = vadd.f32 %v3535_v8, %v3486_v13  ;;  %v4405_v15 = vpop.f32.mrb[3].mxu0  ;;  %v3546_v17 = vadd.f32 %v4228_v16, %v3533_v11 }
0x163f   : > { %v3551_v18 = vsel %vm3550_vm2, %v3546_v17, 0.0  ;;  %v3547_v19 = vadd.f32 %v4228_v16, %v3536_v14 }
0x1640   : > { %3552 = vadd.xlane.f32.xlu0 %v3551_v18 }
0x1641   : > { %v3555_v20 = vsel %vm3554_vm3, %v3547_v19, 0.0 }
0x1644   : > { %3556 = vadd.xlane.f32.xlu0 %v3555_v20 }
0x16cd   : > { %v3553_v21 = vpop.xlane.xlu0 %3552 }
0x16ce   : > { %v3559_v22 = vmul.f32 0.020833334, %v3553_v21 }
0x16d0   : > { %v3561_v23 = vsub.f32 %v3546_v17, %v3559_v22 }
0x16d1   : > { %v3557_v7 = vpop.xlane.xlu0 %3556 }
0x16d2   : > { %v3560_v24 = vmul.f32 0.020833334, %v3557_v7  ;;  %v3563_v25 = vmul.f32 %v3561_v23, %v3561_v23 }
0x16d4   : > { %v3562_v26 = vsub.f32 %v3547_v19, %v3560_v24  ;;  %v3565_v27 = vsel %vm3550_vm2, %v3563_v25, 0.0 }
0x16d5   : > { %3566 = vadd.xlane.f32.xlu1 %v3565_v27 }
0x16d6   : > { %v3564_v28 = vmul.f32 %v3562_v26, %v3562_v26 }
0x16d8   : > { %v3568_v29 = vsel %vm3554_vm3, %v3564_v28, 0.0 }
0x16d9   : > { %3569 = vadd.xlane.f32.xlu1 %v3568_v29 }
0x1762   : > { %v3567_v31 = vpop.xlane.xlu1 %3566 }
0x1763   : > { %v3571_v32 = vmul.f32 0.020833334, %v3567_v31 }
0x1765   : > { %v3573_v30 = vadd.f32 1e-05, %v3571_v32 }
0x1766   : > { %v3570_v33 = vpop.xlane.xlu1 %3569 }
0x1767   : > { %4650 = vrsqrt.f32 %v3573_v30  ;;  %v3572_v34 = vmul.f32 0.020833334, %v3570_v33 }
0x1769   : > { %v3574_v39 = vadd.f32 1e-05, %v3572_v34 }
0x176b   : > { %4652 = vrsqrt.f32 %v3574_v39 }
0x1771   : > { %v4651_v35 = vpop.eup %4650 }
0x1772   : > { %v3577_v37 = vmul.f32 %v4651_v35, %v3561_v23 }
0x1774   : > { %v3585_v40 = vmul.f32 %v4229_v36, %v3577_v37 }
0x1775   : > { %v4653_v41 = vpop.eup %4652 }
0x1776   : > { %v3593_v42 = vadd.f32 %v4230_v38, %v3585_v40  ;;  %v3578_v43 = vmul.f32 %v4653_v41, %v3562_v26 }
0x1778   : > { %v3595_v44 = vmax.f32 %v3593_v42, 0.0  ;;  %v3586_v45 = vmul.f32 %v4229_v36, %v3578_v43 }
0x177a   : > { %3597 = vst.msk [vmem:[%s5747_s2] sm:$0xff] %vm3550_vm2, %v3595_v44  ;;  %v3594_v46 = vadd.f32 %v4230_v38, %v3586_v45 }
0x177c   : > { %v3596_v47 = vmax.f32 %v3594_v46, 0.0 }
0x177e   : > { %3598 = vst.msk [vmem:[%s5747_s2 + $0x8] sm:$0x1] %vm3554_vm3, %v3596_v47 }
0x177f PF: > { %s6208_s6 = sld [smem:[#allocation74_spill]]  ;;  %s6209_s22 = sld [smem:[#allocation69_spill]] }
0x1780   : > { %s6210_s23 = sld [smem:[#allocation70_spill]]  ;;  %s6211_s26 = sld [smem:[#allocation77_spill]] }
0x1781   : > { %s6212_s0 = sld [smem:[#allocation72_spill]]  ;;  %s6213_s28 = sld [smem:[#allocation73_spill]] }
0x1782   : > { %s6214_s1 = sld [smem:[#allocation75_spill]]  ;;  %s6215_s2 = sld [smem:[#allocation76_spill]] }
0x1785   : > { %s115_s7 = sadd.s32 1, %s6208_s6  }
0x1786   : > { %p112_p3 = scmp.ge.s32.totalorder %s115_s7, 6  }
0x1788   :  { %114 = sbr.rel (!%p112_p3) target bundleno = 108 (0x6c), region = 461 }
0x178f   :  { %3620 = vsyncpa [#allocation4], 1 }
0x1790   :  { %3622 = vsyncpa [#allocation4 + $0x1], 1 }
0x1791   :  { %3623 = vsyncpa [#allocation6], 1 }
0x1792   :  { %3625 = vsyncpa [#allocation6 + $0x1], 1 }
0x1793   :  { %3626 = vsyncpa [#allocation9], 1 }
0x1794   :  { %3628 = vsyncpa [#allocation9 + $0x1], 1 }
0x1795   :  { %3629 = vsyncpa [#allocation12], 1 }
0x1796   :  { %3631 = vsyncpa [#allocation12 + $0x1], 1 }
0x1797   :  { %3632 = vsyncpa [#allocation15], 1 }
0x1798   :  { %3634 = vsyncpa [#allocation15 + $0x1], 1 }
0x1799   :  { %3635 = vsyncpa [#allocation18], 1 }
0x179a   :  { %3637 = vsyncpa [#allocation18 + $0x1], 1 }

</bundles_post_ra>
